<compile_context>
chip_gen: v7x
topology: tpu7x:2x2x1
jax: 0.10.0
libtpu: 0.0.40
codegen_flags: <defaults>
</compile_context>

<pallas_src>
import math

import jax
import jax.numpy as jnp
from jax.experimental import pallas as pl
from jax.experimental.pallas import tpu as pltpu


# ----------------------------- config (small) --------------------------------
VOCAB = 100
TYPE_VOCAB = 2
MAX_POS = 16
HIDDEN = 32
NUM_HEADS = 2
HEAD_DIM = HIDDEN // NUM_HEADS
INTERMEDIATE = 64
NUM_LAYERS = 2
SEQ = 8
BATCH = 2
LN_EPS = 1e-12

_VMEM_SPEC = pl.BlockSpec(memory_space=pltpu.MemorySpace.VMEM)
_SQRT_HALF = 1.0 / math.sqrt(2.0)


# --------------------------- static slab layouts ------------------------------
def _build_w_layout():
    """Row offsets of every weight matrix inside the (R,128) bf16 weight slab."""
    off, cur = {}, 0

    def alloc(name, nrows):
        nonlocal cur
        off[name] = cur
        cur += nrows

    for l in range(NUM_LAYERS):
        for j in range(3):                       # q, k, v
            for h in range(NUM_HEADS):
                alloc(f"qkv{l}_{j}_{h}", HIDDEN)      # (H, dh)
        for h in range(NUM_HEADS):
            alloc(f"ao{l}_{h}", HEAD_DIM)             # (dh, H)
        alloc(f"inter{l}", HIDDEN)                    # (H, I)
        alloc(f"out{l}", INTERMEDIATE)                # (I, H)
    alloc("pool", HIDDEN)                             # (H, H)
    total = ((cur + 15) // 16) * 16                   # bf16 tile = (16,128)
    return off, total


def _build_v_layout():
    """Row offsets of every bias/LN/misc vector inside the (R,128) f32 slab."""
    off, cur = {}, 0

    def alloc(name):
        nonlocal cur
        off[name] = cur
        cur += 1

    alloc("emb_ln_g"); alloc("emb_ln_b")
    for l in range(NUM_LAYERS):
        for j in range(3):
            for h in range(NUM_HEADS):
                alloc(f"qkv_b{l}_{j}_{h}")
        alloc(f"ao_b{l}")
        alloc(f"ln1_g{l}"); alloc(f"ln1_b{l}")
        alloc(f"inter_b{l}")
        alloc(f"out_b{l}")
        alloc(f"ln2_g{l}"); alloc(f"ln2_b{l}")
    alloc("pool_b"); alloc("cls_w"); alloc("cls_b")
    total = ((cur + 7) // 8) * 8
    return off, total


W_OFF, W_ROWS = _build_w_layout()
V_OFF, V_ROWS = _build_v_layout()


# ------------------------------ in-kernel helpers -----------------------------
def _layernorm(x, g, b):
    mu = jnp.mean(x, axis=-1, keepdims=True)
    xc = x - mu
    var = jnp.mean(xc * xc, axis=-1, keepdims=True)
    return xc * jax.lax.rsqrt(var + LN_EPS) * g + b


def _gelu(x):
    # exact erf-GELU (PyTorch/HF BERT default)
    return 0.5 * x * (1.0 + jax.lax.erf(x * _SQRT_HALF))


# ------------------------------ fused Pallas kernel ---------------------------
def _rte_fused_kernel(
    ids_ref, tids_ref,                 # SMEM scalar prefetch: (B*S,) int32 each
    tab_ref,                           # (VOCAB+MAX_POS+TYPE_VOCAB, H) f32 tables
    w_ref,                             # (W_ROWS, 128) bf16 weight slab
    v_ref,                             # (V_ROWS, 128) f32 vector slab
    dyn_ref,                           # (8, 128) f32: rows 0..B-1 labels (lane 0),
                                       #               rows B..2B-1 attn mask (lanes 0..S-1)
    out_ref,                           # (8, 128) f32: rows 0..B-1 lane0 = logits, row B lane0 = loss
    h_s, q_s, k_s, v_s, mask3_s, attn_s,   # VMEM scratch
):
    B, S, H, I = BATCH, SEQ, HIDDEN, INTERMEDIATE
    nH, dh = NUM_HEADS, HEAD_DIM
    scale = 1.0 / math.sqrt(dh)
    f32, bf16 = jnp.float32, jnp.bfloat16

    def vrow(name, width):
        return v_ref[pl.ds(V_OFF[name], 1), pl.ds(0, width)]        # (1, width) f32

    def wblk(name, nrows, ncols):
        return w_ref[pl.ds(W_OFF[name], nrows), pl.ds(0, ncols)]    # bf16 block

    # ---- fused embedding lookup: word + position + token-type ----
    for t in range(B * S):
        wid = ids_ref[t]
        tid = tids_ref[t]
        row = (tab_ref[pl.ds(wid, 1), :]
               + tab_ref[pl.ds(VOCAB + (t % S), 1), :]
               + tab_ref[pl.ds(VOCAB + MAX_POS + tid, 1), :])
        h_s[pl.ds(t, 1), :] = row

    # embedding LayerNorm (embedding dropout: identity / eval mode)
    h_s[...] = _layernorm(h_s[...], vrow("emb_ln_g", H), vrow("emb_ln_b", H))

    # ---- per-(batch, head) additive attention bias, built once in-kernel ----
    for b in range(B):
        mrow = dyn_ref[pl.ds(B + b, 1), pl.ds(0, S)]                 # (1, S) in {0,1}
        bias = (1.0 - mrow) * -10000.0
        blk = jnp.broadcast_to(bias, (S, S))
        for h in range(nH):
            mask3_s[b * nH + h] = blk

    # ---- transformer encoder layers (static unroll, L = 2) ----
    for l in range(NUM_LAYERS):
        x = h_s[...]                                                 # (B*S, H) f32
        xb = x.astype(bf16)

        # head-major Q/K/V projections: every slice starts at lane offset 0
        for j, dst in enumerate((q_s, k_s, v_s)):
            for h in range(nH):
                w = wblk(f"qkv{l}_{j}_{h}", H, dh)                   # (H, dh) bf16
                bqkv = vrow(f"qkv_b{l}_{j}_{h}", dh)                 # (1, dh) f32
                proj = jnp.dot(xb, w, preferred_element_type=f32) + bqkv   # (B*S, dh)
                for b in range(B):
                    dst[b * nH + h] = proj[b * S:(b + 1) * S, :]     # (S, dh)

        # batched scaled-dot-product attention over B*nH heads
        q = q_s[...].astype(bf16)
        k = k_s[...].astype(bf16)
        s = jnp.einsum("bqd,bkd->bqk", q, k,
                       preferred_element_type=f32) * scale           # (B*nH, S, S)
        s = s + mask3_s[...]
        m = jnp.max(s, axis=-1, keepdims=True)
        p = jnp.exp(s - m)
        p = p * pl.reciprocal(jnp.sum(p, axis=-1, keepdims=True), approx=True)
        ctx = jnp.einsum("bqk,bkd->bqd", p.astype(bf16), v_s[...].astype(bf16),
                         preferred_element_type=f32)                 # (B*nH, S, dh)

        # attention output projection: sum over heads of ctx_h @ Wo_rows[h]
        for b in range(B):
            acc = jnp.zeros((S, H), f32)
            for h in range(nH):
                acc = acc + jnp.dot(ctx[b * nH + h].astype(bf16),
                                    wblk(f"ao{l}_{h}", dh, H),
                                    preferred_element_type=f32)      # (S, H)
            attn_s[pl.ds(b * S, S), :] = acc
        attn_out = attn_s[...] + vrow(f"ao_b{l}", H)

        h1 = _layernorm(attn_out + x,
                        vrow(f"ln1_g{l}", H), vrow(f"ln1_b{l}", H))

        # FFN: dense -> GELU -> dense, residual + LN2
        inter = _gelu(jnp.dot(h1.astype(bf16), wblk(f"inter{l}", H, I),
                              preferred_element_type=f32) + vrow(f"inter_b{l}", I))
        ffn = jnp.dot(inter.astype(bf16), wblk(f"out{l}", I, H),
                      preferred_element_type=f32) + vrow(f"out_b{l}", H)
        h_s[...] = _layernorm(ffn + h1,
                              vrow(f"ln2_g{l}", H), vrow(f"ln2_b{l}", H))

    # ---- pooler: tanh(dense(CLS token)), CLS rows via one strided read ----
    cls_rows = h_s[pl.ds(0, B, stride=S), :]                          # (B, H)
    pooled = jnp.tanh(jnp.dot(cls_rows.astype(bf16), wblk("pool", H, H),
                              preferred_element_type=f32) + vrow("pool_b", H))

    # ---- classifier dropout: identity (eval mode) ----
    # ---- classifier head + BCEWithLogitsLoss (mean reduction) ----
    z = (jnp.sum(pooled * vrow("cls_w", H), axis=-1, keepdims=True)
         + vrow("cls_b", 1))                                          # (B, 1)
    y = dyn_ref[pl.ds(0, B), pl.ds(0, 1)]                             # (B, 1) labels
    per = jnp.maximum(z, 0.0) - z * y + jnp.log(1.0 + jnp.exp(-jnp.abs(z)))

    out_ref[...] = jnp.zeros(out_ref.shape, out_ref.dtype)
    out_ref[pl.ds(0, B), pl.ds(0, 1)] = z
    out_ref[pl.ds(B, 1), pl.ds(0, 1)] = jnp.mean(per, keepdims=True)


# ------------------------------ parameter init --------------------------------
def init_params(key):
    def nrm(k, shape, std=0.02):
        return std * jax.random.normal(k, shape, dtype=jnp.float32)

    keys = iter(jax.random.split(key, 32))
    H, I, L = HIDDEN, INTERMEDIATE, NUM_LAYERS
    return {
        "word_emb": nrm(next(keys), (VOCAB, H)),
        "pos_emb": nrm(next(keys), (MAX_POS, H)),
        "type_emb": nrm(next(keys), (TYPE_VOCAB, H)),
        "emb_ln_g": jnp.ones((1, H), jnp.float32),
        "emb_ln_b": jnp.zeros((1, H), jnp.float32),
        "pool_w": nrm(next(keys), (H, H)),
        "pool_b": jnp.zeros((1, H), jnp.float32),
        "cls_w": nrm(next(keys), (H, 1)),
        "cls_b": jnp.zeros((1, 1), jnp.float32),
        "qkv_w": jnp.stack([nrm(next(keys), (H, 3 * H)) for _ in range(L)]),
        "qkv_b": jnp.zeros((L, 3 * H), jnp.float32),
        "ao_w": jnp.stack([nrm(next(keys), (H, H)) for _ in range(L)]),
        "ao_b": jnp.zeros((L, H), jnp.float32),
        "ln1_g": jnp.ones((L, H), jnp.float32),
        "ln1_b": jnp.zeros((L, H), jnp.float32),
        "inter_w": jnp.stack([nrm(next(keys), (H, I)) for _ in range(L)]),
        "inter_b": jnp.zeros((L, I), jnp.float32),
        "out_w": jnp.stack([nrm(next(keys), (I, H)) for _ in range(L)]),
        "out_b": jnp.zeros((L, H), jnp.float32),
        "ln2_g": jnp.ones((L, H), jnp.float32),
        "ln2_b": jnp.zeros((L, H), jnp.float32),
    }


# --------------------- one-time packing into VMEM-friendly slabs --------------
def pack_params(params):
    H, I, L, nH, dh = HIDDEN, INTERMEDIATE, NUM_LAYERS, NUM_HEADS, HEAD_DIM

    w = jnp.zeros((W_ROWS, 128), jnp.float32)

    def putw(slab, name, mat):
        r, c = mat.shape
        return slab.at[W_OFF[name]:W_OFF[name] + r, :c].set(mat)

    for l in range(L):
        for j in range(3):
            for h in range(nH):
                blk = params["qkv_w"][l][:, j * H + h * dh: j * H + (h + 1) * dh]
                w = putw(w, f"qkv{l}_{j}_{h}", blk)
        for h in range(nH):
            w = putw(w, f"ao{l}_{h}", params["ao_w"][l][h * dh:(h + 1) * dh, :])
        w = putw(w, f"inter{l}", params["inter_w"][l])
        w = putw(w, f"out{l}", params["out_w"][l])
    w = putw(w, "pool", params["pool_w"])
    wslab = w.astype(jnp.bfloat16)

    v = jnp.zeros((V_ROWS, 128), jnp.float32)

    def putv(slab, name, vec):
        vec = vec.reshape(-1)
        return slab.at[V_OFF[name], :vec.shape[0]].set(vec)

    v = putv(v, "emb_ln_g", params["emb_ln_g"])
    v = putv(v, "emb_ln_b", params["emb_ln_b"])
    for l in range(L):
        for j in range(3):
            for h in range(nH):
                b = params["qkv_b"][l][j * H + h * dh: j * H + (h + 1) * dh]
                v = putv(v, f"qkv_b{l}_{j}_{h}", b)
        v = putv(v, f"ao_b{l}", params["ao_b"][l])
        v = putv(v, f"ln1_g{l}", params["ln1_g"][l])
        v = putv(v, f"ln1_b{l}", params["ln1_b"][l])
        v = putv(v, f"inter_b{l}", params["inter_b"][l])
        v = putv(v, f"out_b{l}", params["out_b"][l])
        v = putv(v, f"ln2_g{l}", params["ln2_g"][l])
        v = putv(v, f"ln2_b{l}", params["ln2_b"][l])
    v = putv(v, "pool_b", params["pool_b"])
    v = putv(v, "cls_w", params["cls_w"])
    v = putv(v, "cls_b", params["cls_b"])

    tables = jnp.concatenate(
        [params["word_emb"], params["pos_emb"], params["type_emb"]], axis=0)

    return {"tables": tables, "wslab": wslab, "vslab": v}


# ------------------------------ forward pass ----------------------------------
def rte_forward(packed, input_ids, attention_mask, token_type_ids, labels):
    B, S = input_ids.shape

    ids_flat = input_ids.reshape(-1).astype(jnp.int32)
    tids_flat = token_type_ids.reshape(-1).astype(jnp.int32)

    dyn = jnp.zeros((8, 128), jnp.float32)
    dyn = dyn.at[:B, 0].set(labels.astype(jnp.float32))
    dyn = dyn.at[B:2 * B, :S].set(attention_mask.astype(jnp.float32))

    grid_spec = pltpu.PrefetchScalarGridSpec(
        num_scalar_prefetch=2,
        grid=(1,),
        in_specs=[_VMEM_SPEC] * 4,
        out_specs=_VMEM_SPEC,
        scratch_shapes=[
            pltpu.VMEM((BATCH * SEQ, HIDDEN), jnp.float32),             # hidden state
            pltpu.VMEM((BATCH * NUM_HEADS, SEQ, HEAD_DIM), jnp.float32),  # Q (head-major)
            pltpu.VMEM((BATCH * NUM_HEADS, SEQ, HEAD_DIM), jnp.float32),  # K
            pltpu.VMEM((BATCH * NUM_HEADS, SEQ, HEAD_DIM), jnp.float32),  # V
            pltpu.VMEM((BATCH * NUM_HEADS, SEQ, SEQ), jnp.float32),       # additive mask
            pltpu.VMEM((BATCH * SEQ, HIDDEN), jnp.float32),               # attention out
        ],
    )

    out = pl.pallas_call(
        _rte_fused_kernel,
        out_shape=jax.ShapeDtypeStruct((8, 128), jnp.float32),
        grid_spec=grid_spec,
    )(ids_flat, tids_flat, packed["tables"], packed["wslab"], packed["vslab"], dyn)

    logits = out[:B, 0]
    loss = out[B, 0]
    return logits, loss


# ---------------------------------- main ---------------------------------------
if __name__ == "__main__":
    key = jax.random.PRNGKey(0)
    kp, ki, kl = jax.random.split(key, 3)

    params = init_params(kp)
    packed = pack_params(params)        # one-time slab packing (outside the hot path)

    input_ids = jax.random.randint(ki, (BATCH, SEQ), 0, VOCAB, dtype=jnp.int32)
    attention_mask = jnp.ones((BATCH, SEQ), dtype=jnp.int32)
    token_type_ids = jnp.concatenate(
        [jnp.zeros((BATCH, SEQ // 2), jnp.int32),
         jnp.ones((BATCH, SEQ // 2), jnp.int32)], axis=1)
    labels = jax.random.bernoulli(kl, 0.5, (BATCH,)).astype(jnp.float32)

    # TODO(synk): dropout layers (embedding/hidden/classifier) are identity, i.e.
    # eval-mode only; pretrained bert-base weights are replaced by random init.
    fwd = jax.jit(rte_forward)
    logits, loss = fwd(packed, input_ids, attention_mask, token_type_ids, labels)
    jax.block_until_ready((logits, loss))

    assert logits.shape == (BATCH,)
    assert loss.shape == ()
    assert bool(jnp.isfinite(loss)) and bool(jnp.all(jnp.isfinite(logits)))
    print("KERNEL_OK")
</pallas_src>

<mosaic_0001>
module attributes {stable_mosaic.version = 11 : i64} {
  func.func @_rte_fused_kernel(%arg0: i32, %arg1: memref<16xi32, #tpu.memory_space<smem>>, %arg2: memref<16xi32, #tpu.memory_space<smem>>, %arg3: memref<118x32xf32, #tpu.memory_space<vmem>>, %arg4: memref<672x128xbf16, #tpu.memory_space<vmem>>, %arg5: memref<32x128xf32, #tpu.memory_space<vmem>>, %arg6: memref<8x128xf32, #tpu.memory_space<vmem>>, %arg7: memref<8x128xf32, #tpu.memory_space<vmem>>, %arg8: memref<16x32xf32, #tpu.memory_space<vmem>>, %arg9: memref<4x8x16xf32, #tpu.memory_space<vmem>>, %arg10: memref<4x8x16xf32, #tpu.memory_space<vmem>>, %arg11: memref<4x8x16xf32, #tpu.memory_space<vmem>>, %arg12: memref<4x8x8xf32, #tpu.memory_space<vmem>>, %arg13: memref<16x32xf32, #tpu.memory_space<vmem>>) attributes {dimension_semantics = [#tpu.dimension_semantics<arbitrary>], iteration_bounds = array<i64: 1>, scalar_prefetch = 2 : i64, scratch_operands = 6 : i64, tpu.core_type = #tpu.core_type<tc>, window_params = [{pipeline_mode = #tpu.pipeline_mode<synchronous>, transform_indices = @transform_0, window_bounds = array<i64: 118, 32>}, {pipeline_mode = #tpu.pipeline_mode<synchronous>, transform_indices = @transform_1, window_bounds = array<i64: 672, 128>}, {pipeline_mode = #tpu.pipeline_mode<synchronous>, transform_indices = @transform_2, window_bounds = array<i64: 32, 128>}, {pipeline_mode = #tpu.pipeline_mode<synchronous>, transform_indices = @transform_3, window_bounds = array<i64: 8, 128>}, {pipeline_mode = #tpu.pipeline_mode<synchronous>, transform_indices = @transform_4, window_bounds = array<i64: 8, 128>}]} {
    %c0 = arith.constant 0 : index
    %0 = memref.load %arg1[%c0] : memref<16xi32, #tpu.memory_space<smem>>
    %c0_0 = arith.constant 0 : index
    %1 = memref.load %arg2[%c0_0] : memref<16xi32, #tpu.memory_space<smem>>
    %2 = arith.index_cast %0 : i32 to index
    %c0_1 = arith.constant 0 : index
    %3 = vector.load %arg3[%2, %c0_1] : memref<118x32xf32, #tpu.memory_space<vmem>>, vector<1x32xf32>
    %c100 = arith.constant 100 : index
    %c0_2 = arith.constant 0 : index
    %4 = vector.load %arg3[%c100, %c0_2] : memref<118x32xf32, #tpu.memory_space<vmem>>, vector<1x32xf32>
    %5 = arith.addf %3, %4 : vector<1x32xf32>
    %c116_i32 = arith.constant 116 : i32
    %6 = arith.addi %c116_i32, %1 : i32
    %7 = arith.index_cast %6 : i32 to index
    %c0_3 = arith.constant 0 : index
    %8 = vector.load %arg3[%7, %c0_3] : memref<118x32xf32, #tpu.memory_space<vmem>>, vector<1x32xf32>
    %9 = arith.addf %5, %8 : vector<1x32xf32>
    %c0_4 = arith.constant 0 : index
    %c0_5 = arith.constant 0 : index
    %10 = vector.load %arg8[%c0_4, %c0_5] : memref<16x32xf32, #tpu.memory_space<vmem>>, vector<1x32xf32>
    tpu.vector_store %arg8[%c0_4, %c0_5], %9 {strides = array<i32>} : memref<16x32xf32, #tpu.memory_space<vmem>>, vector<1x32xf32>,
    %c1 = arith.constant 1 : index
    %11 = memref.load %arg1[%c1] : memref<16xi32, #tpu.memory_space<smem>>
    %c1_6 = arith.constant 1 : index
    %12 = memref.load %arg2[%c1_6] : memref<16xi32, #tpu.memory_space<smem>>
    %13 = arith.index_cast %11 : i32 to index
    %c0_7 = arith.constant 0 : index
    %14 = vector.load %arg3[%13, %c0_7] : memref<118x32xf32, #tpu.memory_space<vmem>>, vector<1x32xf32>
    %c101 = arith.constant 101 : index
    %c0_8 = arith.constant 0 : index
    %15 = vector.load %arg3[%c101, %c0_8] : memref<118x32xf32, #tpu.memory_space<vmem>>, vector<1x32xf32>
    %16 = arith.addf %14, %15 : vector<1x32xf32>
    %c116_i32_9 = arith.constant 116 : i32
    %17 = arith.addi %c116_i32_9, %12 : i32
    %18 = arith.index_cast %17 : i32 to index
    %c0_10 = arith.constant 0 : index
    %19 = vector.load %arg3[%18, %c0_10] : memref<118x32xf32, #tpu.memory_space<vmem>>, vector<1x32xf32>
    %20 = arith.addf %16, %19 : vector<1x32xf32>
    %c1_11 = arith.constant 1 : index
    %c0_12 = arith.constant 0 : index
    %21 = vector.load %arg8[%c1_11, %c0_12] : memref<16x32xf32, #tpu.memory_space<vmem>>, vector<1x32xf32>
    tpu.vector_store %arg8[%c1_11, %c0_12], %20 {strides = array<i32>} : memref<16x32xf32, #tpu.memory_space<vmem>>, vector<1x32xf32>,
    %c2 = arith.constant 2 : index
    %22 = memref.load %arg1[%c2] : memref<16xi32, #tpu.memory_space<smem>>
    %c2_13 = arith.constant 2 : index
    %23 = memref.load %arg2[%c2_13] : memref<16xi32, #tpu.memory_space<smem>>
    %24 = arith.index_cast %22 : i32 to index
    %c0_14 = arith.constant 0 : index
    %25 = vector.load %arg3[%24, %c0_14] : memref<118x32xf32, #tpu.memory_space<vmem>>, vector<1x32xf32>
    %c102 = arith.constant 102 : index
    %c0_15 = arith.constant 0 : index
    %26 = vector.load %arg3[%c102, %c0_15] : memref<118x32xf32, #tpu.memory_space<vmem>>, vector<1x32xf32>
    %27 = arith.addf %25, %26 : vector<1x32xf32>
    %c116_i32_16 = arith.constant 116 : i32
    %28 = arith.addi %c116_i32_16, %23 : i32
    %29 = arith.index_cast %28 : i32 to index
    %c0_17 = arith.constant 0 : index
    %30 = vector.load %arg3[%29, %c0_17] : memref<118x32xf32, #tpu.memory_space<vmem>>, vector<1x32xf32>
    %31 = arith.addf %27, %30 : vector<1x32xf32>
    %c2_18 = arith.constant 2 : index
    %c0_19 = arith.constant 0 : index
    %32 = vector.load %arg8[%c2_18, %c0_19] : memref<16x32xf32, #tpu.memory_space<vmem>>, vector<1x32xf32>
    tpu.vector_store %arg8[%c2_18, %c0_19], %31 {strides = array<i32>} : memref<16x32xf32, #tpu.memory_space<vmem>>, vector<1x32xf32>,
    %c3 = arith.constant 3 : index
    %33 = memref.load %arg1[%c3] : memref<16xi32, #tpu.memory_space<smem>>
    %c3_20 = arith.constant 3 : index
    %34 = memref.load %arg2[%c3_20] : memref<16xi32, #tpu.memory_space<smem>>
    %35 = arith.index_cast %33 : i32 to index
    %c0_21 = arith.constant 0 : index
    %36 = vector.load %arg3[%35, %c0_21] : memref<118x32xf32, #tpu.memory_space<vmem>>, vector<1x32xf32>
    %c103 = arith.constant 103 : index
    %c0_22 = arith.constant 0 : index
    %37 = vector.load %arg3[%c103, %c0_22] : memref<118x32xf32, #tpu.memory_space<vmem>>, vector<1x32xf32>
    %38 = arith.addf %36, %37 : vector<1x32xf32>
    %c116_i32_23 = arith.constant 116 : i32
    %39 = arith.addi %c116_i32_23, %34 : i32
    %40 = arith.index_cast %39 : i32 to index
    %c0_24 = arith.constant 0 : index
    %41 = vector.load %arg3[%40, %c0_24] : memref<118x32xf32, #tpu.memory_space<vmem>>, vector<1x32xf32>
    %42 = arith.addf %38, %41 : vector<1x32xf32>
    %c3_25 = arith.constant 3 : index
    %c0_26 = arith.constant 0 : index
    %43 = vector.load %arg8[%c3_25, %c0_26] : memref<16x32xf32, #tpu.memory_space<vmem>>, vector<1x32xf32>
    tpu.vector_store %arg8[%c3_25, %c0_26], %42 {strides = array<i32>} : memref<16x32xf32, #tpu.memory_space<vmem>>, vector<1x32xf32>,
    %c4 = arith.constant 4 : index
    %44 = memref.load %arg1[%c4] : memref<16xi32, #tpu.memory_space<smem>>
    %c4_27 = arith.constant 4 : index
    %45 = memref.load %arg2[%c4_27] : memref<16xi32, #tpu.memory_space<smem>>
    %46 = arith.index_cast %44 : i32 to index
    %c0_28 = arith.constant 0 : index
    %47 = vector.load %arg3[%46, %c0_28] : memref<118x32xf32, #tpu.memory_space<vmem>>, vector<1x32xf32>
    %c104 = arith.constant 104 : index
    %c0_29 = arith.constant 0 : index
    %48 = vector.load %arg3[%c104, %c0_29] : memref<118x32xf32, #tpu.memory_space<vmem>>, vector<1x32xf32>
    %49 = arith.addf %47, %48 : vector<1x32xf32>
    %c116_i32_30 = arith.constant 116 : i32
    %50 = arith.addi %c116_i32_30, %45 : i32
    %51 = arith.index_cast %50 : i32 to index
    %c0_31 = arith.constant 0 : index
    %52 = vector.load %arg3[%51, %c0_31] : memref<118x32xf32, #tpu.memory_space<vmem>>, vector<1x32xf32>
    %53 = arith.addf %49, %52 : vector<1x32xf32>
    %c4_32 = arith.constant 4 : index
    %c0_33 = arith.constant 0 : index
    %54 = vector.load %arg8[%c4_32, %c0_33] : memref<16x32xf32, #tpu.memory_space<vmem>>, vector<1x32xf32>
    tpu.vector_store %arg8[%c4_32, %c0_33], %53 {strides = array<i32>} : memref<16x32xf32, #tpu.memory_space<vmem>>, vector<1x32xf32>,
    %c5 = arith.constant 5 : index
    %55 = memref.load %arg1[%c5] : memref<16xi32, #tpu.memory_space<smem>>
    %c5_34 = arith.constant 5 : index
    %56 = memref.load %arg2[%c5_34] : memref<16xi32, #tpu.memory_space<smem>>
    %57 = arith.index_cast %55 : i32 to index
    %c0_35 = arith.constant 0 : index
    %58 = vector.load %arg3[%57, %c0_35] : memref<118x32xf32, #tpu.memory_space<vmem>>, vector<1x32xf32>
    %c105 = arith.constant 105 : index
    %c0_36 = arith.constant 0 : index
    %59 = vector.load %arg3[%c105, %c0_36] : memref<118x32xf32, #tpu.memory_space<vmem>>, vector<1x32xf32>
    %60 = arith.addf %58, %59 : vector<1x32xf32>
    %c116_i32_37 = arith.constant 116 : i32
    %61 = arith.addi %c116_i32_37, %56 : i32
    %62 = arith.index_cast %61 : i32 to index
    %c0_38 = arith.constant 0 : index
    %63 = vector.load %arg3[%62, %c0_38] : memref<118x32xf32, #tpu.memory_space<vmem>>, vector<1x32xf32>
    %64 = arith.addf %60, %63 : vector<1x32xf32>
    %c5_39 = arith.constant 5 : index
    %c0_40 = arith.constant 0 : index
    %65 = vector.load %arg8[%c5_39, %c0_40] : memref<16x32xf32, #tpu.memory_space<vmem>>, vector<1x32xf32>
    tpu.vector_store %arg8[%c5_39, %c0_40], %64 {strides = array<i32>} : memref<16x32xf32, #tpu.memory_space<vmem>>, vector<1x32xf32>,
    %c6 = arith.constant 6 : index
    %66 = memref.load %arg1[%c6] : memref<16xi32, #tpu.memory_space<smem>>
    %c6_41 = arith.constant 6 : index
    %67 = memref.load %arg2[%c6_41] : memref<16xi32, #tpu.memory_space<smem>>
    %68 = arith.index_cast %66 : i32 to index
    %c0_42 = arith.constant 0 : index
    %69 = vector.load %arg3[%68, %c0_42] : memref<118x32xf32, #tpu.memory_space<vmem>>, vector<1x32xf32>
    %c106 = arith.constant 106 : index
    %c0_43 = arith.constant 0 : index
    %70 = vector.load %arg3[%c106, %c0_43] : memref<118x32xf32, #tpu.memory_space<vmem>>, vector<1x32xf32>
    %71 = arith.addf %69, %70 : vector<1x32xf32>
    %c116_i32_44 = arith.constant 116 : i32
    %72 = arith.addi %c116_i32_44, %67 : i32
    %73 = arith.index_cast %72 : i32 to index
    %c0_45 = arith.constant 0 : index
    %74 = vector.load %arg3[%73, %c0_45] : memref<118x32xf32, #tpu.memory_space<vmem>>, vector<1x32xf32>
    %75 = arith.addf %71, %74 : vector<1x32xf32>
    %c6_46 = arith.constant 6 : index
    %c0_47 = arith.constant 0 : index
    %76 = vector.load %arg8[%c6_46, %c0_47] : memref<16x32xf32, #tpu.memory_space<vmem>>, vector<1x32xf32>
    tpu.vector_store %arg8[%c6_46, %c0_47], %75 {strides = array<i32>} : memref<16x32xf32, #tpu.memory_space<vmem>>, vector<1x32xf32>,
    %c7 = arith.constant 7 : index
    %77 = memref.load %arg1[%c7] : memref<16xi32, #tpu.memory_space<smem>>
    %c7_48 = arith.constant 7 : index
    %78 = memref.load %arg2[%c7_48] : memref<16xi32, #tpu.memory_space<smem>>
    %79 = arith.index_cast %77 : i32 to index
    %c0_49 = arith.constant 0 : index
    %80 = vector.load %arg3[%79, %c0_49] : memref<118x32xf32, #tpu.memory_space<vmem>>, vector<1x32xf32>
    %c107 = arith.constant 107 : index
    %c0_50 = arith.constant 0 : index
    %81 = vector.load %arg3[%c107, %c0_50] : memref<118x32xf32, #tpu.memory_space<vmem>>, vector<1x32xf32>
    %82 = arith.addf %80, %81 : vector<1x32xf32>
    %c116_i32_51 = arith.constant 116 : i32
    %83 = arith.addi %c116_i32_51, %78 : i32
    %84 = arith.index_cast %83 : i32 to index
    %c0_52 = arith.constant 0 : index
    %85 = vector.load %arg3[%84, %c0_52] : memref<118x32xf32, #tpu.memory_space<vmem>>, vector<1x32xf32>
    %86 = arith.addf %82, %85 : vector<1x32xf32>
    %c7_53 = arith.constant 7 : index
    %c0_54 = arith.constant 0 : index
    %87 = vector.load %arg8[%c7_53, %c0_54] : memref<16x32xf32, #tpu.memory_space<vmem>>, vector<1x32xf32>
    tpu.vector_store %arg8[%c7_53, %c0_54], %86 {strides = array<i32>} : memref<16x32xf32, #tpu.memory_space<vmem>>, vector<1x32xf32>,
    %c8 = arith.constant 8 : index
    %88 = memref.load %arg1[%c8] : memref<16xi32, #tpu.memory_space<smem>>
    %c8_55 = arith.constant 8 : index
    %89 = memref.load %arg2[%c8_55] : memref<16xi32, #tpu.memory_space<smem>>
    %90 = arith.index_cast %88 : i32 to index
    %c0_56 = arith.constant 0 : index
    %91 = vector.load %arg3[%90, %c0_56] : memref<118x32xf32, #tpu.memory_space<vmem>>, vector<1x32xf32>
    %c100_57 = arith.constant 100 : index
    %c0_58 = arith.constant 0 : index
    %92 = vector.load %arg3[%c100_57, %c0_58] : memref<118x32xf32, #tpu.memory_space<vmem>>, vector<1x32xf32>
    %93 = arith.addf %91, %92 : vector<1x32xf32>
    %c116_i32_59 = arith.constant 116 : i32
    %94 = arith.addi %c116_i32_59, %89 : i32
    %95 = arith.index_cast %94 : i32 to index
    %c0_60 = arith.constant 0 : index
    %96 = vector.load %arg3[%95, %c0_60] : memref<118x32xf32, #tpu.memory_space<vmem>>, vector<1x32xf32>
    %97 = arith.addf %93, %96 : vector<1x32xf32>
    %c8_61 = arith.constant 8 : index
    %c0_62 = arith.constant 0 : index
    %98 = vector.load %arg8[%c8_61, %c0_62] : memref<16x32xf32, #tpu.memory_space<vmem>>, vector<1x32xf32>
    tpu.vector_store %arg8[%c8_61, %c0_62], %97 {strides = array<i32>} : memref<16x32xf32, #tpu.memory_space<vmem>>, vector<1x32xf32>,
    %c9 = arith.constant 9 : index
    %99 = memref.load %arg1[%c9] : memref<16xi32, #tpu.memory_space<smem>>
    %c9_63 = arith.constant 9 : index
    %100 = memref.load %arg2[%c9_63] : memref<16xi32, #tpu.memory_space<smem>>
    %101 = arith.index_cast %99 : i32 to index
    %c0_64 = arith.constant 0 : index
    %102 = vector.load %arg3[%101, %c0_64] : memref<118x32xf32, #tpu.memory_space<vmem>>, vector<1x32xf32>
    %c101_65 = arith.constant 101 : index
    %c0_66 = arith.constant 0 : index
    %103 = vector.load %arg3[%c101_65, %c0_66] : memref<118x32xf32, #tpu.memory_space<vmem>>, vector<1x32xf32>
    %104 = arith.addf %102, %103 : vector<1x32xf32>
    %c116_i32_67 = arith.constant 116 : i32
    %105 = arith.addi %c116_i32_67, %100 : i32
    %106 = arith.index_cast %105 : i32 to index
    %c0_68 = arith.constant 0 : index
    %107 = vector.load %arg3[%106, %c0_68] : memref<118x32xf32, #tpu.memory_space<vmem>>, vector<1x32xf32>
    %108 = arith.addf %104, %107 : vector<1x32xf32>
    %c9_69 = arith.constant 9 : index
    %c0_70 = arith.constant 0 : index
    %109 = vector.load %arg8[%c9_69, %c0_70] : memref<16x32xf32, #tpu.memory_space<vmem>>, vector<1x32xf32>
    tpu.vector_store %arg8[%c9_69, %c0_70], %108 {strides = array<i32>} : memref<16x32xf32, #tpu.memory_space<vmem>>, vector<1x32xf32>,
    %c10 = arith.constant 10 : index
    %110 = memref.load %arg1[%c10] : memref<16xi32, #tpu.memory_space<smem>>
    %c10_71 = arith.constant 10 : index
    %111 = memref.load %arg2[%c10_71] : memref<16xi32, #tpu.memory_space<smem>>
    %112 = arith.index_cast %110 : i32 to index
    %c0_72 = arith.constant 0 : index
    %113 = vector.load %arg3[%112, %c0_72] : memref<118x32xf32, #tpu.memory_space<vmem>>, vector<1x32xf32>
    %c102_73 = arith.constant 102 : index
    %c0_74 = arith.constant 0 : index
    %114 = vector.load %arg3[%c102_73, %c0_74] : memref<118x32xf32, #tpu.memory_space<vmem>>, vector<1x32xf32>
    %115 = arith.addf %113, %114 : vector<1x32xf32>
    %c116_i32_75 = arith.constant 116 : i32
    %116 = arith.addi %c116_i32_75, %111 : i32
    %117 = arith.index_cast %116 : i32 to index
    %c0_76 = arith.constant 0 : index
    %118 = vector.load %arg3[%117, %c0_76] : memref<118x32xf32, #tpu.memory_space<vmem>>, vector<1x32xf32>
    %119 = arith.addf %115, %118 : vector<1x32xf32>
    %c10_77 = arith.constant 10 : index
    %c0_78 = arith.constant 0 : index
    %120 = vector.load %arg8[%c10_77, %c0_78] : memref<16x32xf32, #tpu.memory_space<vmem>>, vector<1x32xf32>
    tpu.vector_store %arg8[%c10_77, %c0_78], %119 {strides = array<i32>} : memref<16x32xf32, #tpu.memory_space<vmem>>, vector<1x32xf32>,
    %c11 = arith.constant 11 : index
    %121 = memref.load %arg1[%c11] : memref<16xi32, #tpu.memory_space<smem>>
    %c11_79 = arith.constant 11 : index
    %122 = memref.load %arg2[%c11_79] : memref<16xi32, #tpu.memory_space<smem>>
    %123 = arith.index_cast %121 : i32 to index
    %c0_80 = arith.constant 0 : index
    %124 = vector.load %arg3[%123, %c0_80] : memref<118x32xf32, #tpu.memory_space<vmem>>, vector<1x32xf32>
    %c103_81 = arith.constant 103 : index
    %c0_82 = arith.constant 0 : index
    %125 = vector.load %arg3[%c103_81, %c0_82] : memref<118x32xf32, #tpu.memory_space<vmem>>, vector<1x32xf32>
    %126 = arith.addf %124, %125 : vector<1x32xf32>
    %c116_i32_83 = arith.constant 116 : i32
    %127 = arith.addi %c116_i32_83, %122 : i32
    %128 = arith.index_cast %127 : i32 to index
    %c0_84 = arith.constant 0 : index
    %129 = vector.load %arg3[%128, %c0_84] : memref<118x32xf32, #tpu.memory_space<vmem>>, vector<1x32xf32>
    %130 = arith.addf %126, %129 : vector<1x32xf32>
    %c11_85 = arith.constant 11 : index
    %c0_86 = arith.constant 0 : index
    %131 = vector.load %arg8[%c11_85, %c0_86] : memref<16x32xf32, #tpu.memory_space<vmem>>, vector<1x32xf32>
    tpu.vector_store %arg8[%c11_85, %c0_86], %130 {strides = array<i32>} : memref<16x32xf32, #tpu.memory_space<vmem>>, vector<1x32xf32>,
    %c12 = arith.constant 12 : index
    %132 = memref.load %arg1[%c12] : memref<16xi32, #tpu.memory_space<smem>>
    %c12_87 = arith.constant 12 : index
    %133 = memref.load %arg2[%c12_87] : memref<16xi32, #tpu.memory_space<smem>>
    %134 = arith.index_cast %132 : i32 to index
    %c0_88 = arith.constant 0 : index
    %135 = vector.load %arg3[%134, %c0_88] : memref<118x32xf32, #tpu.memory_space<vmem>>, vector<1x32xf32>
    %c104_89 = arith.constant 104 : index
    %c0_90 = arith.constant 0 : index
    %136 = vector.load %arg3[%c104_89, %c0_90] : memref<118x32xf32, #tpu.memory_space<vmem>>, vector<1x32xf32>
    %137 = arith.addf %135, %136 : vector<1x32xf32>
    %c116_i32_91 = arith.constant 116 : i32
    %138 = arith.addi %c116_i32_91, %133 : i32
    %139 = arith.index_cast %138 : i32 to index
    %c0_92 = arith.constant 0 : index
    %140 = vector.load %arg3[%139, %c0_92] : memref<118x32xf32, #tpu.memory_space<vmem>>, vector<1x32xf32>
    %141 = arith.addf %137, %140 : vector<1x32xf32>
    %c12_93 = arith.constant 12 : index
    %c0_94 = arith.constant 0 : index
    %142 = vector.load %arg8[%c12_93, %c0_94] : memref<16x32xf32, #tpu.memory_space<vmem>>, vector<1x32xf32>
    tpu.vector_store %arg8[%c12_93, %c0_94], %141 {strides = array<i32>} : memref<16x32xf32, #tpu.memory_space<vmem>>, vector<1x32xf32>,
    %c13 = arith.constant 13 : index
    %143 = memref.load %arg1[%c13] : memref<16xi32, #tpu.memory_space<smem>>
    %c13_95 = arith.constant 13 : index
    %144 = memref.load %arg2[%c13_95] : memref<16xi32, #tpu.memory_space<smem>>
    %145 = arith.index_cast %143 : i32 to index
    %c0_96 = arith.constant 0 : index
    %146 = vector.load %arg3[%145, %c0_96] : memref<118x32xf32, #tpu.memory_space<vmem>>, vector<1x32xf32>
    %c105_97 = arith.constant 105 : index
    %c0_98 = arith.constant 0 : index
    %147 = vector.load %arg3[%c105_97, %c0_98] : memref<118x32xf32, #tpu.memory_space<vmem>>, vector<1x32xf32>
    %148 = arith.addf %146, %147 : vector<1x32xf32>
    %c116_i32_99 = arith.constant 116 : i32
    %149 = arith.addi %c116_i32_99, %144 : i32
    %150 = arith.index_cast %149 : i32 to index
    %c0_100 = arith.constant 0 : index
    %151 = vector.load %arg3[%150, %c0_100] : memref<118x32xf32, #tpu.memory_space<vmem>>, vector<1x32xf32>
    %152 = arith.addf %148, %151 : vector<1x32xf32>
    %c13_101 = arith.constant 13 : index
    %c0_102 = arith.constant 0 : index
    %153 = vector.load %arg8[%c13_101, %c0_102] : memref<16x32xf32, #tpu.memory_space<vmem>>, vector<1x32xf32>
    tpu.vector_store %arg8[%c13_101, %c0_102], %152 {strides = array<i32>} : memref<16x32xf32, #tpu.memory_space<vmem>>, vector<1x32xf32>,
    %c14 = arith.constant 14 : index
    %154 = memref.load %arg1[%c14] : memref<16xi32, #tpu.memory_space<smem>>
    %c14_103 = arith.constant 14 : index
    %155 = memref.load %arg2[%c14_103] : memref<16xi32, #tpu.memory_space<smem>>
    %156 = arith.index_cast %154 : i32 to index
    %c0_104 = arith.constant 0 : index
    %157 = vector.load %arg3[%156, %c0_104] : memref<118x32xf32, #tpu.memory_space<vmem>>, vector<1x32xf32>
    %c106_105 = arith.constant 106 : index
    %c0_106 = arith.constant 0 : index
    %158 = vector.load %arg3[%c106_105, %c0_106] : memref<118x32xf32, #tpu.memory_space<vmem>>, vector<1x32xf32>
    %159 = arith.addf %157, %158 : vector<1x32xf32>
    %c116_i32_107 = arith.constant 116 : i32
    %160 = arith.addi %c116_i32_107, %155 : i32
    %161 = arith.index_cast %160 : i32 to index
    %c0_108 = arith.constant 0 : index
    %162 = vector.load %arg3[%161, %c0_108] : memref<118x32xf32, #tpu.memory_space<vmem>>, vector<1x32xf32>
    %163 = arith.addf %159, %162 : vector<1x32xf32>
    %c14_109 = arith.constant 14 : index
    %c0_110 = arith.constant 0 : index
    %164 = vector.load %arg8[%c14_109, %c0_110] : memref<16x32xf32, #tpu.memory_space<vmem>>, vector<1x32xf32>
    tpu.vector_store %arg8[%c14_109, %c0_110], %163 {strides = array<i32>} : memref<16x32xf32, #tpu.memory_space<vmem>>, vector<1x32xf32>,
    %c15 = arith.constant 15 : index
    %165 = memref.load %arg1[%c15] : memref<16xi32, #tpu.memory_space<smem>>
    %c15_111 = arith.constant 15 : index
    %166 = memref.load %arg2[%c15_111] : memref<16xi32, #tpu.memory_space<smem>>
    %167 = arith.index_cast %165 : i32 to index
    %c0_112 = arith.constant 0 : index
    %168 = vector.load %arg3[%167, %c0_112] : memref<118x32xf32, #tpu.memory_space<vmem>>, vector<1x32xf32>
    %c107_113 = arith.constant 107 : index
    %c0_114 = arith.constant 0 : index
    %169 = vector.load %arg3[%c107_113, %c0_114] : memref<118x32xf32, #tpu.memory_space<vmem>>, vector<1x32xf32>
    %170 = arith.addf %168, %169 : vector<1x32xf32>
    %c116_i32_115 = arith.constant 116 : i32
    %171 = arith.addi %c116_i32_115, %166 : i32
    %172 = arith.index_cast %171 : i32 to index
    %c0_116 = arith.constant 0 : index
    %173 = vector.load %arg3[%172, %c0_116] : memref<118x32xf32, #tpu.memory_space<vmem>>, vector<1x32xf32>
    %174 = arith.addf %170, %173 : vector<1x32xf32>
    %c15_117 = arith.constant 15 : index
    %c0_118 = arith.constant 0 : index
    %175 = vector.load %arg8[%c15_117, %c0_118] : memref<16x32xf32, #tpu.memory_space<vmem>>, vector<1x32xf32>
    tpu.vector_store %arg8[%c15_117, %c0_118], %174 {strides = array<i32>} : memref<16x32xf32, #tpu.memory_space<vmem>>, vector<1x32xf32>,
    %c0_119 = arith.constant 0 : index
    %c0_120 = arith.constant 0 : index
    %176 = vector.load %arg8[%c0_119, %c0_120] : memref<16x32xf32, #tpu.memory_space<vmem>>, vector<16x32xf32>
    %c0_121 = arith.constant 0 : index
    %c0_122 = arith.constant 0 : index
    %177 = vector.load %arg5[%c0_121, %c0_122] : memref<32x128xf32, #tpu.memory_space<vmem>>, vector<1x32xf32>
    %c1_123 = arith.constant 1 : index
    %c0_124 = arith.constant 0 : index
    %178 = vector.load %arg5[%c1_123, %c0_124] : memref<32x128xf32, #tpu.memory_space<vmem>>, vector<1x32xf32>
    %cst = arith.constant dense<0.000000e+00> : vector<16xf32>
    %179 = vector.multi_reduction <add>, %176, %cst [1] : vector<16x32xf32> to vector<16xf32>
    %180 = vector.shape_cast %179 : vector<16xf32> to vector<16x1xf32>
    %cst_125 = arith.constant 3.200000e+01 : f32
    %181 = vector.broadcast %cst_125 : f32 to vector<16x1xf32>
    %182 = arith.divf %180, %181 : vector<16x1xf32>
    %183 = vector.broadcast %182 : vector<16x1xf32> to vector<16x32xf32>
    %184 = arith.subf %176, %183 : vector<16x32xf32>
    %185 = arith.mulf %184, %184 : vector<16x32xf32>
    %cst_126 = arith.constant dense<0.000000e+00> : vector<16xf32>
    %186 = vector.multi_reduction <add>, %185, %cst_126 [1] : vector<16x32xf32> to vector<16xf32>
    %187 = vector.shape_cast %186 : vector<16xf32> to vector<16x1xf32>
    %cst_127 = arith.constant 3.200000e+01 : f32
    %188 = vector.broadcast %cst_127 : f32 to vector<16x1xf32>
    %189 = arith.divf %187, %188 : vector<16x1xf32>
    %cst_128 = arith.constant 9.99999996E-13 : f32
    %190 = vector.broadcast %cst_128 : f32 to vector<16x1xf32>
    %191 = arith.addf %189, %190 : vector<16x1xf32>
    %192 = math.rsqrt %191 : vector<16x1xf32>
    %193 = vector.broadcast %192 : vector<16x1xf32> to vector<16x32xf32>
    %194 = arith.mulf %184, %193 : vector<16x32xf32>
    %195 = vector.broadcast %177 : vector<1x32xf32> to vector<16x32xf32>
    %196 = arith.mulf %194, %195 : vector<16x32xf32>
    %197 = vector.broadcast %178 : vector<1x32xf32> to vector<16x32xf32>
    %198 = arith.addf %196, %197 : vector<16x32xf32>
    %c0_129 = arith.constant 0 : index
    %c0_130 = arith.constant 0 : index
    %199 = vector.load %arg8[%c0_129, %c0_130] : memref<16x32xf32, #tpu.memory_space<vmem>>, vector<16x32xf32>
    tpu.vector_store %arg8[%c0_129, %c0_130], %198 {strides = array<i32>} : memref<16x32xf32, #tpu.memory_space<vmem>>, vector<16x32xf32>,
    %c2_131 = arith.constant 2 : index
    %c0_132 = arith.constant 0 : index
    %200 = vector.load %arg6[%c2_131, %c0_132] : memref<8x128xf32, #tpu.memory_space<vmem>>, vector<1x8xf32>
    %cst_133 = arith.constant 1.000000e+00 : f32
    %201 = vector.broadcast %cst_133 : f32 to vector<1x8xf32>
    %202 = arith.subf %201, %200 : vector<1x8xf32>
    %cst_134 = arith.constant -1.000000e+04 : f32
    %203 = vector.broadcast %cst_134 : f32 to vector<1x8xf32>
    %204 = arith.mulf %202, %203 : vector<1x8xf32>
    %205 = vector.shape_cast %204 : vector<1x8xf32> to vector<1x8xf32>
    %206 = vector.broadcast %205 : vector<1x8xf32> to vector<8x8xf32>
    %c0_135 = arith.constant 0 : index
    %c0_136 = arith.constant 0 : index
    %c0_137 = arith.constant 0 : index
    %207 = vector.load %arg12[%c0_135, %c0_136, %c0_137] : memref<4x8x8xf32, #tpu.memory_space<vmem>>, vector<1x8x8xf32>
    %208 = vector.shape_cast %207 : vector<1x8x8xf32> to vector<8x8xf32>
    %209 = vector.shape_cast %206 : vector<8x8xf32> to vector<1x8x8xf32>
    tpu.vector_store %arg12[%c0_135, %c0_136, %c0_137], %209 {strides = array<i32>} : memref<4x8x8xf32, #tpu.memory_space<vmem>>, vector<1x8x8xf32>,
    %c1_138 = arith.constant 1 : index
    %c0_139 = arith.constant 0 : index
    %c0_140 = arith.constant 0 : index
    %210 = vector.load %arg12[%c1_138, %c0_139, %c0_140] : memref<4x8x8xf32, #tpu.memory_space<vmem>>, vector<1x8x8xf32>
    %211 = vector.shape_cast %210 : vector<1x8x8xf32> to vector<8x8xf32>
    %212 = vector.shape_cast %206 : vector<8x8xf32> to vector<1x8x8xf32>
    tpu.vector_store %arg12[%c1_138, %c0_139, %c0_140], %212 {strides = array<i32>} : memref<4x8x8xf32, #tpu.memory_space<vmem>>, vector<1x8x8xf32>,
    %c3_141 = arith.constant 3 : index
    %c0_142 = arith.constant 0 : index
    %213 = vector.load %arg6[%c3_141, %c0_142] : memref<8x128xf32, #tpu.memory_space<vmem>>, vector<1x8xf32>
    %cst_143 = arith.constant 1.000000e+00 : f32
    %214 = vector.broadcast %cst_143 : f32 to vector<1x8xf32>
    %215 = arith.subf %214, %213 : vector<1x8xf32>
    %cst_144 = arith.constant -1.000000e+04 : f32
    %216 = vector.broadcast %cst_144 : f32 to vector<1x8xf32>
    %217 = arith.mulf %215, %216 : vector<1x8xf32>
    %218 = vector.shape_cast %217 : vector<1x8xf32> to vector<1x8xf32>
    %219 = vector.broadcast %218 : vector<1x8xf32> to vector<8x8xf32>
    %c2_145 = arith.constant 2 : index
    %c0_146 = arith.constant 0 : index
    %c0_147 = arith.constant 0 : index
    %220 = vector.load %arg12[%c2_145, %c0_146, %c0_147] : memref<4x8x8xf32, #tpu.memory_space<vmem>>, vector<1x8x8xf32>
    %221 = vector.shape_cast %220 : vector<1x8x8xf32> to vector<8x8xf32>
    %222 = vector.shape_cast %219 : vector<8x8xf32> to vector<1x8x8xf32>
    tpu.vector_store %arg12[%c2_145, %c0_146, %c0_147], %222 {strides = array<i32>} : memref<4x8x8xf32, #tpu.memory_space<vmem>>, vector<1x8x8xf32>,
    %c3_148 = arith.constant 3 : index
    %c0_149 = arith.constant 0 : index
    %c0_150 = arith.constant 0 : index
    %223 = vector.load %arg12[%c3_148, %c0_149, %c0_150] : memref<4x8x8xf32, #tpu.memory_space<vmem>>, vector<1x8x8xf32>
    %224 = vector.shape_cast %223 : vector<1x8x8xf32> to vector<8x8xf32>
    %225 = vector.shape_cast %219 : vector<8x8xf32> to vector<1x8x8xf32>
    tpu.vector_store %arg12[%c3_148, %c0_149, %c0_150], %225 {strides = array<i32>} : memref<4x8x8xf32, #tpu.memory_space<vmem>>, vector<1x8x8xf32>,
    %c0_151 = arith.constant 0 : index
    %c0_152 = arith.constant 0 : index
    %226 = vector.load %arg8[%c0_151, %c0_152] : memref<16x32xf32, #tpu.memory_space<vmem>>, vector<16x32xf32>
    %227 = arith.truncf %226 : vector<16x32xf32> to vector<16x32xbf16>
    %c0_153 = arith.constant 0 : index
    %c0_154 = arith.constant 0 : index
    %228 = vector.load %arg4[%c0_153, %c0_154] : memref<672x128xbf16, #tpu.memory_space<vmem>>, vector<32x16xbf16>
    %c2_155 = arith.constant 2 : index
    %c0_156 = arith.constant 0 : index
    %229 = vector.load %arg5[%c2_155, %c0_156] : memref<32x128xf32, #tpu.memory_space<vmem>>, vector<1x16xf32>
    %cst_157 = arith.constant dense<0.000000e+00> : vector<16x16xf32>
    %230 = tpu.matmul %227, %228, %cst_157 {dimension_numbers = #tpu.dot_dimension_numbers<[1], [0], [0], [1], [0, 0, 1, 1], [], []>} : vector<16x32xbf16>, vector<32x16xbf16>, vector<16x16xf32> -> vector<16x16xf32>
    %231 = vector.broadcast %229 : vector<1x16xf32> to vector<16x16xf32>
    %232 = arith.addf %230, %231 : vector<16x16xf32>
    %233 = vector.extract_strided_slice %232 {offsets = [0, 0], sizes = [8, 16], strides = [1, 1]} : vector<16x16xf32> to vector<8x16xf32>
    %c0_158 = arith.constant 0 : index
    %c0_159 = arith.constant 0 : index
    %c0_160 = arith.constant 0 : index
    %234 = vector.load %arg9[%c0_158, %c0_159, %c0_160] : memref<4x8x16xf32, #tpu.memory_space<vmem>>, vector<1x8x16xf32>
    %235 = vector.shape_cast %234 : vector<1x8x16xf32> to vector<8x16xf32>
    %236 = vector.shape_cast %233 : vector<8x16xf32> to vector<1x8x16xf32>
    tpu.vector_store %arg9[%c0_158, %c0_159, %c0_160], %236 {strides = array<i32>} : memref<4x8x16xf32, #tpu.memory_space<vmem>>, vector<1x8x16xf32>,
    %237 = vector.extract_strided_slice %232 {offsets = [8, 0], sizes = [8, 16], strides = [1, 1]} : vector<16x16xf32> to vector<8x16xf32>
    %c2_161 = arith.constant 2 : index
    %c0_162 = arith.constant 0 : index
    %c0_163 = arith.constant 0 : index
    %238 = vector.load %arg9[%c2_161, %c0_162, %c0_163] : memref<4x8x16xf32, #tpu.memory_space<vmem>>, vector<1x8x16xf32>
    %239 = vector.shape_cast %238 : vector<1x8x16xf32> to vector<8x16xf32>
    %240 = vector.shape_cast %237 : vector<8x16xf32> to vector<1x8x16xf32>
    tpu.vector_store %arg9[%c2_161, %c0_162, %c0_163], %240 {strides = array<i32>} : memref<4x8x16xf32, #tpu.memory_space<vmem>>, vector<1x8x16xf32>,
    %c32 = arith.constant 32 : index
    %c0_164 = arith.constant 0 : index
    %241 = vector.load %arg4[%c32, %c0_164] : memref<672x128xbf16, #tpu.memory_space<vmem>>, vector<32x16xbf16>
    %c3_165 = arith.constant 3 : index
    %c0_166 = arith.constant 0 : index
    %242 = vector.load %arg5[%c3_165, %c0_166] : memref<32x128xf32, #tpu.memory_space<vmem>>, vector<1x16xf32>
    %cst_167 = arith.constant dense<0.000000e+00> : vector<16x16xf32>
    %243 = tpu.matmul %227, %241, %cst_167 {dimension_numbers = #tpu.dot_dimension_numbers<[1], [0], [0], [1], [0, 0, 1, 1], [], []>} : vector<16x32xbf16>, vector<32x16xbf16>, vector<16x16xf32> -> vector<16x16xf32>
    %244 = vector.broadcast %242 : vector<1x16xf32> to vector<16x16xf32>
    %245 = arith.addf %243, %244 : vector<16x16xf32>
    %246 = vector.extract_strided_slice %245 {offsets = [0, 0], sizes = [8, 16], strides = [1, 1]} : vector<16x16xf32> to vector<8x16xf32>
    %c1_168 = arith.constant 1 : index
    %c0_169 = arith.constant 0 : index
    %c0_170 = arith.constant 0 : index
    %247 = vector.load %arg9[%c1_168, %c0_169, %c0_170] : memref<4x8x16xf32, #tpu.memory_space<vmem>>, vector<1x8x16xf32>
    %248 = vector.shape_cast %247 : vector<1x8x16xf32> to vector<8x16xf32>
    %249 = vector.shape_cast %246 : vector<8x16xf32> to vector<1x8x16xf32>
    tpu.vector_store %arg9[%c1_168, %c0_169, %c0_170], %249 {strides = array<i32>} : memref<4x8x16xf32, #tpu.memory_space<vmem>>, vector<1x8x16xf32>,
    %250 = vector.extract_strided_slice %245 {offsets = [8, 0], sizes = [8, 16], strides = [1, 1]} : vector<16x16xf32> to vector<8x16xf32>
    %c3_171 = arith.constant 3 : index
    %c0_172 = arith.constant 0 : index
    %c0_173 = arith.constant 0 : index
    %251 = vector.load %arg9[%c3_171, %c0_172, %c0_173] : memref<4x8x16xf32, #tpu.memory_space<vmem>>, vector<1x8x16xf32>
    %252 = vector.shape_cast %251 : vector<1x8x16xf32> to vector<8x16xf32>
    %253 = vector.shape_cast %250 : vector<8x16xf32> to vector<1x8x16xf32>
    tpu.vector_store %arg9[%c3_171, %c0_172, %c0_173], %253 {strides = array<i32>} : memref<4x8x16xf32, #tpu.memory_space<vmem>>, vector<1x8x16xf32>,
    %c64 = arith.constant 64 : index
    %c0_174 = arith.constant 0 : index
    %254 = vector.load %arg4[%c64, %c0_174] : memref<672x128xbf16, #tpu.memory_space<vmem>>, vector<32x16xbf16>
    %c4_175 = arith.constant 4 : index
    %c0_176 = arith.constant 0 : index
    %255 = vector.load %arg5[%c4_175, %c0_176] : memref<32x128xf32, #tpu.memory_space<vmem>>, vector<1x16xf32>
    %cst_177 = arith.constant dense<0.000000e+00> : vector<16x16xf32>
    %256 = tpu.matmul %227, %254, %cst_177 {dimension_numbers = #tpu.dot_dimension_numbers<[1], [0], [0], [1], [0, 0, 1, 1], [], []>} : vector<16x32xbf16>, vector<32x16xbf16>, vector<16x16xf32> -> vector<16x16xf32>
    %257 = vector.broadcast %255 : vector<1x16xf32> to vector<16x16xf32>
    %258 = arith.addf %256, %257 : vector<16x16xf32>
    %259 = vector.extract_strided_slice %258 {offsets = [0, 0], sizes = [8, 16], strides = [1, 1]} : vector<16x16xf32> to vector<8x16xf32>
    %c0_178 = arith.constant 0 : index
    %c0_179 = arith.constant 0 : index
    %c0_180 = arith.constant 0 : index
    %260 = vector.load %arg10[%c0_178, %c0_179, %c0_180] : memref<4x8x16xf32, #tpu.memory_space<vmem>>, vector<1x8x16xf32>
    %261 = vector.shape_cast %260 : vector<1x8x16xf32> to vector<8x16xf32>
    %262 = vector.shape_cast %259 : vector<8x16xf32> to vector<1x8x16xf32>
    tpu.vector_store %arg10[%c0_178, %c0_179, %c0_180], %262 {strides = array<i32>} : memref<4x8x16xf32, #tpu.memory_space<vmem>>, vector<1x8x16xf32>,
    %263 = vector.extract_strided_slice %258 {offsets = [8, 0], sizes = [8, 16], strides = [1, 1]} : vector<16x16xf32> to vector<8x16xf32>
    %c2_181 = arith.constant 2 : index
    %c0_182 = arith.constant 0 : index
    %c0_183 = arith.constant 0 : index
    %264 = vector.load %arg10[%c2_181, %c0_182, %c0_183] : memref<4x8x16xf32, #tpu.memory_space<vmem>>, vector<1x8x16xf32>
    %265 = vector.shape_cast %264 : vector<1x8x16xf32> to vector<8x16xf32>
    %266 = vector.shape_cast %263 : vector<8x16xf32> to vector<1x8x16xf32>
    tpu.vector_store %arg10[%c2_181, %c0_182, %c0_183], %266 {strides = array<i32>} : memref<4x8x16xf32, #tpu.memory_space<vmem>>, vector<1x8x16xf32>,
    %c96 = arith.constant 96 : index
    %c0_184 = arith.constant 0 : index
    %267 = vector.load %arg4[%c96, %c0_184] : memref<672x128xbf16, #tpu.memory_space<vmem>>, vector<32x16xbf16>
    %c5_185 = arith.constant 5 : index
    %c0_186 = arith.constant 0 : index
    %268 = vector.load %arg5[%c5_185, %c0_186] : memref<32x128xf32, #tpu.memory_space<vmem>>, vector<1x16xf32>
    %cst_187 = arith.constant dense<0.000000e+00> : vector<16x16xf32>
    %269 = tpu.matmul %227, %267, %cst_187 {dimension_numbers = #tpu.dot_dimension_numbers<[1], [0], [0], [1], [0, 0, 1, 1], [], []>} : vector<16x32xbf16>, vector<32x16xbf16>, vector<16x16xf32> -> vector<16x16xf32>
    %270 = vector.broadcast %268 : vector<1x16xf32> to vector<16x16xf32>
    %271 = arith.addf %269, %270 : vector<16x16xf32>
    %272 = vector.extract_strided_slice %271 {offsets = [0, 0], sizes = [8, 16], strides = [1, 1]} : vector<16x16xf32> to vector<8x16xf32>
    %c1_188 = arith.constant 1 : index
    %c0_189 = arith.constant 0 : index
    %c0_190 = arith.constant 0 : index
    %273 = vector.load %arg10[%c1_188, %c0_189, %c0_190] : memref<4x8x16xf32, #tpu.memory_space<vmem>>, vector<1x8x16xf32>
    %274 = vector.shape_cast %273 : vector<1x8x16xf32> to vector<8x16xf32>
    %275 = vector.shape_cast %272 : vector<8x16xf32> to vector<1x8x16xf32>
    tpu.vector_store %arg10[%c1_188, %c0_189, %c0_190], %275 {strides = array<i32>} : memref<4x8x16xf32, #tpu.memory_space<vmem>>, vector<1x8x16xf32>,
    %276 = vector.extract_strided_slice %271 {offsets = [8, 0], sizes = [8, 16], strides = [1, 1]} : vector<16x16xf32> to vector<8x16xf32>
    %c3_191 = arith.constant 3 : index
    %c0_192 = arith.constant 0 : index
    %c0_193 = arith.constant 0 : index
    %277 = vector.load %arg10[%c3_191, %c0_192, %c0_193] : memref<4x8x16xf32, #tpu.memory_space<vmem>>, vector<1x8x16xf32>
    %278 = vector.shape_cast %277 : vector<1x8x16xf32> to vector<8x16xf32>
    %279 = vector.shape_cast %276 : vector<8x16xf32> to vector<1x8x16xf32>
    tpu.vector_store %arg10[%c3_191, %c0_192, %c0_193], %279 {strides = array<i32>} : memref<4x8x16xf32, #tpu.memory_space<vmem>>, vector<1x8x16xf32>,
    %c128 = arith.constant 128 : index
    %c0_194 = arith.constant 0 : index
    %280 = vector.load %arg4[%c128, %c0_194] : memref<672x128xbf16, #tpu.memory_space<vmem>>, vector<32x16xbf16>
    %c6_195 = arith.constant 6 : index
    %c0_196 = arith.constant 0 : index
    %281 = vector.load %arg5[%c6_195, %c0_196] : memref<32x128xf32, #tpu.memory_space<vmem>>, vector<1x16xf32>
    %cst_197 = arith.constant dense<0.000000e+00> : vector<16x16xf32>
    %282 = tpu.matmul %227, %280, %cst_197 {dimension_numbers = #tpu.dot_dimension_numbers<[1], [0], [0], [1], [0, 0, 1, 1], [], []>} : vector<16x32xbf16>, vector<32x16xbf16>, vector<16x16xf32> -> vector<16x16xf32>
    %283 = vector.broadcast %281 : vector<1x16xf32> to vector<16x16xf32>
    %284 = arith.addf %282, %283 : vector<16x16xf32>
    %285 = vector.extract_strided_slice %284 {offsets = [0, 0], sizes = [8, 16], strides = [1, 1]} : vector<16x16xf32> to vector<8x16xf32>
    %c0_198 = arith.constant 0 : index
    %c0_199 = arith.constant 0 : index
    %c0_200 = arith.constant 0 : index
    %286 = vector.load %arg11[%c0_198, %c0_199, %c0_200] : memref<4x8x16xf32, #tpu.memory_space<vmem>>, vector<1x8x16xf32>
    %287 = vector.shape_cast %286 : vector<1x8x16xf32> to vector<8x16xf32>
    %288 = vector.shape_cast %285 : vector<8x16xf32> to vector<1x8x16xf32>
    tpu.vector_store %arg11[%c0_198, %c0_199, %c0_200], %288 {strides = array<i32>} : memref<4x8x16xf32, #tpu.memory_space<vmem>>, vector<1x8x16xf32>,
    %289 = vector.extract_strided_slice %284 {offsets = [8, 0], sizes = [8, 16], strides = [1, 1]} : vector<16x16xf32> to vector<8x16xf32>
    %c2_201 = arith.constant 2 : index
    %c0_202 = arith.constant 0 : index
    %c0_203 = arith.constant 0 : index
    %290 = vector.load %arg11[%c2_201, %c0_202, %c0_203] : memref<4x8x16xf32, #tpu.memory_space<vmem>>, vector<1x8x16xf32>
    %291 = vector.shape_cast %290 : vector<1x8x16xf32> to vector<8x16xf32>
    %292 = vector.shape_cast %289 : vector<8x16xf32> to vector<1x8x16xf32>
    tpu.vector_store %arg11[%c2_201, %c0_202, %c0_203], %292 {strides = array<i32>} : memref<4x8x16xf32, #tpu.memory_space<vmem>>, vector<1x8x16xf32>,
    %c160 = arith.constant 160 : index
    %c0_204 = arith.constant 0 : index
    %293 = vector.load %arg4[%c160, %c0_204] : memref<672x128xbf16, #tpu.memory_space<vmem>>, vector<32x16xbf16>
    %c7_205 = arith.constant 7 : index
    %c0_206 = arith.constant 0 : index
    %294 = vector.load %arg5[%c7_205, %c0_206] : memref<32x128xf32, #tpu.memory_space<vmem>>, vector<1x16xf32>
    %cst_207 = arith.constant dense<0.000000e+00> : vector<16x16xf32>
    %295 = tpu.matmul %227, %293, %cst_207 {dimension_numbers = #tpu.dot_dimension_numbers<[1], [0], [0], [1], [0, 0, 1, 1], [], []>} : vector<16x32xbf16>, vector<32x16xbf16>, vector<16x16xf32> -> vector<16x16xf32>
    %296 = vector.broadcast %294 : vector<1x16xf32> to vector<16x16xf32>
    %297 = arith.addf %295, %296 : vector<16x16xf32>
    %298 = vector.extract_strided_slice %297 {offsets = [0, 0], sizes = [8, 16], strides = [1, 1]} : vector<16x16xf32> to vector<8x16xf32>
    %c1_208 = arith.constant 1 : index
    %c0_209 = arith.constant 0 : index
    %c0_210 = arith.constant 0 : index
    %299 = vector.load %arg11[%c1_208, %c0_209, %c0_210] : memref<4x8x16xf32, #tpu.memory_space<vmem>>, vector<1x8x16xf32>
    %300 = vector.shape_cast %299 : vector<1x8x16xf32> to vector<8x16xf32>
    %301 = vector.shape_cast %298 : vector<8x16xf32> to vector<1x8x16xf32>
    tpu.vector_store %arg11[%c1_208, %c0_209, %c0_210], %301 {strides = array<i32>} : memref<4x8x16xf32, #tpu.memory_space<vmem>>, vector<1x8x16xf32>,
    %302 = vector.extract_strided_slice %297 {offsets = [8, 0], sizes = [8, 16], strides = [1, 1]} : vector<16x16xf32> to vector<8x16xf32>
    %c3_211 = arith.constant 3 : index
    %c0_212 = arith.constant 0 : index
    %c0_213 = arith.constant 0 : index
    %303 = vector.load %arg11[%c3_211, %c0_212, %c0_213] : memref<4x8x16xf32, #tpu.memory_space<vmem>>, vector<1x8x16xf32>
    %304 = vector.shape_cast %303 : vector<1x8x16xf32> to vector<8x16xf32>
    %305 = vector.shape_cast %302 : vector<8x16xf32> to vector<1x8x16xf32>
    tpu.vector_store %arg11[%c3_211, %c0_212, %c0_213], %305 {strides = array<i32>} : memref<4x8x16xf32, #tpu.memory_space<vmem>>, vector<1x8x16xf32>,
    %c0_214 = arith.constant 0 : index
    %c0_215 = arith.constant 0 : index
    %c0_216 = arith.constant 0 : index
    %306 = vector.load %arg9[%c0_214, %c0_215, %c0_216] : memref<4x8x16xf32, #tpu.memory_space<vmem>>, vector<4x8x16xf32>
    %307 = arith.truncf %306 : vector<4x8x16xf32> to vector<4x8x16xbf16>
    %c0_217 = arith.constant 0 : index
    %c0_218 = arith.constant 0 : index
    %c0_219 = arith.constant 0 : index
    %308 = vector.load %arg10[%c0_217, %c0_218, %c0_219] : memref<4x8x16xf32, #tpu.memory_space<vmem>>, vector<4x8x16xf32>
    %309 = arith.truncf %308 : vector<4x8x16xf32> to vector<4x8x16xbf16>
    "tpu.trace_start"() <{level = 10 : i32, message = "bqd,bkd->bqk"}> : () -> ()
    %cst_220 = arith.constant dense<0.000000e+00> : vector<4x8x8xf32>
    %310 = tpu.matmul %307, %309, %cst_220 {dimension_numbers = #tpu.dot_dimension_numbers<[2], [2], [1], [1], [0, 0, 0, 1, 1, 1], [0], [0]>} : vector<4x8x16xbf16>, vector<4x8x16xbf16>, vector<4x8x8xf32> -> vector<4x8x8xf32>
    "tpu.trace_stop"() : () -> ()
    %cst_221 = arith.constant 2.500000e-01 : f32
    %311 = vector.broadcast %cst_221 : f32 to vector<4x8x8xf32>
    %312 = arith.mulf %310, %311 : vector<4x8x8xf32>
    %c0_222 = arith.constant 0 : index
    %c0_223 = arith.constant 0 : index
    %c0_224 = arith.constant 0 : index
    %313 = vector.load %arg12[%c0_222, %c0_223, %c0_224] : memref<4x8x8xf32, #tpu.memory_space<vmem>>, vector<4x8x8xf32>
    %314 = arith.addf %312, %313 : vector<4x8x8xf32>
    %cst_225 = arith.constant dense<0xFF800000> : vector<4x8xf32>
    %315 = vector.multi_reduction <maximumf>, %314, %cst_225 [2] : vector<4x8x8xf32> to vector<4x8xf32>
    %316 = vector.shape_cast %315 : vector<4x8xf32> to vector<4x8x1xf32>
    %317 = vector.broadcast %316 : vector<4x8x1xf32> to vector<4x8x8xf32>
    %318 = arith.subf %314, %317 : vector<4x8x8xf32>
    %319 = math.exp %318 : vector<4x8x8xf32>
    %cst_226 = arith.constant dense<0.000000e+00> : vector<4x8xf32>
    %320 = vector.multi_reduction <add>, %319, %cst_226 [2] : vector<4x8x8xf32> to vector<4x8xf32>
    %321 = vector.shape_cast %320 : vector<4x8xf32> to vector<4x8x1xf32>
    %322 = tpu.reciprocal %321 {approx = true} : vector<4x8x1xf32> -> vector<4x8x1xf32>
    %323 = vector.broadcast %322 : vector<4x8x1xf32> to vector<4x8x8xf32>
    %324 = arith.mulf %319, %323 : vector<4x8x8xf32>
    %325 = arith.truncf %324 : vector<4x8x8xf32> to vector<4x8x8xbf16>
    %c0_227 = arith.constant 0 : index
    %c0_228 = arith.constant 0 : index
    %c0_229 = arith.constant 0 : index
    %326 = vector.load %arg11[%c0_227, %c0_228, %c0_229] : memref<4x8x16xf32, #tpu.memory_space<vmem>>, vector<4x8x16xf32>
    %327 = arith.truncf %326 : vector<4x8x16xf32> to vector<4x8x16xbf16>
    "tpu.trace_start"() <{level = 10 : i32, message = "bqk,bkd->bqd"}> : () -> ()
    %cst_230 = arith.constant dense<0.000000e+00> : vector<4x8x16xf32>
    %328 = tpu.matmul %325, %327, %cst_230 {dimension_numbers = #tpu.dot_dimension_numbers<[2], [1], [1], [2], [0, 0, 0, 1, 1, 2], [0], [0]>} : vector<4x8x8xbf16>, vector<4x8x16xbf16>, vector<4x8x16xf32> -> vector<4x8x16xf32>
    %cst_231 = arith.constant 0.000000e+00 : f32
    "tpu.trace_stop"() : () -> ()
    %329 = vector.broadcast %cst_231 : f32 to vector<8x32xf32>
    %330 = vector.extract_strided_slice %328 {offsets = [0, 0, 0], sizes = [1, 8, 16], strides = [1, 1, 1]} : vector<4x8x16xf32> to vector<1x8x16xf32>
    %331 = vector.shape_cast %330 : vector<1x8x16xf32> to vector<8x16xf32>
    %332 = arith.truncf %331 : vector<8x16xf32> to vector<8x16xbf16>
    %c192 = arith.constant 192 : index
    %c0_232 = arith.constant 0 : index
    %333 = vector.load %arg4[%c192, %c0_232] : memref<672x128xbf16, #tpu.memory_space<vmem>>, vector<16x32xbf16>
    %cst_233 = arith.constant dense<0.000000e+00> : vector<8x32xf32>
    %334 = tpu.matmul %332, %333, %cst_233 {dimension_numbers = #tpu.dot_dimension_numbers<[1], [0], [0], [1], [0, 0, 1, 1], [], []>} : vector<8x16xbf16>, vector<16x32xbf16>, vector<8x32xf32> -> vector<8x32xf32>
    %335 = arith.addf %329, %334 : vector<8x32xf32>
    %336 = vector.extract_strided_slice %328 {offsets = [1, 0, 0], sizes = [1, 8, 16], strides = [1, 1, 1]} : vector<4x8x16xf32> to vector<1x8x16xf32>
    %337 = vector.shape_cast %336 : vector<1x8x16xf32> to vector<8x16xf32>
    %338 = arith.truncf %337 : vector<8x16xf32> to vector<8x16xbf16>
    %c208 = arith.constant 208 : index
    %c0_234 = arith.constant 0 : index
    %339 = vector.load %arg4[%c208, %c0_234] : memref<672x128xbf16, #tpu.memory_space<vmem>>, vector<16x32xbf16>
    %cst_235 = arith.constant dense<0.000000e+00> : vector<8x32xf32>
    %340 = tpu.matmul %338, %339, %cst_235 {dimension_numbers = #tpu.dot_dimension_numbers<[1], [0], [0], [1], [0, 0, 1, 1], [], []>} : vector<8x16xbf16>, vector<16x32xbf16>, vector<8x32xf32> -> vector<8x32xf32>
    %341 = arith.addf %335, %340 : vector<8x32xf32>
    %c0_236 = arith.constant 0 : index
    %c0_237 = arith.constant 0 : index
    %342 = vector.load %arg13[%c0_236, %c0_237] : memref<16x32xf32, #tpu.memory_space<vmem>>, vector<8x32xf32>
    tpu.vector_store %arg13[%c0_236, %c0_237], %341 {strides = array<i32>} : memref<16x32xf32, #tpu.memory_space<vmem>>, vector<8x32xf32>,
    %cst_238 = arith.constant 0.000000e+00 : f32
    %343 = vector.broadcast %cst_238 : f32 to vector<8x32xf32>
    %344 = vector.extract_strided_slice %328 {offsets = [2, 0, 0], sizes = [1, 8, 16], strides = [1, 1, 1]} : vector<4x8x16xf32> to vector<1x8x16xf32>
    %345 = vector.shape_cast %344 : vector<1x8x16xf32> to vector<8x16xf32>
    %346 = arith.truncf %345 : vector<8x16xf32> to vector<8x16xbf16>
    %c192_239 = arith.constant 192 : index
    %c0_240 = arith.constant 0 : index
    %347 = vector.load %arg4[%c192_239, %c0_240] : memref<672x128xbf16, #tpu.memory_space<vmem>>, vector<16x32xbf16>
    %cst_241 = arith.constant dense<0.000000e+00> : vector<8x32xf32>
    %348 = tpu.matmul %346, %347, %cst_241 {dimension_numbers = #tpu.dot_dimension_numbers<[1], [0], [0], [1], [0, 0, 1, 1], [], []>} : vector<8x16xbf16>, vector<16x32xbf16>, vector<8x32xf32> -> vector<8x32xf32>
    %349 = arith.addf %343, %348 : vector<8x32xf32>
    %350 = vector.extract_strided_slice %328 {offsets = [3, 0, 0], sizes = [1, 8, 16], strides = [1, 1, 1]} : vector<4x8x16xf32> to vector<1x8x16xf32>
    %351 = vector.shape_cast %350 : vector<1x8x16xf32> to vector<8x16xf32>
    %352 = arith.truncf %351 : vector<8x16xf32> to vector<8x16xbf16>
    %c208_242 = arith.constant 208 : index
    %c0_243 = arith.constant 0 : index
    %353 = vector.load %arg4[%c208_242, %c0_243] : memref<672x128xbf16, #tpu.memory_space<vmem>>, vector<16x32xbf16>
    %cst_244 = arith.constant dense<0.000000e+00> : vector<8x32xf32>
    %354 = tpu.matmul %352, %353, %cst_244 {dimension_numbers = #tpu.dot_dimension_numbers<[1], [0], [0], [1], [0, 0, 1, 1], [], []>} : vector<8x16xbf16>, vector<16x32xbf16>, vector<8x32xf32> -> vector<8x32xf32>
    %355 = arith.addf %349, %354 : vector<8x32xf32>
    %c8_245 = arith.constant 8 : index
    %c0_246 = arith.constant 0 : index
    %356 = vector.load %arg13[%c8_245, %c0_246] : memref<16x32xf32, #tpu.memory_space<vmem>>, vector<8x32xf32>
    tpu.vector_store %arg13[%c8_245, %c0_246], %355 {strides = array<i32>} : memref<16x32xf32, #tpu.memory_space<vmem>>, vector<8x32xf32>,
    %c0_247 = arith.constant 0 : index
    %c0_248 = arith.constant 0 : index
    %357 = vector.load %arg13[%c0_247, %c0_248] : memref<16x32xf32, #tpu.memory_space<vmem>>, vector<16x32xf32>
    %c8_249 = arith.constant 8 : index
    %c0_250 = arith.constant 0 : index
    %358 = vector.load %arg5[%c8_249, %c0_250] : memref<32x128xf32, #tpu.memory_space<vmem>>, vector<1x32xf32>
    %359 = vector.broadcast %358 : vector<1x32xf32> to vector<16x32xf32>
    %360 = arith.addf %357, %359 : vector<16x32xf32>
    %361 = arith.addf %360, %226 : vector<16x32xf32>
    %c9_251 = arith.constant 9 : index
    %c0_252 = arith.constant 0 : index
    %362 = vector.load %arg5[%c9_251, %c0_252] : memref<32x128xf32, #tpu.memory_space<vmem>>, vector<1x32xf32>
    %c10_253 = arith.constant 10 : index
    %c0_254 = arith.constant 0 : index
    %363 = vector.load %arg5[%c10_253, %c0_254] : memref<32x128xf32, #tpu.memory_space<vmem>>, vector<1x32xf32>
    %cst_255 = arith.constant dense<0.000000e+00> : vector<16xf32>
    %364 = vector.multi_reduction <add>, %361, %cst_255 [1] : vector<16x32xf32> to vector<16xf32>
    %365 = vector.shape_cast %364 : vector<16xf32> to vector<16x1xf32>
    %cst_256 = arith.constant 3.200000e+01 : f32
    %366 = vector.broadcast %cst_256 : f32 to vector<16x1xf32>
    %367 = arith.divf %365, %366 : vector<16x1xf32>
    %368 = vector.broadcast %367 : vector<16x1xf32> to vector<16x32xf32>
    %369 = arith.subf %361, %368 : vector<16x32xf32>
    %370 = arith.mulf %369, %369 : vector<16x32xf32>
    %cst_257 = arith.constant dense<0.000000e+00> : vector<16xf32>
    %371 = vector.multi_reduction <add>, %370, %cst_257 [1] : vector<16x32xf32> to vector<16xf32>
    %372 = vector.shape_cast %371 : vector<16xf32> to vector<16x1xf32>
    %cst_258 = arith.constant 3.200000e+01 : f32
    %373 = vector.broadcast %cst_258 : f32 to vector<16x1xf32>
    %374 = arith.divf %372, %373 : vector<16x1xf32>
    %cst_259 = arith.constant 9.99999996E-13 : f32
    %375 = vector.broadcast %cst_259 : f32 to vector<16x1xf32>
    %376 = arith.addf %374, %375 : vector<16x1xf32>
    %377 = math.rsqrt %376 : vector<16x1xf32>
    %378 = vector.broadcast %377 : vector<16x1xf32> to vector<16x32xf32>
    %379 = arith.mulf %369, %378 : vector<16x32xf32>
    %380 = vector.broadcast %362 : vector<1x32xf32> to vector<16x32xf32>
    %381 = arith.mulf %379, %380 : vector<16x32xf32>
    %382 = vector.broadcast %363 : vector<1x32xf32> to vector<16x32xf32>
    %383 = arith.addf %381, %382 : vector<16x32xf32>
    %384 = arith.truncf %383 : vector<16x32xf32> to vector<16x32xbf16>
    %c224 = arith.constant 224 : index
    %c0_260 = arith.constant 0 : index
    %385 = vector.load %arg4[%c224, %c0_260] : memref<672x128xbf16, #tpu.memory_space<vmem>>, vector<32x64xbf16>
    %cst_261 = arith.constant dense<0.000000e+00> : vector<16x64xf32>
    %386 = tpu.matmul %384, %385, %cst_261 {dimension_numbers = #tpu.dot_dimension_numbers<[1], [0], [0], [1], [0, 0, 1, 1], [], []>} : vector<16x32xbf16>, vector<32x64xbf16>, vector<16x64xf32> -> vector<16x64xf32>
    %c11_262 = arith.constant 11 : index
    %c0_263 = arith.constant 0 : index
    %387 = vector.load %arg5[%c11_262, %c0_263] : memref<32x128xf32, #tpu.memory_space<vmem>>, vector<1x64xf32>
    %388 = vector.broadcast %387 : vector<1x64xf32> to vector<16x64xf32>
    %389 = arith.addf %386, %388 : vector<16x64xf32>
    %cst_264 = arith.constant 5.000000e-01 : f32
    %390 = vector.broadcast %cst_264 : f32 to vector<16x64xf32>
    %391 = arith.mulf %390, %389 : vector<16x64xf32>
    %cst_265 = arith.constant 0.707106769 : f32
    %392 = vector.broadcast %cst_265 : f32 to vector<16x64xf32>
    %393 = arith.mulf %389, %392 : vector<16x64xf32>
    %394 = math.erf %393 : vector<16x64xf32>
    %cst_266 = arith.constant 1.000000e+00 : f32
    %395 = vector.broadcast %cst_266 : f32 to vector<16x64xf32>
    %396 = arith.addf %395, %394 : vector<16x64xf32>
    %397 = arith.mulf %391, %396 : vector<16x64xf32>
    %398 = arith.truncf %397 : vector<16x64xf32> to vector<16x64xbf16>
    %c256 = arith.constant 256 : index
    %c0_267 = arith.constant 0 : index
    %399 = vector.load %arg4[%c256, %c0_267] : memref<672x128xbf16, #tpu.memory_space<vmem>>, vector<64x32xbf16>
    %cst_268 = arith.constant dense<0.000000e+00> : vector<16x32xf32>
    %400 = tpu.matmul %398, %399, %cst_268 {dimension_numbers = #tpu.dot_dimension_numbers<[1], [0], [0], [1], [0, 0, 1, 1], [], []>} : vector<16x64xbf16>, vector<64x32xbf16>, vector<16x32xf32> -> vector<16x32xf32>
    %c12_269 = arith.constant 12 : index
    %c0_270 = arith.constant 0 : index
    %401 = vector.load %arg5[%c12_269, %c0_270] : memref<32x128xf32, #tpu.memory_space<vmem>>, vector<1x32xf32>
    %402 = vector.broadcast %401 : vector<1x32xf32> to vector<16x32xf32>
    %403 = arith.addf %400, %402 : vector<16x32xf32>
    %404 = arith.addf %403, %383 : vector<16x32xf32>
    %c13_271 = arith.constant 13 : index
    %c0_272 = arith.constant 0 : index
    %405 = vector.load %arg5[%c13_271, %c0_272] : memref<32x128xf32, #tpu.memory_space<vmem>>, vector<1x32xf32>
    %c14_273 = arith.constant 14 : index
    %c0_274 = arith.constant 0 : index
    %406 = vector.load %arg5[%c14_273, %c0_274] : memref<32x128xf32, #tpu.memory_space<vmem>>, vector<1x32xf32>
    %cst_275 = arith.constant dense<0.000000e+00> : vector<16xf32>
    %407 = vector.multi_reduction <add>, %404, %cst_275 [1] : vector<16x32xf32> to vector<16xf32>
    %408 = vector.shape_cast %407 : vector<16xf32> to vector<16x1xf32>
    %cst_276 = arith.constant 3.200000e+01 : f32
    %409 = vector.broadcast %cst_276 : f32 to vector<16x1xf32>
    %410 = arith.divf %408, %409 : vector<16x1xf32>
    %411 = vector.broadcast %410 : vector<16x1xf32> to vector<16x32xf32>
    %412 = arith.subf %404, %411 : vector<16x32xf32>
    %413 = arith.mulf %412, %412 : vector<16x32xf32>
    %cst_277 = arith.constant dense<0.000000e+00> : vector<16xf32>
    %414 = vector.multi_reduction <add>, %413, %cst_277 [1] : vector<16x32xf32> to vector<16xf32>
    %415 = vector.shape_cast %414 : vector<16xf32> to vector<16x1xf32>
    %cst_278 = arith.constant 3.200000e+01 : f32
    %416 = vector.broadcast %cst_278 : f32 to vector<16x1xf32>
    %417 = arith.divf %415, %416 : vector<16x1xf32>
    %cst_279 = arith.constant 9.99999996E-13 : f32
    %418 = vector.broadcast %cst_279 : f32 to vector<16x1xf32>
    %419 = arith.addf %417, %418 : vector<16x1xf32>
    %420 = math.rsqrt %419 : vector<16x1xf32>
    %421 = vector.broadcast %420 : vector<16x1xf32> to vector<16x32xf32>
    %422 = arith.mulf %412, %421 : vector<16x32xf32>
    %423 = vector.broadcast %405 : vector<1x32xf32> to vector<16x32xf32>
    %424 = arith.mulf %422, %423 : vector<16x32xf32>
    %425 = vector.broadcast %406 : vector<1x32xf32> to vector<16x32xf32>
    %426 = arith.addf %424, %425 : vector<16x32xf32>
    %c0_280 = arith.constant 0 : index
    %c0_281 = arith.constant 0 : index
    %427 = vector.load %arg8[%c0_280, %c0_281] : memref<16x32xf32, #tpu.memory_space<vmem>>, vector<16x32xf32>
    tpu.vector_store %arg8[%c0_280, %c0_281], %426 {strides = array<i32>} : memref<16x32xf32, #tpu.memory_space<vmem>>, vector<16x32xf32>,
    %c0_282 = arith.constant 0 : index
    %c0_283 = arith.constant 0 : index
    %428 = vector.load %arg8[%c0_282, %c0_283] : memref<16x32xf32, #tpu.memory_space<vmem>>, vector<16x32xf32>
    %429 = arith.truncf %428 : vector<16x32xf32> to vector<16x32xbf16>
    %c320 = arith.constant 320 : index
    %c0_284 = arith.constant 0 : index
    %430 = vector.load %arg4[%c320, %c0_284] : memref<672x128xbf16, #tpu.memory_space<vmem>>, vector<32x16xbf16>
    %c15_285 = arith.constant 15 : index
    %c0_286 = arith.constant 0 : index
    %431 = vector.load %arg5[%c15_285, %c0_286] : memref<32x128xf32, #tpu.memory_space<vmem>>, vector<1x16xf32>
    %cst_287 = arith.constant dense<0.000000e+00> : vector<16x16xf32>
    %432 = tpu.matmul %429, %430, %cst_287 {dimension_numbers = #tpu.dot_dimension_numbers<[1], [0], [0], [1], [0, 0, 1, 1], [], []>} : vector<16x32xbf16>, vector<32x16xbf16>, vector<16x16xf32> -> vector<16x16xf32>
    %433 = vector.broadcast %431 : vector<1x16xf32> to vector<16x16xf32>
    %434 = arith.addf %432, %433 : vector<16x16xf32>
    %435 = vector.extract_strided_slice %434 {offsets = [0, 0], sizes = [8, 16], strides = [1, 1]} : vector<16x16xf32> to vector<8x16xf32>
    %c0_288 = arith.constant 0 : index
    %c0_289 = arith.constant 0 : index
    %c0_290 = arith.constant 0 : index
    %436 = vector.load %arg9[%c0_288, %c0_289, %c0_290] : memref<4x8x16xf32, #tpu.memory_space<vmem>>, vector<1x8x16xf32>
    %437 = vector.shape_cast %436 : vector<1x8x16xf32> to vector<8x16xf32>
    %438 = vector.shape_cast %435 : vector<8x16xf32> to vector<1x8x16xf32>
    tpu.vector_store %arg9[%c0_288, %c0_289, %c0_290], %438 {strides = array<i32>} : memref<4x8x16xf32, #tpu.memory_space<vmem>>, vector<1x8x16xf32>,
    %439 = vector.extract_strided_slice %434 {offsets = [8, 0], sizes = [8, 16], strides = [1, 1]} : vector<16x16xf32> to vector<8x16xf32>
    %c2_291 = arith.constant 2 : index
    %c0_292 = arith.constant 0 : index
    %c0_293 = arith.constant 0 : index
    %440 = vector.load %arg9[%c2_291, %c0_292, %c0_293] : memref<4x8x16xf32, #tpu.memory_space<vmem>>, vector<1x8x16xf32>
    %441 = vector.shape_cast %440 : vector<1x8x16xf32> to vector<8x16xf32>
    %442 = vector.shape_cast %439 : vector<8x16xf32> to vector<1x8x16xf32>
    tpu.vector_store %arg9[%c2_291, %c0_292, %c0_293], %442 {strides = array<i32>} : memref<4x8x16xf32, #tpu.memory_space<vmem>>, vector<1x8x16xf32>,
    %c352 = arith.constant 352 : index
    %c0_294 = arith.constant 0 : index
    %443 = vector.load %arg4[%c352, %c0_294] : memref<672x128xbf16, #tpu.memory_space<vmem>>, vector<32x16xbf16>
    %c16 = arith.constant 16 : index
    %c0_295 = arith.constant 0 : index
    %444 = vector.load %arg5[%c16, %c0_295] : memref<32x128xf32, #tpu.memory_space<vmem>>, vector<1x16xf32>
    %cst_296 = arith.constant dense<0.000000e+00> : vector<16x16xf32>
    %445 = tpu.matmul %429, %443, %cst_296 {dimension_numbers = #tpu.dot_dimension_numbers<[1], [0], [0], [1], [0, 0, 1, 1], [], []>} : vector<16x32xbf16>, vector<32x16xbf16>, vector<16x16xf32> -> vector<16x16xf32>
    %446 = vector.broadcast %444 : vector<1x16xf32> to vector<16x16xf32>
    %447 = arith.addf %445, %446 : vector<16x16xf32>
    %448 = vector.extract_strided_slice %447 {offsets = [0, 0], sizes = [8, 16], strides = [1, 1]} : vector<16x16xf32> to vector<8x16xf32>
    %c1_297 = arith.constant 1 : index
    %c0_298 = arith.constant 0 : index
    %c0_299 = arith.constant 0 : index
    %449 = vector.load %arg9[%c1_297, %c0_298, %c0_299] : memref<4x8x16xf32, #tpu.memory_space<vmem>>, vector<1x8x16xf32>
    %450 = vector.shape_cast %449 : vector<1x8x16xf32> to vector<8x16xf32>
    %451 = vector.shape_cast %448 : vector<8x16xf32> to vector<1x8x16xf32>
    tpu.vector_store %arg9[%c1_297, %c0_298, %c0_299], %451 {strides = array<i32>} : memref<4x8x16xf32, #tpu.memory_space<vmem>>, vector<1x8x16xf32>,
    %452 = vector.extract_strided_slice %447 {offsets = [8, 0], sizes = [8, 16], strides = [1, 1]} : vector<16x16xf32> to vector<8x16xf32>
    %c3_300 = arith.constant 3 : index
    %c0_301 = arith.constant 0 : index
    %c0_302 = arith.constant 0 : index
    %453 = vector.load %arg9[%c3_300, %c0_301, %c0_302] : memref<4x8x16xf32, #tpu.memory_space<vmem>>, vector<1x8x16xf32>
    %454 = vector.shape_cast %453 : vector<1x8x16xf32> to vector<8x16xf32>
    %455 = vector.shape_cast %452 : vector<8x16xf32> to vector<1x8x16xf32>
    tpu.vector_store %arg9[%c3_300, %c0_301, %c0_302], %455 {strides = array<i32>} : memref<4x8x16xf32, #tpu.memory_space<vmem>>, vector<1x8x16xf32>,
    %c384 = arith.constant 384 : index
    %c0_303 = arith.constant 0 : index
    %456 = vector.load %arg4[%c384, %c0_303] : memref<672x128xbf16, #tpu.memory_space<vmem>>, vector<32x16xbf16>
    %c17 = arith.constant 17 : index
    %c0_304 = arith.constant 0 : index
    %457 = vector.load %arg5[%c17, %c0_304] : memref<32x128xf32, #tpu.memory_space<vmem>>, vector<1x16xf32>
    %cst_305 = arith.constant dense<0.000000e+00> : vector<16x16xf32>
    %458 = tpu.matmul %429, %456, %cst_305 {dimension_numbers = #tpu.dot_dimension_numbers<[1], [0], [0], [1], [0, 0, 1, 1], [], []>} : vector<16x32xbf16>, vector<32x16xbf16>, vector<16x16xf32> -> vector<16x16xf32>
    %459 = vector.broadcast %457 : vector<1x16xf32> to vector<16x16xf32>
    %460 = arith.addf %458, %459 : vector<16x16xf32>
    %461 = vector.extract_strided_slice %460 {offsets = [0, 0], sizes = [8, 16], strides = [1, 1]} : vector<16x16xf32> to vector<8x16xf32>
    %c0_306 = arith.constant 0 : index
    %c0_307 = arith.constant 0 : index
    %c0_308 = arith.constant 0 : index
    %462 = vector.load %arg10[%c0_306, %c0_307, %c0_308] : memref<4x8x16xf32, #tpu.memory_space<vmem>>, vector<1x8x16xf32>
    %463 = vector.shape_cast %462 : vector<1x8x16xf32> to vector<8x16xf32>
    %464 = vector.shape_cast %461 : vector<8x16xf32> to vector<1x8x16xf32>
    tpu.vector_store %arg10[%c0_306, %c0_307, %c0_308], %464 {strides = array<i32>} : memref<4x8x16xf32, #tpu.memory_space<vmem>>, vector<1x8x16xf32>,
    %465 = vector.extract_strided_slice %460 {offsets = [8, 0], sizes = [8, 16], strides = [1, 1]} : vector<16x16xf32> to vector<8x16xf32>
    %c2_309 = arith.constant 2 : index
    %c0_310 = arith.constant 0 : index
    %c0_311 = arith.constant 0 : index
    %466 = vector.load %arg10[%c2_309, %c0_310, %c0_311] : memref<4x8x16xf32, #tpu.memory_space<vmem>>, vector<1x8x16xf32>
    %467 = vector.shape_cast %466 : vector<1x8x16xf32> to vector<8x16xf32>
    %468 = vector.shape_cast %465 : vector<8x16xf32> to vector<1x8x16xf32>
    tpu.vector_store %arg10[%c2_309, %c0_310, %c0_311], %468 {strides = array<i32>} : memref<4x8x16xf32, #tpu.memory_space<vmem>>, vector<1x8x16xf32>,
    %c416 = arith.constant 416 : index
    %c0_312 = arith.constant 0 : index
    %469 = vector.load %arg4[%c416, %c0_312] : memref<672x128xbf16, #tpu.memory_space<vmem>>, vector<32x16xbf16>
    %c18 = arith.constant 18 : index
    %c0_313 = arith.constant 0 : index
    %470 = vector.load %arg5[%c18, %c0_313] : memref<32x128xf32, #tpu.memory_space<vmem>>, vector<1x16xf32>
    %cst_314 = arith.constant dense<0.000000e+00> : vector<16x16xf32>
    %471 = tpu.matmul %429, %469, %cst_314 {dimension_numbers = #tpu.dot_dimension_numbers<[1], [0], [0], [1], [0, 0, 1, 1], [], []>} : vector<16x32xbf16>, vector<32x16xbf16>, vector<16x16xf32> -> vector<16x16xf32>
    %472 = vector.broadcast %470 : vector<1x16xf32> to vector<16x16xf32>
    %473 = arith.addf %471, %472 : vector<16x16xf32>
    %474 = vector.extract_strided_slice %473 {offsets = [0, 0], sizes = [8, 16], strides = [1, 1]} : vector<16x16xf32> to vector<8x16xf32>
    %c1_315 = arith.constant 1 : index
    %c0_316 = arith.constant 0 : index
    %c0_317 = arith.constant 0 : index
    %475 = vector.load %arg10[%c1_315, %c0_316, %c0_317] : memref<4x8x16xf32, #tpu.memory_space<vmem>>, vector<1x8x16xf32>
    %476 = vector.shape_cast %475 : vector<1x8x16xf32> to vector<8x16xf32>
    %477 = vector.shape_cast %474 : vector<8x16xf32> to vector<1x8x16xf32>
    tpu.vector_store %arg10[%c1_315, %c0_316, %c0_317], %477 {strides = array<i32>} : memref<4x8x16xf32, #tpu.memory_space<vmem>>, vector<1x8x16xf32>,
    %478 = vector.extract_strided_slice %473 {offsets = [8, 0], sizes = [8, 16], strides = [1, 1]} : vector<16x16xf32> to vector<8x16xf32>
    %c3_318 = arith.constant 3 : index
    %c0_319 = arith.constant 0 : index
    %c0_320 = arith.constant 0 : index
    %479 = vector.load %arg10[%c3_318, %c0_319, %c0_320] : memref<4x8x16xf32, #tpu.memory_space<vmem>>, vector<1x8x16xf32>
    %480 = vector.shape_cast %479 : vector<1x8x16xf32> to vector<8x16xf32>
    %481 = vector.shape_cast %478 : vector<8x16xf32> to vector<1x8x16xf32>
    tpu.vector_store %arg10[%c3_318, %c0_319, %c0_320], %481 {strides = array<i32>} : memref<4x8x16xf32, #tpu.memory_space<vmem>>, vector<1x8x16xf32>,
    %c448 = arith.constant 448 : index
    %c0_321 = arith.constant 0 : index
    %482 = vector.load %arg4[%c448, %c0_321] : memref<672x128xbf16, #tpu.memory_space<vmem>>, vector<32x16xbf16>
    %c19 = arith.constant 19 : index
    %c0_322 = arith.constant 0 : index
    %483 = vector.load %arg5[%c19, %c0_322] : memref<32x128xf32, #tpu.memory_space<vmem>>, vector<1x16xf32>
    %cst_323 = arith.constant dense<0.000000e+00> : vector<16x16xf32>
    %484 = tpu.matmul %429, %482, %cst_323 {dimension_numbers = #tpu.dot_dimension_numbers<[1], [0], [0], [1], [0, 0, 1, 1], [], []>} : vector<16x32xbf16>, vector<32x16xbf16>, vector<16x16xf32> -> vector<16x16xf32>
    %485 = vector.broadcast %483 : vector<1x16xf32> to vector<16x16xf32>
    %486 = arith.addf %484, %485 : vector<16x16xf32>
    %487 = vector.extract_strided_slice %486 {offsets = [0, 0], sizes = [8, 16], strides = [1, 1]} : vector<16x16xf32> to vector<8x16xf32>
    %c0_324 = arith.constant 0 : index
    %c0_325 = arith.constant 0 : index
    %c0_326 = arith.constant 0 : index
    %488 = vector.load %arg11[%c0_324, %c0_325, %c0_326] : memref<4x8x16xf32, #tpu.memory_space<vmem>>, vector<1x8x16xf32>
    %489 = vector.shape_cast %488 : vector<1x8x16xf32> to vector<8x16xf32>
    %490 = vector.shape_cast %487 : vector<8x16xf32> to vector<1x8x16xf32>
    tpu.vector_store %arg11[%c0_324, %c0_325, %c0_326], %490 {strides = array<i32>} : memref<4x8x16xf32, #tpu.memory_space<vmem>>, vector<1x8x16xf32>,
    %491 = vector.extract_strided_slice %486 {offsets = [8, 0], sizes = [8, 16], strides = [1, 1]} : vector<16x16xf32> to vector<8x16xf32>
    %c2_327 = arith.constant 2 : index
    %c0_328 = arith.constant 0 : index
    %c0_329 = arith.constant 0 : index
    %492 = vector.load %arg11[%c2_327, %c0_328, %c0_329] : memref<4x8x16xf32, #tpu.memory_space<vmem>>, vector<1x8x16xf32>
    %493 = vector.shape_cast %492 : vector<1x8x16xf32> to vector<8x16xf32>
    %494 = vector.shape_cast %491 : vector<8x16xf32> to vector<1x8x16xf32>
    tpu.vector_store %arg11[%c2_327, %c0_328, %c0_329], %494 {strides = array<i32>} : memref<4x8x16xf32, #tpu.memory_space<vmem>>, vector<1x8x16xf32>,
    %c480 = arith.constant 480 : index
    %c0_330 = arith.constant 0 : index
    %495 = vector.load %arg4[%c480, %c0_330] : memref<672x128xbf16, #tpu.memory_space<vmem>>, vector<32x16xbf16>
    %c20 = arith.constant 20 : index
    %c0_331 = arith.constant 0 : index
    %496 = vector.load %arg5[%c20, %c0_331] : memref<32x128xf32, #tpu.memory_space<vmem>>, vector<1x16xf32>
    %cst_332 = arith.constant dense<0.000000e+00> : vector<16x16xf32>
    %497 = tpu.matmul %429, %495, %cst_332 {dimension_numbers = #tpu.dot_dimension_numbers<[1], [0], [0], [1], [0, 0, 1, 1], [], []>} : vector<16x32xbf16>, vector<32x16xbf16>, vector<16x16xf32> -> vector<16x16xf32>
    %498 = vector.broadcast %496 : vector<1x16xf32> to vector<16x16xf32>
    %499 = arith.addf %497, %498 : vector<16x16xf32>
    %500 = vector.extract_strided_slice %499 {offsets = [0, 0], sizes = [8, 16], strides = [1, 1]} : vector<16x16xf32> to vector<8x16xf32>
    %c1_333 = arith.constant 1 : index
    %c0_334 = arith.constant 0 : index
    %c0_335 = arith.constant 0 : index
    %501 = vector.load %arg11[%c1_333, %c0_334, %c0_335] : memref<4x8x16xf32, #tpu.memory_space<vmem>>, vector<1x8x16xf32>
    %502 = vector.shape_cast %501 : vector<1x8x16xf32> to vector<8x16xf32>
    %503 = vector.shape_cast %500 : vector<8x16xf32> to vector<1x8x16xf32>
    tpu.vector_store %arg11[%c1_333, %c0_334, %c0_335], %503 {strides = array<i32>} : memref<4x8x16xf32, #tpu.memory_space<vmem>>, vector<1x8x16xf32>,
    %504 = vector.extract_strided_slice %499 {offsets = [8, 0], sizes = [8, 16], strides = [1, 1]} : vector<16x16xf32> to vector<8x16xf32>
    %c3_336 = arith.constant 3 : index
    %c0_337 = arith.constant 0 : index
    %c0_338 = arith.constant 0 : index
    %505 = vector.load %arg11[%c3_336, %c0_337, %c0_338] : memref<4x8x16xf32, #tpu.memory_space<vmem>>, vector<1x8x16xf32>
    %506 = vector.shape_cast %505 : vector<1x8x16xf32> to vector<8x16xf32>
    %507 = vector.shape_cast %504 : vector<8x16xf32> to vector<1x8x16xf32>
    tpu.vector_store %arg11[%c3_336, %c0_337, %c0_338], %507 {strides = array<i32>} : memref<4x8x16xf32, #tpu.memory_space<vmem>>, vector<1x8x16xf32>,
    %c0_339 = arith.constant 0 : index
    %c0_340 = arith.constant 0 : index
    %c0_341 = arith.constant 0 : index
    %508 = vector.load %arg9[%c0_339, %c0_340, %c0_341] : memref<4x8x16xf32, #tpu.memory_space<vmem>>, vector<4x8x16xf32>
    %509 = arith.truncf %508 : vector<4x8x16xf32> to vector<4x8x16xbf16>
    %c0_342 = arith.constant 0 : index
    %c0_343 = arith.constant 0 : index
    %c0_344 = arith.constant 0 : index
    %510 = vector.load %arg10[%c0_342, %c0_343, %c0_344] : memref<4x8x16xf32, #tpu.memory_space<vmem>>, vector<4x8x16xf32>
    %511 = arith.truncf %510 : vector<4x8x16xf32> to vector<4x8x16xbf16>
    "tpu.trace_start"() <{level = 10 : i32, message = "bqd,bkd->bqk"}> : () -> ()
    %cst_345 = arith.constant dense<0.000000e+00> : vector<4x8x8xf32>
    %512 = tpu.matmul %509, %511, %cst_345 {dimension_numbers = #tpu.dot_dimension_numbers<[2], [2], [1], [1], [0, 0, 0, 1, 1, 1], [0], [0]>} : vector<4x8x16xbf16>, vector<4x8x16xbf16>, vector<4x8x8xf32> -> vector<4x8x8xf32>
    "tpu.trace_stop"() : () -> ()
    %cst_346 = arith.constant 2.500000e-01 : f32
    %513 = vector.broadcast %cst_346 : f32 to vector<4x8x8xf32>
    %514 = arith.mulf %512, %513 : vector<4x8x8xf32>
    %c0_347 = arith.constant 0 : index
    %c0_348 = arith.constant 0 : index
    %c0_349 = arith.constant 0 : index
    %515 = vector.load %arg12[%c0_347, %c0_348, %c0_349] : memref<4x8x8xf32, #tpu.memory_space<vmem>>, vector<4x8x8xf32>
    %516 = arith.addf %514, %515 : vector<4x8x8xf32>
    %cst_350 = arith.constant dense<0xFF800000> : vector<4x8xf32>
    %517 = vector.multi_reduction <maximumf>, %516, %cst_350 [2] : vector<4x8x8xf32> to vector<4x8xf32>
    %518 = vector.shape_cast %517 : vector<4x8xf32> to vector<4x8x1xf32>
    %519 = vector.broadcast %518 : vector<4x8x1xf32> to vector<4x8x8xf32>
    %520 = arith.subf %516, %519 : vector<4x8x8xf32>
    %521 = math.exp %520 : vector<4x8x8xf32>
    %cst_351 = arith.constant dense<0.000000e+00> : vector<4x8xf32>
    %522 = vector.multi_reduction <add>, %521, %cst_351 [2] : vector<4x8x8xf32> to vector<4x8xf32>
    %523 = vector.shape_cast %522 : vector<4x8xf32> to vector<4x8x1xf32>
    %524 = tpu.reciprocal %523 {approx = true} : vector<4x8x1xf32> -> vector<4x8x1xf32>
    %525 = vector.broadcast %524 : vector<4x8x1xf32> to vector<4x8x8xf32>
    %526 = arith.mulf %521, %525 : vector<4x8x8xf32>
    %527 = arith.truncf %526 : vector<4x8x8xf32> to vector<4x8x8xbf16>
    %c0_352 = arith.constant 0 : index
    %c0_353 = arith.constant 0 : index
    %c0_354 = arith.constant 0 : index
    %528 = vector.load %arg11[%c0_352, %c0_353, %c0_354] : memref<4x8x16xf32, #tpu.memory_space<vmem>>, vector<4x8x16xf32>
    %529 = arith.truncf %528 : vector<4x8x16xf32> to vector<4x8x16xbf16>
    "tpu.trace_start"() <{level = 10 : i32, message = "bqk,bkd->bqd"}> : () -> ()
    %cst_355 = arith.constant dense<0.000000e+00> : vector<4x8x16xf32>
    %530 = tpu.matmul %527, %529, %cst_355 {dimension_numbers = #tpu.dot_dimension_numbers<[2], [1], [1], [2], [0, 0, 0, 1, 1, 2], [0], [0]>} : vector<4x8x8xbf16>, vector<4x8x16xbf16>, vector<4x8x16xf32> -> vector<4x8x16xf32>
    %cst_356 = arith.constant 0.000000e+00 : f32
    "tpu.trace_stop"() : () -> ()
    %531 = vector.broadcast %cst_356 : f32 to vector<8x32xf32>
    %532 = vector.extract_strided_slice %530 {offsets = [0, 0, 0], sizes = [1, 8, 16], strides = [1, 1, 1]} : vector<4x8x16xf32> to vector<1x8x16xf32>
    %533 = vector.shape_cast %532 : vector<1x8x16xf32> to vector<8x16xf32>
    %534 = arith.truncf %533 : vector<8x16xf32> to vector<8x16xbf16>
    %c512 = arith.constant 512 : index
    %c0_357 = arith.constant 0 : index
    %535 = vector.load %arg4[%c512, %c0_357] : memref<672x128xbf16, #tpu.memory_space<vmem>>, vector<16x32xbf16>
    %cst_358 = arith.constant dense<0.000000e+00> : vector<8x32xf32>
    %536 = tpu.matmul %534, %535, %cst_358 {dimension_numbers = #tpu.dot_dimension_numbers<[1], [0], [0], [1], [0, 0, 1, 1], [], []>} : vector<8x16xbf16>, vector<16x32xbf16>, vector<8x32xf32> -> vector<8x32xf32>
    %537 = arith.addf %531, %536 : vector<8x32xf32>
    %538 = vector.extract_strided_slice %530 {offsets = [1, 0, 0], sizes = [1, 8, 16], strides = [1, 1, 1]} : vector<4x8x16xf32> to vector<1x8x16xf32>
    %539 = vector.shape_cast %538 : vector<1x8x16xf32> to vector<8x16xf32>
    %540 = arith.truncf %539 : vector<8x16xf32> to vector<8x16xbf16>
    %c528 = arith.constant 528 : index
    %c0_359 = arith.constant 0 : index
    %541 = vector.load %arg4[%c528, %c0_359] : memref<672x128xbf16, #tpu.memory_space<vmem>>, vector<16x32xbf16>
    %cst_360 = arith.constant dense<0.000000e+00> : vector<8x32xf32>
    %542 = tpu.matmul %540, %541, %cst_360 {dimension_numbers = #tpu.dot_dimension_numbers<[1], [0], [0], [1], [0, 0, 1, 1], [], []>} : vector<8x16xbf16>, vector<16x32xbf16>, vector<8x32xf32> -> vector<8x32xf32>
    %543 = arith.addf %537, %542 : vector<8x32xf32>
    %c0_361 = arith.constant 0 : index
    %c0_362 = arith.constant 0 : index
    %544 = vector.load %arg13[%c0_361, %c0_362] : memref<16x32xf32, #tpu.memory_space<vmem>>, vector<8x32xf32>
    tpu.vector_store %arg13[%c0_361, %c0_362], %543 {strides = array<i32>} : memref<16x32xf32, #tpu.memory_space<vmem>>, vector<8x32xf32>,
    %cst_363 = arith.constant 0.000000e+00 : f32
    %545 = vector.broadcast %cst_363 : f32 to vector<8x32xf32>
    %546 = vector.extract_strided_slice %530 {offsets = [2, 0, 0], sizes = [1, 8, 16], strides = [1, 1, 1]} : vector<4x8x16xf32> to vector<1x8x16xf32>
    %547 = vector.shape_cast %546 : vector<1x8x16xf32> to vector<8x16xf32>
    %548 = arith.truncf %547 : vector<8x16xf32> to vector<8x16xbf16>
    %c512_364 = arith.constant 512 : index
    %c0_365 = arith.constant 0 : index
    %549 = vector.load %arg4[%c512_364, %c0_365] : memref<672x128xbf16, #tpu.memory_space<vmem>>, vector<16x32xbf16>
    %cst_366 = arith.constant dense<0.000000e+00> : vector<8x32xf32>
    %550 = tpu.matmul %548, %549, %cst_366 {dimension_numbers = #tpu.dot_dimension_numbers<[1], [0], [0], [1], [0, 0, 1, 1], [], []>} : vector<8x16xbf16>, vector<16x32xbf16>, vector<8x32xf32> -> vector<8x32xf32>
    %551 = arith.addf %545, %550 : vector<8x32xf32>
    %552 = vector.extract_strided_slice %530 {offsets = [3, 0, 0], sizes = [1, 8, 16], strides = [1, 1, 1]} : vector<4x8x16xf32> to vector<1x8x16xf32>
    %553 = vector.shape_cast %552 : vector<1x8x16xf32> to vector<8x16xf32>
    %554 = arith.truncf %553 : vector<8x16xf32> to vector<8x16xbf16>
    %c528_367 = arith.constant 528 : index
    %c0_368 = arith.constant 0 : index
    %555 = vector.load %arg4[%c528_367, %c0_368] : memref<672x128xbf16, #tpu.memory_space<vmem>>, vector<16x32xbf16>
    %cst_369 = arith.constant dense<0.000000e+00> : vector<8x32xf32>
    %556 = tpu.matmul %554, %555, %cst_369 {dimension_numbers = #tpu.dot_dimension_numbers<[1], [0], [0], [1], [0, 0, 1, 1], [], []>} : vector<8x16xbf16>, vector<16x32xbf16>, vector<8x32xf32> -> vector<8x32xf32>
    %557 = arith.addf %551, %556 : vector<8x32xf32>
    %c8_370 = arith.constant 8 : index
    %c0_371 = arith.constant 0 : index
    %558 = vector.load %arg13[%c8_370, %c0_371] : memref<16x32xf32, #tpu.memory_space<vmem>>, vector<8x32xf32>
    tpu.vector_store %arg13[%c8_370, %c0_371], %557 {strides = array<i32>} : memref<16x32xf32, #tpu.memory_space<vmem>>, vector<8x32xf32>,
    %c0_372 = arith.constant 0 : index
    %c0_373 = arith.constant 0 : index
    %559 = vector.load %arg13[%c0_372, %c0_373] : memref<16x32xf32, #tpu.memory_space<vmem>>, vector<16x32xf32>
    %c21 = arith.constant 21 : index
    %c0_374 = arith.constant 0 : index
    %560 = vector.load %arg5[%c21, %c0_374] : memref<32x128xf32, #tpu.memory_space<vmem>>, vector<1x32xf32>
    %561 = vector.broadcast %560 : vector<1x32xf32> to vector<16x32xf32>
    %562 = arith.addf %559, %561 : vector<16x32xf32>
    %563 = arith.addf %562, %428 : vector<16x32xf32>
    %c22 = arith.constant 22 : index
    %c0_375 = arith.constant 0 : index
    %564 = vector.load %arg5[%c22, %c0_375] : memref<32x128xf32, #tpu.memory_space<vmem>>, vector<1x32xf32>
    %c23 = arith.constant 23 : index
    %c0_376 = arith.constant 0 : index
    %565 = vector.load %arg5[%c23, %c0_376] : memref<32x128xf32, #tpu.memory_space<vmem>>, vector<1x32xf32>
    %cst_377 = arith.constant dense<0.000000e+00> : vector<16xf32>
    %566 = vector.multi_reduction <add>, %563, %cst_377 [1] : vector<16x32xf32> to vector<16xf32>
    %567 = vector.shape_cast %566 : vector<16xf32> to vector<16x1xf32>
    %cst_378 = arith.constant 3.200000e+01 : f32
    %568 = vector.broadcast %cst_378 : f32 to vector<16x1xf32>
    %569 = arith.divf %567, %568 : vector<16x1xf32>
    %570 = vector.broadcast %569 : vector<16x1xf32> to vector<16x32xf32>
    %571 = arith.subf %563, %570 : vector<16x32xf32>
    %572 = arith.mulf %571, %571 : vector<16x32xf32>
    %cst_379 = arith.constant dense<0.000000e+00> : vector<16xf32>
    %573 = vector.multi_reduction <add>, %572, %cst_379 [1] : vector<16x32xf32> to vector<16xf32>
    %574 = vector.shape_cast %573 : vector<16xf32> to vector<16x1xf32>
    %cst_380 = arith.constant 3.200000e+01 : f32
    %575 = vector.broadcast %cst_380 : f32 to vector<16x1xf32>
    %576 = arith.divf %574, %575 : vector<16x1xf32>
    %cst_381 = arith.constant 9.99999996E-13 : f32
    %577 = vector.broadcast %cst_381 : f32 to vector<16x1xf32>
    %578 = arith.addf %576, %577 : vector<16x1xf32>
    %579 = math.rsqrt %578 : vector<16x1xf32>
    %580 = vector.broadcast %579 : vector<16x1xf32> to vector<16x32xf32>
    %581 = arith.mulf %571, %580 : vector<16x32xf32>
    %582 = vector.broadcast %564 : vector<1x32xf32> to vector<16x32xf32>
    %583 = arith.mulf %581, %582 : vector<16x32xf32>
    %584 = vector.broadcast %565 : vector<1x32xf32> to vector<16x32xf32>
    %585 = arith.addf %583, %584 : vector<16x32xf32>
    %586 = arith.truncf %585 : vector<16x32xf32> to vector<16x32xbf16>
    %c544 = arith.constant 544 : index
    %c0_382 = arith.constant 0 : index
    %587 = vector.load %arg4[%c544, %c0_382] : memref<672x128xbf16, #tpu.memory_space<vmem>>, vector<32x64xbf16>
    %cst_383 = arith.constant dense<0.000000e+00> : vector<16x64xf32>
    %588 = tpu.matmul %586, %587, %cst_383 {dimension_numbers = #tpu.dot_dimension_numbers<[1], [0], [0], [1], [0, 0, 1, 1], [], []>} : vector<16x32xbf16>, vector<32x64xbf16>, vector<16x64xf32> -> vector<16x64xf32>
    %c24 = arith.constant 24 : index
    %c0_384 = arith.constant 0 : index
    %589 = vector.load %arg5[%c24, %c0_384] : memref<32x128xf32, #tpu.memory_space<vmem>>, vector<1x64xf32>
    %590 = vector.broadcast %589 : vector<1x64xf32> to vector<16x64xf32>
    %591 = arith.addf %588, %590 : vector<16x64xf32>
    %cst_385 = arith.constant 5.000000e-01 : f32
    %592 = vector.broadcast %cst_385 : f32 to vector<16x64xf32>
    %593 = arith.mulf %592, %591 : vector<16x64xf32>
    %cst_386 = arith.constant 0.707106769 : f32
    %594 = vector.broadcast %cst_386 : f32 to vector<16x64xf32>
    %595 = arith.mulf %591, %594 : vector<16x64xf32>
    %596 = math.erf %595 : vector<16x64xf32>
    %cst_387 = arith.constant 1.000000e+00 : f32
    %597 = vector.broadcast %cst_387 : f32 to vector<16x64xf32>
    %598 = arith.addf %597, %596 : vector<16x64xf32>
    %599 = arith.mulf %593, %598 : vector<16x64xf32>
    %600 = arith.truncf %599 : vector<16x64xf32> to vector<16x64xbf16>
    %c576 = arith.constant 576 : index
    %c0_388 = arith.constant 0 : index
    %601 = vector.load %arg4[%c576, %c0_388] : memref<672x128xbf16, #tpu.memory_space<vmem>>, vector<64x32xbf16>
    %cst_389 = arith.constant dense<0.000000e+00> : vector<16x32xf32>
    %602 = tpu.matmul %600, %601, %cst_389 {dimension_numbers = #tpu.dot_dimension_numbers<[1], [0], [0], [1], [0, 0, 1, 1], [], []>} : vector<16x64xbf16>, vector<64x32xbf16>, vector<16x32xf32> -> vector<16x32xf32>
    %c25 = arith.constant 25 : index
    %c0_390 = arith.constant 0 : index
    %603 = vector.load %arg5[%c25, %c0_390] : memref<32x128xf32, #tpu.memory_space<vmem>>, vector<1x32xf32>
    %604 = vector.broadcast %603 : vector<1x32xf32> to vector<16x32xf32>
    %605 = arith.addf %602, %604 : vector<16x32xf32>
    %606 = arith.addf %605, %585 : vector<16x32xf32>
    %c26 = arith.constant 26 : index
    %c0_391 = arith.constant 0 : index
    %607 = vector.load %arg5[%c26, %c0_391] : memref<32x128xf32, #tpu.memory_space<vmem>>, vector<1x32xf32>
    %c27 = arith.constant 27 : index
    %c0_392 = arith.constant 0 : index
    %608 = vector.load %arg5[%c27, %c0_392] : memref<32x128xf32, #tpu.memory_space<vmem>>, vector<1x32xf32>
    %cst_393 = arith.constant dense<0.000000e+00> : vector<16xf32>
    %609 = vector.multi_reduction <add>, %606, %cst_393 [1] : vector<16x32xf32> to vector<16xf32>
    %610 = vector.shape_cast %609 : vector<16xf32> to vector<16x1xf32>
    %cst_394 = arith.constant 3.200000e+01 : f32
    %611 = vector.broadcast %cst_394 : f32 to vector<16x1xf32>
    %612 = arith.divf %610, %611 : vector<16x1xf32>
    %613 = vector.broadcast %612 : vector<16x1xf32> to vector<16x32xf32>
    %614 = arith.subf %606, %613 : vector<16x32xf32>
    %615 = arith.mulf %614, %614 : vector<16x32xf32>
    %cst_395 = arith.constant dense<0.000000e+00> : vector<16xf32>
    %616 = vector.multi_reduction <add>, %615, %cst_395 [1] : vector<16x32xf32> to vector<16xf32>
    %617 = vector.shape_cast %616 : vector<16xf32> to vector<16x1xf32>
    %cst_396 = arith.constant 3.200000e+01 : f32
    %618 = vector.broadcast %cst_396 : f32 to vector<16x1xf32>
    %619 = arith.divf %617, %618 : vector<16x1xf32>
    %cst_397 = arith.constant 9.99999996E-13 : f32
    %620 = vector.broadcast %cst_397 : f32 to vector<16x1xf32>
    %621 = arith.addf %619, %620 : vector<16x1xf32>
    %622 = math.rsqrt %621 : vector<16x1xf32>
    %623 = vector.broadcast %622 : vector<16x1xf32> to vector<16x32xf32>
    %624 = arith.mulf %614, %623 : vector<16x32xf32>
    %625 = vector.broadcast %607 : vector<1x32xf32> to vector<16x32xf32>
    %626 = arith.mulf %624, %625 : vector<16x32xf32>
    %627 = vector.broadcast %608 : vector<1x32xf32> to vector<16x32xf32>
    %628 = arith.addf %626, %627 : vector<16x32xf32>
    %c0_398 = arith.constant 0 : index
    %c0_399 = arith.constant 0 : index
    %629 = vector.load %arg8[%c0_398, %c0_399] : memref<16x32xf32, #tpu.memory_space<vmem>>, vector<16x32xf32>
    tpu.vector_store %arg8[%c0_398, %c0_399], %628 {strides = array<i32>} : memref<16x32xf32, #tpu.memory_space<vmem>>, vector<16x32xf32>,
    %c0_400 = arith.constant 0 : index
    %c0_401 = arith.constant 0 : index
    %630 = tpu.strided_load %arg8[%c0_400, %c0_401] {strides = array<i32: 8, 1>} : memref<16x32xf32, #tpu.memory_space<vmem>>, vector<2x32xf32>
    %631 = arith.truncf %630 : vector<2x32xf32> to vector<2x32xbf16>
    %c640 = arith.constant 640 : index
    %c0_402 = arith.constant 0 : index
    %632 = vector.load %arg4[%c640, %c0_402] : memref<672x128xbf16, #tpu.memory_space<vmem>>, vector<32x32xbf16>
    %cst_403 = arith.constant dense<0.000000e+00> : vector<2x32xf32>
    %633 = tpu.matmul %631, %632, %cst_403 {dimension_numbers = #tpu.dot_dimension_numbers<[1], [0], [0], [1], [0, 0, 1, 1], [], []>} : vector<2x32xbf16>, vector<32x32xbf16>, vector<2x32xf32> -> vector<2x32xf32>
    %c28 = arith.constant 28 : index
    %c0_404 = arith.constant 0 : index
    %634 = vector.load %arg5[%c28, %c0_404] : memref<32x128xf32, #tpu.memory_space<vmem>>, vector<1x32xf32>
    %635 = vector.broadcast %634 : vector<1x32xf32> to vector<2x32xf32>
    %636 = arith.addf %633, %635 : vector<2x32xf32>
    %637 = math.tanh %636 : vector<2x32xf32>
    %c29 = arith.constant 29 : index
    %c0_405 = arith.constant 0 : index
    %638 = vector.load %arg5[%c29, %c0_405] : memref<32x128xf32, #tpu.memory_space<vmem>>, vector<1x32xf32>
    %639 = vector.broadcast %638 : vector<1x32xf32> to vector<2x32xf32>
    %640 = arith.mulf %637, %639 : vector<2x32xf32>
    %cst_406 = arith.constant dense<0.000000e+00> : vector<2xf32>
    %641 = vector.multi_reduction <add>, %640, %cst_406 [1] : vector<2x32xf32> to vector<2xf32>
    %642 = vector.shape_cast %641 : vector<2xf32> to vector<2x1xf32>
    %c30 = arith.constant 30 : index
    %c0_407 = arith.constant 0 : index
    %643 = vector.load %arg5[%c30, %c0_407] : memref<32x128xf32, #tpu.memory_space<vmem>>, vector<1x1xf32>
    %644 = vector.broadcast %643 : vector<1x1xf32> to vector<2x1xf32>
    %645 = arith.addf %642, %644 : vector<2x1xf32>
    %c0_408 = arith.constant 0 : index
    %c0_409 = arith.constant 0 : index
    %646 = vector.load %arg6[%c0_408, %c0_409] : memref<8x128xf32, #tpu.memory_space<vmem>>, vector<2x1xf32>
    %cst_410 = arith.constant 0.000000e+00 : f32
    %647 = vector.broadcast %cst_410 : f32 to vector<2x1xf32>
    %648 = arith.maximumf %645, %647 : vector<2x1xf32>
    %649 = arith.mulf %645, %646 : vector<2x1xf32>
    %650 = arith.subf %648, %649 : vector<2x1xf32>
    %651 = math.absf %645 : vector<2x1xf32>
    %cst_411 = arith.constant 0.000000e+00 : f32
    %652 = vector.broadcast %cst_411 : f32 to vector<2x1xf32>
    %653 = arith.subf %652, %651 : vector<2x1xf32>
    %654 = math.exp %653 : vector<2x1xf32>
    %cst_412 = arith.constant 1.000000e+00 : f32
    %655 = vector.broadcast %cst_412 : f32 to vector<2x1xf32>
    %656 = arith.addf %655, %654 : vector<2x1xf32>
    %657 = math.log %656 : vector<2x1xf32>
    %658 = arith.addf %650, %657 : vector<2x1xf32>
    %cst_413 = arith.constant 0.000000e+00 : f32
    %659 = vector.broadcast %cst_413 : f32 to vector<8x128xf32>
    %c0_414 = arith.constant 0 : index
    %c0_415 = arith.constant 0 : index
    %660 = vector.load %arg7[%c0_414, %c0_415] : memref<8x128xf32, #tpu.memory_space<vmem>>, vector<8x128xf32>
    tpu.vector_store %arg7[%c0_414, %c0_415], %659 {strides = array<i32>} : memref<8x128xf32, #tpu.memory_space<vmem>>, vector<8x128xf32>,
    %c0_416 = arith.constant 0 : index
    %c0_417 = arith.constant 0 : index
    %661 = vector.load %arg7[%c0_416, %c0_417] : memref<8x128xf32, #tpu.memory_space<vmem>>, vector<2x1xf32>
    tpu.vector_store %arg7[%c0_416, %c0_417], %645 {strides = array<i32>} : memref<8x128xf32, #tpu.memory_space<vmem>>, vector<2x1xf32>,
    %662 = vector.shape_cast %658 : vector<2x1xf32> to vector<1x2x1xf32>
    %cst_418 = arith.constant dense<0.000000e+00> : vector<1xf32>
    %663 = vector.multi_reduction <add>, %662, %cst_418 [1, 2] : vector<1x2x1xf32> to vector<1xf32>
    %664 = vector.shape_cast %663 : vector<1xf32> to vector<1x1x1xf32>
    %665 = vector.extract %664[0, 0, 0] : f32 from vector<1x1x1xf32>
    %666 = vector.broadcast %665 : f32 to vector<1x1xf32>
    %cst_419 = arith.constant 2.000000e+00 : f32
    %667 = vector.broadcast %cst_419 : f32 to vector<1x1xf32>
    %668 = arith.divf %666, %667 : vector<1x1xf32>
    %c2_420 = arith.constant 2 : index
    %c0_421 = arith.constant 0 : index
    %669 = vector.load %arg7[%c2_420, %c0_421] : memref<8x128xf32, #tpu.memory_space<vmem>>, vector<1x1xf32>
    tpu.vector_store %arg7[%c2_420, %c0_421], %668 {strides = array<i32>} : memref<8x128xf32, #tpu.memory_space<vmem>>, vector<1x1xf32>,
    return
  }
  func.func @transform_0(%arg0: i32, %arg1: memref<16xi32, #tpu.memory_space<smem>>, %arg2: memref<16xi32, #tpu.memory_space<smem>>) -> (i32, i32) {
    %c0_i32 = arith.constant 0 : i32
    %c0_i32_0 = arith.constant 0 : i32
    %c0_i32_1 = arith.constant 0 : i32
    return %c0_i32, %c0_i32_0 : i32, i32
  }
  func.func @transform_1(%arg0: i32, %arg1: memref<16xi32, #tpu.memory_space<smem>>, %arg2: memref<16xi32, #tpu.memory_space<smem>>) -> (i32, i32) {
    %c0_i32 = arith.constant 0 : i32
    %c0_i32_0 = arith.constant 0 : i32
    %c0_i32_1 = arith.constant 0 : i32
    return %c0_i32, %c0_i32_0 : i32, i32
  }
  func.func @transform_2(%arg0: i32, %arg1: memref<16xi32, #tpu.memory_space<smem>>, %arg2: memref<16xi32, #tpu.memory_space<smem>>) -> (i32, i32) {
    %c0_i32 = arith.constant 0 : i32
    %c0_i32_0 = arith.constant 0 : i32
    %c0_i32_1 = arith.constant 0 : i32
    return %c0_i32, %c0_i32_0 : i32, i32
  }
  func.func @transform_3(%arg0: i32, %arg1: memref<16xi32, #tpu.memory_space<smem>>, %arg2: memref<16xi32, #tpu.memory_space<smem>>) -> (i32, i32) {
    %c0_i32 = arith.constant 0 : i32
    %c0_i32_0 = arith.constant 0 : i32
    %c0_i32_1 = arith.constant 0 : i32
    return %c0_i32, %c0_i32_0 : i32, i32
  }
  func.func @transform_4(%arg0: i32, %arg1: memref<16xi32, #tpu.memory_space<smem>>, %arg2: memref<16xi32, #tpu.memory_space<smem>>) -> (i32, i32) {
    %c0_i32 = arith.constant 0 : i32
    %c0_i32_0 = arith.constant 0 : i32
    %c0_i32_1 = arith.constant 0 : i32
    return %c0_i32, %c0_i32_0 : i32, i32
  }
}

</mosaic_0001>

<bundles_post_ra>
// kernel: rte_forward.1
= control target key start
LH: loop header
LB: loop body
LE: loop exit
PB: predicated region body
PF: predicated region fallthrough
CT: control target
= control target key end

     0   :  { %s4511_s0 = inlined_call_operand.vmem [shape: s32[16], index: 0, kind: input, shape index: {}]   ;;  %s4512_s2 = inlined_call_operand.vmem [shape: f32[118,32], index: 2, kind: input, shape index: {}]   ;;  %s4513_s3 = inlined_call_operand.hbm [shape: bf16[672,128], index: 3, kind: input, shape index: {}]   ;;  %s4514_s4 = inlined_call_operand.vmem [shape: f32[32,128], index: 4, kind: input, shape index: {}]   ;;  %s4515_s5 = inlined_call_operand.vmem [shape: f32[8,128], index: 5, kind: input, shape index: {}]   ;;  %s4516_s6 = inlined_call_operand.vmem [shape: f32[8,128], index: 6, kind: output, shape index: {}]   ;;  %s4517_s1 = inlined_call_operand.vmem [shape: s32[16], index: 1, kind: input, shape index: {}]  }
   0x1   :  { %s11_s23 = sshll.u32 %s4511_s0, 4  ;;  %s15_s26 = sshll.u32 %s4517_s1, 4  ;;  %s12_s23 = int_to_ptr.vmem [resolvable:$true] %s11_s23  ;;  %s16_s26 = int_to_ptr.vmem [resolvable:$true] %s15_s26 }
   0x2   :  { %s3770_s27 = scalar_lea.vmem %s12_s23, 16  ;;  %p3775_p1 = scmp.lt.s32.totalorder %s12_s23, %s12_s23 }
   0x3   :  { %p3771_p0 = scmp.ne.s32.totalorder %s12_s23, %s3770_s27  ;;  %p3776_p2 = scmp.lt.s32.totalorder %s3770_s27, %s3770_s27 }
   0x5   :  { %p3777_p3 = por %p3776_p2, %p3775_p1 }
   0x7   :  { %p3778_p4 = pnand %p3777_p3, %p3771_p0 }
   0x9   :  { %3781 = shalt.err (!%p3778_p4)  }
   0xa   :  { %s3820_s28 = smov [#allocation9]   ;;  %s3782_s29 = scalar_lea.vmem %s16_s26, 16 }
   0xb   :  { %14 = dma.vmem_to_smem %s12_s23, 16, %s3820_s28, [#allocation8] }
   0xc   :  { %p3783_p5 = scmp.ne.s32.totalorder %s16_s26, %s3782_s29  ;;  %p3787_p6 = scmp.lt.s32.totalorder %s16_s26, %s16_s26 }
   0xd   :  { %p3788_p7 = scmp.lt.s32.totalorder %s3782_s29, %s3782_s29 }
   0xf   :  { %p3789_p8 = por %p3788_p7, %p3787_p6 }
  0x11   :  { %p3790_p9 = pnand %p3789_p8, %p3783_p5 }
  0x13   :  { %3793 = shalt.err (!%p3790_p9)  }
  0x14   :  { %s3821_s0 = smov [#allocation10]  }
  0x15   :  { %18 = dma.vmem_to_smem %s16_s26, 16, %s3821_s0, [#allocation8] }
  0x16   :  { %3816 = dma.done.wait [#allocation8], 32 }
  0x17   :  { %3817 = vsyncadd [#allocation8], 4294967264 }
  0x18   :  { %20 = sfence }
  0x19   :  { %21 = vsyncpa [#allocation12], 0  ;;  %s3822_s1 = smov [#allocation11]   ;;  %s3794_s9 = scalar_lea.hbm %s4513_s3, 5376 }
  0x1a   :  { %s29_s30 = sshll.u32 %s3822_s1, 4  ;;  %p3795_p10 = scmp.ne.s32.totalorder %s4513_s3, %s3794_s9  ;;  %s30_s30 = int_to_ptr.vmem [resolvable:$true] %s29_s30 }
  0x1b   :  { %p3798_p11 = scmp.lt.u32.totalorder %s3794_s9, %s4513_s3 }
  0x1d   :  { %p3800_p12 = pnand %p3798_p11, %p3795_p10 }
  0x1f   :  { %3803 = shalt.err (!%p3800_p12)
}
  0x20   :  { %s3804_s14 = scalar_lea.vmem %s30_s30, 5376  ;;  %p3809_p0 = scmp.lt.s32.totalorder %s30_s30, %s30_s30 }
  0x21   :  { %p3805_p13 = scmp.ne.s32.totalorder %s30_s30, %s3804_s14  ;;  %p3810_p1 = scmp.lt.s32.totalorder %s3804_s14, %s3804_s14 }
  0x23   :  { %p3811_p2 = por %p3810_p1, %p3809_p0 }
  0x25   :  { %p3812_p3 = pnand %p3811_p2, %p3805_p13 }
  0x27   :  { %3815 = shalt.err (!%p3812_p3)
}
  0x28   :  { %s3823_s15 = smov 64   ;;  %s3824_s16 = smov 4  }
  0x29   :  { %35 = dma.hbm_to_vmem [thread:$0]  %s4513_s3, 5376, %s30_s30, [#allocation12], %s3823_s15, %s3823_s15, %s3824_s16  }
  0x2a   :  { %3818 = dma.done.wait [#allocation12], 5376  }
  0x2b   :  { %3819 = vsyncadd [#allocation12], 4294961920  ;;  %s44_s19 = sld [smem:[#allocation9]]  ;;  %s3078_s21 = sld [smem:[#allocation9 + $0x1]]  ;;  %v48_v0 = vld [vmem:[%s4512_s2 + $0x64] sm:$0x1] }
  0x2c   :  { %s45_s20 = sld [smem:[#allocation10]]  ;;  %s3079_s22 = sld [smem:[#allocation10 + $0x1]]  ;;  %vm54_vm0 = vcmask 253952   ;;  %v60_v1 = vld [vmem:[%s4512_s2 + $0x65] sm:$0x1]  ;;  %vm225_vm1 = vcmask 261120  }
  0x2d   :  { %s3081_s23 = sld [smem:[#allocation9 + $0x2]]  ;;  %s3880_s25 = sld [smem:[#allocation9 + $0x3]]  ;;  %v71_v4 = vld [vmem:[%s4512_s2 + $0x66] sm:$0x1]  ;;  %v82_v8 = vld [vmem:[%s4512_s2 + $0x67] sm:$0x1] }
  0x2e   :  { %s3082_s24 = sld [smem:[#allocation10 + $0x2]]  ;;  %s3882_s26 = sld [smem:[#allocation10 + $0x3]]  ;;  %v93_v12 = vld [vmem:[%s4512_s2 + $0x68] sm:$0x1]  ;;  %v104_v17 = vld [vmem:[%s4512_s2 + $0x69] sm:$0x1] }
  0x2f   :  { %s3884_s27 = sld [smem:[#allocation9 + $0x4]]  ;;  %s3888_s29 = sld [smem:[#allocation9 + $0x5]]  ;;  %v115_v30 = vld [vmem:[%s4512_s2 + $0x6a] sm:$0x1]  ;;  %v126_v31 = vld [vmem:[%s4512_s2 + $0x6b] sm:$0x1] }
  0x30   :  { %s3886_s28 = sld [smem:[#allocation10 + $0x4]]  ;;  %s3890_s0 = sld [smem:[#allocation10 + $0x5]]  ;;  %v137_v32 = vld [vmem:[%s4512_s2 + $0x64] sm:$0x1]  ;;  %v148_v33 = vld [vmem:[%s4512_s2 + $0x65] sm:$0x1] }
  0x31   :  { %s46_s30 = scalar_lea.vmem %s4512_s2, %s44_s19  ;;  %s58_s16 = scalar_lea.vmem %s4512_s2, %s3078_s21  ;;  %v159_v35 = vld [vmem:[%s4512_s2 + $0x66] sm:$0x1]  ;;  %v170_v39 = vld [vmem:[%s4512_s2 + $0x67] sm:$0x1]  ;;  %v181_v60 = vld [vmem:[%s4512_s2 + $0x68] sm:$0x1] }
  0x32   :  { %s3030_s11 = scalar_lea.vmem %s4512_s2, %s45_s20  ;;  %v47_v2 = vld [vmem:[%s46_s30] sm:$0x1]  ;;  %s3033_s19 = scalar_lea.vmem %s4512_s2, %s3079_s22  ;;  %v192_v61 = vld [vmem:[%s4512_s2 + $0x69] sm:$0x1]  ;;  %v203_v62 = vld [vmem:[%s4512_s2 + $0x6a] sm:$0x1] }
  0x33   :  { %v3077_v3 = vld [vmem:[%s3030_s11 + $0x74] sm:$0x1]  ;;  %v49_v5 = vadd.f32 %v48_v0, %v47_v2  ;;  %v59_v6 = vld [vmem:[%s58_s16] sm:$0x1]  ;;  %s69_s7 = scalar_lea.vmem %s4512_s2, %s3081_s23  ;;  %s80_s13 = scalar_lea.vmem %s4512_s2, %s3880_s25  ;;  %v214_v63 = vld [vmem:[%s4512_s2 + $0x6b] sm:$0x1] }
  0x34   :  { %v3080_v7 = vld [vmem:[%s3033_s19 + $0x74] sm:$0x1]  ;;  %s3036_s21 = scalar_lea.vmem %s4512_s2, %s3082_s24  ;;  %v61_v9 = vadd.f32 %v60_v1, %v59_v6  ;;  %v70_v10 = vld [vmem:[%s69_s7] sm:$0x1]  ;;  %s3039_s23 = scalar_lea.vmem %s4512_s2, %s3882_s26  ;;  %vm3826_vm2 = vmmov 0   ;;  %vm357_vm3 = vcmask 130048  }
  0x35   :  { %v3083_v11 = vld [vmem:[%s3036_s21 + $0x74] sm:$0x1]  ;;  %v53_v13 = vadd.f32 %v3077_v3, %v49_v5  ;;  %v72_v14 = vadd.f32 %v71_v4, %v70_v10  ;;  %v81_v15 = vld [vmem:[%s80_s13] sm:$0x1]  ;;  %s91_s19 = scalar_lea.vmem %s4512_s2, %s3884_s27  ;;  %s102_s8 = scalar_lea.vmem %s4512_s2, %s3888_s29  ;;  %vm960_vm4 = vcmask 1043456   ;;  %vm274_vm5 = vcmask 64512  }
  0x36   :  { %v3086_v16 = vld [vmem:[%s3039_s23 + $0x74] sm:$0x1]  ;;  %s3042_s25 = scalar_lea.vmem %s4512_s2, %s3886_s28  ;;  %v65_v18 = vadd.f32 %v3080_v7, %v61_v9  ;;  %v83_v19 = vadd.f32 %v82_v8, %v81_v15  ;;  %v92_v20 = vld [vmem:[%s91_s19] sm:$0x1]  ;;  %s3045_s27 = scalar_lea.vmem %s4512_s2, %s3890_s0  ;;  %vm1517_vm6 = vcmask 523264   ;;  %vm2984_vm7 = vcmask 254976  }
  0x37   :  { %v3089_v21 = vld [vmem:[%s3042_s25 + $0x74] sm:$0x1]  ;;  %55 = vst.msk [vmem:[#allocation2] sm:$0x1] %vm54_vm0, %v53_v13  ;;  %v76_v22 = vadd.f32 %v3083_v11, %v72_v14  ;;  %v94_v23 = vadd.f32 %v93_v12, %v92_v20  ;;  %v103_v24 = vld [vmem:[%s102_s8] sm:$0x1] }
  0x38   :  { %v3092_v25 = vld [vmem:[%s3045_s27 + $0x74] sm:$0x1]  ;;  %s3093_s28 = sld [smem:[#allocation9 + $0x6]]  ;;  %66 = vst.msk [vmem:[#allocation2 + $0x1] sm:$0x1] %vm54_vm0, %v65_v18  ;;  %v87_v26 = vadd.f32 %v3086_v16, %v83_v19  ;;  %v105_v27 = vadd.f32 %v104_v17, %v103_v24  ;;  %s3096_s11 = sld [smem:[#allocation9 + $0x7]] }
  0x39   :  { %s3094_s10 = sld [smem:[#allocation10 + $0x6]]  ;;  %77 = vst.msk [vmem:[#allocation2 + $0x2] sm:$0x1] %vm54_vm0, %v76_v22  ;;  %v98_v28 = vadd.f32 %v3089_v21, %v94_v23  ;;  %s3955_s29 = sld [smem:[#allocation10 + $0x7]]  ;;  %vm3007_vm8 = vcmask 1024   ;;  %vm3022_vm9 = vcmask 0  }
  0x3a   :  { %s3957_s22 = sld [smem:[#allocation9 + $0x8]]  ;;  %88 = vst.msk [vmem:[#allocation2 + $0x3] sm:$0x1] %vm54_vm0, %v87_v26  ;;  %v109_v29 = vadd.f32 %v3092_v25, %v105_v27  ;;  %s3962_s12 = sld [smem:[#allocation9 + $0x9]] }
  0x3b   :  { %s3960_s0 = sld [smem:[#allocation10 + $0x8]]  ;;  %99 = vst.msk [vmem:[#allocation2 + $0x4] sm:$0x1] %vm54_vm0, %v98_v28  ;;  %s3968_s15 = sld [smem:[#allocation10 + $0x9]] }
  0x3c   :  { %s3970_s23 = sld [smem:[#allocation9 + $0xa]]  ;;  %110 = vst.msk [vmem:[#allocation2 + $0x5] sm:$0x1] %vm54_vm0, %v109_v29  ;;  %s3978_s18 = sld [smem:[#allocation9 + $0xb]] }
  0x3d   :  { %s3976_s24 = sld [smem:[#allocation10 + $0xa]]  ;;  %s3989_s7 = sld [smem:[#allocation10 + $0xb]] }
  0x3e   :  { %s113_s1 = scalar_lea.vmem %s4512_s2, %s3093_s28  ;;  %s124_s28 = scalar_lea.vmem %s4512_s2, %s3096_s11 }
  0x3f   :  { %v114_v34 = vld [vmem:[%s113_s1] sm:$0x1]  ;;  %s3048_s21 = scalar_lea.vmem %s4512_s2, %s3094_s10  ;;  %s3051_s3 = scalar_lea.vmem %s4512_s2, %s3955_s29 }
  0x40   :  { %v116_v36 = vadd.f32 %v115_v30, %v114_v34  ;;  %v3095_v37 = vld [vmem:[%s3048_s21 + $0x74] sm:$0x1]  ;;  %v125_v38 = vld [vmem:[%s124_s28] sm:$0x1]  ;;  %s135_s10 = scalar_lea.vmem %s4512_s2, %s3957_s22  ;;  %s146_s29 = scalar_lea.vmem %s4512_s2, %s3962_s12  ;;  %v3660_v34 = vld [vmem:[#allocation11 + $0x18] sm:$0xff]  }
  0x41   :  { %v127_v40 = vadd.f32 %v126_v31, %v125_v38  ;;  %v3098_v41 = vld [vmem:[%s3051_s3 + $0x74] sm:$0x1]  ;;  %v136_v42 = vld [vmem:[%s135_s10] sm:$0x1]  ;;  %s3054_s8 = scalar_lea.vmem %s4512_s2, %s3960_s0  ;;  %s3057_s13 = scalar_lea.vmem %s4512_s2, %s3968_s15 }
  0x42   :  { %v120_v43 = vadd.f32 %v3095_v37, %v116_v36  ;;  %v138_v44 = vadd.f32 %v137_v32, %v136_v42  ;;  %v3101_v45 = vld [vmem:[%s3054_s8 + $0x74] sm:$0x1]  ;;  %v147_v46 = vld [vmem:[%s146_s29] sm:$0x1]  ;;  %s157_s16 = scalar_lea.vmem %s4512_s2, %s3970_s23  ;;  %s168_s1 = scalar_lea.vmem %s4512_s2, %s3978_s18  ;;  %v3825_v32 = vmov 0.0  }
  0x43   :  { %v131_v47 = vadd.f32 %v3098_v41, %v127_v40  ;;  %v149_v48 = vadd.f32 %v148_v33, %v147_v46  ;;  %v3104_v49 = vld [vmem:[%s3057_s13 + $0x74] sm:$0x1]  ;;  %v158_v50 = vld [vmem:[%s157_s16] sm:$0x1]  ;;  %s3060_s17 = scalar_lea.vmem %s4512_s2, %s3976_s24  ;;  %s3063_s25 = scalar_lea.vmem %s4512_s2, %s3989_s7  ;;  %3344 = vmatprep.subr.bf16.mxu0 %v3825_v32  ;;  %3006 = vst [vmem:[%s4516_s6] sm:$0xff] %v3825_v32  ;;  %3352 = vmatprep.subr.bf16.mxu1 %v3825_v32  ;;  %v3659_v33 = vld [vmem:[#allocation11 + $0x8] sm:$0xff]  }
  0x44   :  { %121 = vst.msk [vmem:[#allocation2 + $0x6] sm:$0x1] %vm54_vm0, %v120_v43  ;;  %v142_v51 = vadd.f32 %v3101_v45, %v138_v44  ;;  %v160_v52 = vadd.f32 %v159_v35, %v158_v50  ;;  %v3107_v53 = vld [vmem:[%s3060_s17 + $0x74] sm:$0x1]  ;;  %v169_v54 = vld [vmem:[%s168_s1] sm:$0x1]  ;;  %3348 = vmatprep.mubr.msk.bf16.mxu0 %vm3826_vm2, %v3825_v32  ;;  %3356 = vmatprep.mubr.msk.bf16.mxu1 %vm3826_vm2, %v3825_v32 }
  0x45   :  { %s3111_s10 = sld [smem:[#allocation9 + $0xc]]  ;;  %132 = vst.msk [vmem:[#allocation2 + $0x7] sm:$0x1] %vm54_vm0, %v131_v47  ;;  %v153_v55 = vadd.f32 %v3104_v49, %v149_v48  ;;  %v171_v56 = vadd.f32 %v170_v39, %v169_v54  ;;  %v3110_v57 = vld [vmem:[%s3063_s25 + $0x74] sm:$0x1]  ;;  %s3114_s20 = sld [smem:[#allocation9 + $0xd]] }
  0x46   :  { %s3112_s24 = sld [smem:[#allocation10 + $0xc]]  ;;  %143 = vst.msk [vmem:[#allocation2 + $0x8] sm:$0x1] %vm54_vm0, %v142_v51  ;;  %v164_v58 = vadd.f32 %v3107_v53, %v160_v52  ;;  %s3115_s18 = sld [smem:[#allocation10 + $0xd]]  ;;  %v3657_v30 = vld [vmem:[#allocation11] sm:$0xff]   ;;  %v3658_v31 = vld [vmem:[#allocation11 + $0x10] sm:$0xff]  }
  0x47   :  { %s3117_s30 = sld [smem:[#allocation9 + $0xe]]  ;;  %154 = vst.msk [vmem:[#allocation2 + $0x9] sm:$0x1] %vm54_vm0, %v153_v55  ;;  %v175_v59 = vadd.f32 %v3110_v57, %v171_v56  ;;  %s3120_s8 = sld [smem:[#allocation9 + $0xf]]  ;;  %3345 = vmatpush3.bf16.msra.mxu0 %v3657_v30  ;;  %3353 = vmatpush3.bf16.msra.mxu1 %v3658_v31  ;;  %v3123_v40 = vld [vmem:[%s4514_s4] ss:$0 sm:$0xff] }
  0x48   :  { %s3118_s7 = sld [smem:[#allocation10 + $0xe]]  ;;  %165 = vst.msk [vmem:[#allocation2 + $0xa] sm:$0x1] %vm54_vm0, %v164_v58  ;;  %s3121_s29 = sld [smem:[#allocation10 + $0xf]]  ;;  %3346 = vmatprep.subr.bf16.mxu0 %v3825_v32  ;;  %3354 = vmatprep.subr.bf16.mxu1 %v3825_v32  ;;  %v3124_v43 = vld [vmem:[%s4514_s4 + $0x1] ss:$0 sm:$0xff] }
  0x49   :  { %176 = vst.msk [vmem:[#allocation2 + $0xb] sm:$0x1] %vm54_vm0, %v175_v59  ;;  %v3661_v51 = vld [vmem:[#allocation11 + $0x20] sm:$0xff]   ;;  %v3662_v54 = vld [vmem:[#allocation11 + $0x30] sm:$0xff]   ;;  %v3663_v56 = vld [vmem:[#allocation11 + $0x28] sm:$0xff]  }
  0x4a   :  { %v3664_v57 = vld [vmem:[#allocation11 + $0x38] sm:$0xff]   ;;  %v3665_v58 = vld [vmem:[#allocation11 + $0x40] sm:$0xff]   ;;  %v3666_v59 = vld [vmem:[#allocation11 + $0x50] sm:$0xff]  }
  0x4b   :  { %s179_s14 = scalar_lea.vmem %s4512_s2, %s3111_s10  ;;  %s190_s15 = scalar_lea.vmem %s4512_s2, %s3114_s20  ;;  %3347 = vmatpush3.bf16.msra.mxu0 %v3659_v33  ;;  %3355 = vmatpush3.bf16.msra.mxu1 %v3660_v34 }
  0x4c   :  { %v180_v0 = vld [vmem:[%s179_s14] sm:$0x1]  ;;  %s3066_s19 = scalar_lea.vmem %s4512_s2, %s3112_s24  ;;  %s3069_s10 = scalar_lea.vmem %s4512_s2, %s3115_s18  ;;  %3360 = vmatprep.subr.bf16.mxu0 %v3825_v32  ;;  %3368 = vmatprep.subr.bf16.mxu1 %v3825_v32 }
  0x4d   :  { %v221_v1 = vld [vmem:[#allocation2] sm:$0xff]  ;;  %v182_v2 = vadd.f32 %v181_v60, %v180_v0  ;;  %v3113_v3 = vld [vmem:[%s3066_s19 + $0x74] sm:$0x1]  ;;  %s201_s9 = scalar_lea.vmem %s4512_s2, %s3117_s30  ;;  %s212_s13 = scalar_lea.vmem %s4512_s2, %s3120_s8  ;;  %v3667_v60 = vld [vmem:[#allocation11 + $0x48] sm:$0xff]  }
  0x4e   :  { %v191_v4 = vld [vmem:[%s190_s15] sm:$0x1]  ;;  %v226_v5 = vsel %vm225_vm1, %v221_v1, 0.0  ;;  %v3116_v7 = vld [vmem:[%s3069_s10 + $0x74] sm:$0x1]  ;;  %s3072_s20 = scalar_lea.vmem %s4512_s2, %s3118_s7  ;;  %s3075_s28 = scalar_lea.vmem %s4512_s2, %s3121_s29 }
  0x4f   :  { %v193_v6 = vadd.f32 %v192_v61, %v191_v4  ;;  %v202_v8 = vld [vmem:[%s201_s9] sm:$0x1]  ;;  %227 = vadd.xlane.f32.xlu0 %v226_v5  ;;  %v186_v9 = vadd.f32 %v3113_v3, %v182_v2  ;;  %v3119_v11 = vld [vmem:[%s3072_s20 + $0x74] sm:$0x1]  ;;  %v3668_v61 = vld [vmem:[#allocation11 + $0x58] sm:$0xff]  }
  0x50   :  { %v204_v10 = vadd.f32 %v203_v62, %v202_v8  ;;  %v213_v12 = vld [vmem:[%s212_s13] sm:$0x1]  ;;  %v3122_v15 = vld [vmem:[%s3075_s28 + $0x74] sm:$0x1]  ;;  %v3125_v62 = vld [vmem:[%s4514_s4 + $0x2] ss:$0 sm:$0xff] }
  0x51   :  { %v197_v13 = vadd.f32 %v3116_v7, %v193_v6  ;;  %v215_v14 = vadd.f32 %v214_v63, %v213_v12  ;;  %187 = vst.msk [vmem:[#allocation2 + $0xc] sm:$0x1] %vm54_vm0, %v186_v9  ;;  %v3129_v63 = vld [vmem:[%s4514_s4 + $0x3] ss:$0 sm:$0xff]  ;;  %v3133_v12 = vld [vmem:[%s4514_s4 + $0x4] ss:$0 sm:$0xff] }
  0x52   :  { %v208_v16 = vadd.f32 %v3119_v11, %v204_v10 }
  0x53   :  { %198 = vst.msk [vmem:[#allocation2 + $0xd] sm:$0x1] %vm54_vm0, %v197_v13  ;;  %v219_v17 = vadd.f32 %v3122_v15, %v215_v14  ;;  %v3137_v13 = vld [vmem:[%s4514_s4 + $0x5] ss:$0 sm:$0xff] }
  0x54   :  { %209 = vst.msk [vmem:[#allocation2 + $0xe] sm:$0x1] %vm54_vm0, %v208_v16 }
  0x55   :  { %220 = vst.msk [vmem:[#allocation2 + $0xf] sm:$0x1] %vm54_vm0, %v219_v17 }
  0x5c   :  { %v222_v18 = vld [vmem:[#allocation2 + $0x8] sm:$0xff] }
  0x5d   :  { %v229_v19 = vsel %vm225_vm1, %v222_v18, 0.0 }
  0x5e   :  { %230 = vadd.xlane.f32.xlu0 %v229_v19 }
  0xdc   :  { %v228_v20 = vpop.xlane.xlu0 %227 }
  0xdd   :  { %v233_v21 = vmul.f32 0.03125, %v228_v20 }
  0xdf   :  { %v235_v22 = vsub.f32 %v221_v1, %v233_v21 }
  0xe1   :  { %v237_v23 = vmul.f32 %v235_v22, %v235_v22 }
  0xe3   :  { %v239_v24 = vsel %vm225_vm1, %v237_v23, 0.0 }
  0xe4   :  { %240 = vadd.xlane.f32.xlu1 %v239_v24 }
  0xeb   :  { %v231_v25 = vpop.xlane.xlu0 %230 }
  0xec   :  { %v234_v26 = vmul.f32 0.03125, %v231_v25 }
  0xee   :  { %v236_v27 = vsub.f32 %v222_v18, %v234_v26  ;;  %v3141_v26 = vld [vmem:[%s4514_s4 + $0x6] ss:$0 sm:$0xff] }
  0xf0   :  { %v238_v28 = vmul.f32 %v236_v27, %v236_v27 }
  0xf2   :  { %v242_v29 = vsel %vm225_vm1, %v238_v28, 0.0 }
  0xf3   :  { %243 = vadd.xlane.f32.xlu1 %v242_v29 }
 0x171   :  { %v241_v35 = vpop.xlane.xlu1 %240 }
 0x172   :  { %v245_v36 = vmul.f32 0.03125, %v241_v35 }
 0x174   :  { %v247_v37 = vadd.f32 1e-12, %v245_v36 }
 0x176   :  { %3703 = vrsqrt.f32 %v247_v37 }
 0x180   :  { %v244_v38 = vpop.xlane.xlu1 %243  ;;  %v3704_v39 = vpop.eup %3703 }
 0x181   :  { %v246_v41 = vmul.f32 0.03125, %v244_v38  ;;  %v251_v42 = vmul.f32 %v3704_v39, %v235_v22 }
 0x183   :  { %v248_v44 = vadd.f32 1e-12, %v246_v41  ;;  %v257_v45 = vmul.f32 %v3123_v40, %v251_v42 }
 0x185   :  { %3705 = vrsqrt.f32 %v248_v44  ;;  %v263_v46 = vadd.f32 %v3124_v43, %v257_v45 }
 0x187   :  { %265 = vst.msk [vmem:[#allocation2] sm:$0xff] %vm225_vm1, %v263_v46 }
 0x18e   :  { %v4111_v52 = vld [vmem:[#allocation2] sm:$0xff] }
 0x18f   :  { %v3706_v47 = vpop.eup %3705 }
 0x190   :  { %v252_v48 = vmul.f32 %v3706_v47, %v236_v27  ;;  %v3145_v27 = vld [vmem:[%s4514_s4 + $0x7] ss:$0 sm:$0xff] }
 0x192   :  { %v258_v49 = vmul.f32 %v3123_v40, %v252_v48 }
 0x194   :  { %v264_v50 = vadd.f32 %v3124_v43, %v258_v49 }
 0x196   :  { %266 = vst.msk [vmem:[#allocation2 + $0x8] sm:$0xff] %vm225_vm1, %v264_v50 }
 0x19d   :  { %v4113_v53 = vld [vmem:[#allocation2 + $0x8] sm:$0xff] }
 0x19e   :  { %v291_v55 = vpack.c.bf16 %v4113_v53, %v4111_v52 }
 0x1a0   :  { %3349 = vmatmul.mubr.msk.bf16.vlgmr.msra.gmra.mrb[0].mxu0 %vm225_vm1, %v291_v55  ;;  %3357 = vmatmul.mubr.msk.bf16.vlgmr.msra.gmra.mrb[0].mxu1 %vm225_vm1, %v291_v55 }
 0x1a1   :  { %3361 = vmatpush3.bf16.msra.mxu0 %v3661_v51  ;;  %3369 = vmatpush3.bf16.msra.mxu1 %v3662_v54 }
 0x1a2   :  { %3362 = vmatprep.subr.bf16.mxu0 %v3825_v32  ;;  %3370 = vmatprep.subr.bf16.mxu1 %v3825_v32 }
 0x1a3   :  { %3364 = vmatprep.mubr.msk.bf16.mxu0 %vm3826_vm2, %v3825_v32  ;;  %3372 = vmatprep.mubr.msk.bf16.mxu1 %vm3826_vm2, %v3825_v32 }
 0x1a5   :  { %3363 = vmatpush3.bf16.msra.mxu0 %v3663_v56  ;;  %3371 = vmatpush3.bf16.msra.mxu1 %v3664_v57 }
 0x1a6   :  { %3376 = vmatprep.subr.bf16.mxu0 %v3825_v32  ;;  %3384 = vmatprep.subr.bf16.mxu1 %v3825_v32 }
 0x1a8   :  { %3365 = vmatmul.mubr.msk.bf16.vlgmr.msra.gmra.mrb[4].mxu0 %vm225_vm1, %v291_v55  ;;  %3373 = vmatmul.mubr.msk.bf16.vlgmr.msra.gmra.mrb[4].mxu1 %vm225_vm1, %v291_v55 }
 0x1a9   :  { %3377 = vmatpush3.bf16.msra.mxu0 %v3665_v58  ;;  %3385 = vmatpush3.bf16.msra.mxu1 %v3666_v59 }
 0x1aa   :  { %3378 = vmatprep.subr.bf16.mxu0 %v3825_v32  ;;  %3386 = vmatprep.subr.bf16.mxu1 %v3825_v32 }
 0x1ab   :  { %3380 = vmatprep.mubr.msk.bf16.mxu0 %vm3826_vm2, %v3825_v32  ;;  %3388 = vmatprep.mubr.msk.bf16.mxu1 %vm3826_vm2, %v3825_v32 }
 0x1ad   :  { %3379 = vmatpush3.bf16.msra.mxu0 %v3667_v60  ;;  %3387 = vmatpush3.bf16.msra.mxu1 %v3668_v61 }
 0x1ae   :  { %3392 = vmatprep.subr.bf16.mxu0 %v3825_v32  ;;  %3398 = vmatprep.subr.bf16.mxu1 %v3825_v32 }
 0x1b0   :  { %3381 = vmatmul.mubr.msk.bf16.vlgmr.msra.gmra.mrb[8].mxu0 %vm225_vm1, %v291_v55  ;;  %3389 = vmatmul.mubr.msk.bf16.vlgmr.msra.gmra.mrb[8].mxu1 %vm225_vm1, %v291_v55 }
 0x1b1   :  { %3394 = vmatprep.mubr.msk.bf16.mxu0 %vm3826_vm2, %v3825_v32  ;;  %3400 = vmatprep.mubr.msk.bf16.mxu1 %vm3826_vm2, %v3825_v32 }
 0x273   :  { %v350_v0 = vpop.f32.mrb[0].mxu0  ;;  %v416_v1 = vpop.f32.mrb[0].mxu1 }
 0x274   :  { %v351_v2 = vadd.f32 %v3125_v62, %v350_v0  ;;  %v417_v3 = vadd.f32 %v3129_v63, %v416_v1  ;;  %v3350_v4 = vpop.f32.mrb[1].mxu0  ;;  %v3358_v5 = vpop.f32.mrb[1].mxu1 }
 0x275   :  { %v353_v6 = vpop.f32.mrb[2].mxu0  ;;  %v419_v7 = vpop.f32.mrb[2].mxu1  ;;  %v270_v5 = vlaneseq }
 0x276   :  { %358 = vst.msk [vmem:[#allocation3] sm:$0xff] %vm357_vm3, %v351_v2  ;;  %424 = vst.msk [vmem:[#allocation3 + $0x8] sm:$0xff] %vm357_vm3, %v417_v3  ;;  %v354_v8 = vadd.f32 %v3125_v62, %v353_v6  ;;  %v420_v9 = vadd.f32 %v3129_v63, %v419_v7  ;;  %v3351_v10 = vpop.f32.mrb[3].mxu0  ;;  %v3359_v11 = vpop.f32.mrb[3].mxu1  ;;  %v267_v6 = vld [vmem:[%s4515_s5 + $0x2] sm:$0x1] }
 0x277   :  { %v268_v7 = vsub.f32 1.0, %v267_v6 }
 0x278   :  { %360 = vst.msk [vmem:[#allocation3 + $0x10] sm:$0xff] %vm357_vm3, %v354_v8  ;;  %426 = vst.msk [vmem:[#allocation3 + $0x18] sm:$0xff] %vm357_vm3, %v420_v9  ;;  %v271_v8 = vshrl.u32 %v270_v5, 7 }
 0x279   :  { %v269_v9 = vmul.f32 -10000.0, %v268_v7 }
 0x27a   :  { %v272_v10 = vsub.s32 0, %v271_v8 }
 0x27b   :  { %v482_v14 = vpop.f32.mrb[4].mxu0  ;;  %v547_v15 = vpop.f32.mrb[4].mxu1 }
 0x27c   :  { %v483_v16 = vadd.f32 %v3133_v12, %v482_v14  ;;  %v548_v17 = vadd.f32 %v3137_v13, %v547_v15  ;;  %v3366_v18 = vpop.f32.mrb[5].mxu0  ;;  %v3374_v19 = vpop.f32.mrb[5].mxu1  ;;  %v273_v11 = vrot.slane %v269_v9, %v272_v10 }
 0x27d   :  { %v485_v20 = vpop.f32.mrb[6].mxu0  ;;  %v550_v21 = vpop.f32.mrb[6].mxu1  ;;  %v689_v49 = vld [vmem:[#allocation3] sm:$0xff]  ;;  %v690_v50 = vld [vmem:[#allocation3 + $0x8] sm:$0xff] }
 0x27e   :  { %489 = vst.msk [vmem:[#allocation4] sm:$0xff] %vm357_vm3, %v483_v16  ;;  %555 = vst.msk [vmem:[#allocation4 + $0x8] sm:$0xff] %vm357_vm3, %v548_v17  ;;  %v486_v22 = vadd.f32 %v3133_v12, %v485_v20  ;;  %v551_v23 = vadd.f32 %v3137_v13, %v550_v21  ;;  %v3367_v24 = vpop.f32.mrb[7].mxu0  ;;  %v3375_v25 = vpop.f32.mrb[7].mxu1  ;;  %v693_v55 = vpack.c.bf16 %v689_v49, %v689_v49  ;;  %v278_v12 = vld [vmem:[%s4515_s5 + $0x3] sm:$0x1] }
 0x27f   :  { %v694_v56 = vpack.c.bf16 %v690_v50, %v690_v50  ;;  %v691_v61 = vld [vmem:[#allocation3 + $0x10] sm:$0xff]  ;;  %v692_v62 = vld [vmem:[#allocation3 + $0x18] sm:$0xff]  ;;  %277 = vst.msk [vmem:[#allocation6 + $0x8] sm:$0xff] %vm274_vm5, %v273_v11  ;;  %275 = vst.msk [vmem:[#allocation6] sm:$0xff] %vm274_vm5, %v273_v11  ;;  %v279_v13 = vsub.f32 1.0, %v278_v12 }
 0x280   :  { %491 = vst.msk [vmem:[#allocation4 + $0x10] sm:$0xff] %vm357_vm3, %v486_v22  ;;  %557 = vst.msk [vmem:[#allocation4 + $0x18] sm:$0xff] %vm357_vm3, %v551_v23  ;;  %v695_v1 = vpack.c.bf16 %v691_v61, %v691_v61  ;;  %v696_v2 = vpack.c.bf16 %v692_v62, %v692_v62 }
 0x281   :  { %v280_v14 = vmul.f32 -10000.0, %v279_v13 }
 0x283   :  { %v613_v28 = vpop.f32.mrb[8].mxu0  ;;  %v678_v29 = vpop.f32.mrb[8].mxu1  ;;  %v284_v15 = vrot.slane %v280_v14, %v272_v10 }
 0x284   :  { %v614_v30 = vadd.f32 %v3141_v26, %v613_v28  ;;  %v679_v31 = vadd.f32 %v3145_v27, %v678_v29  ;;  %v3382_v33 = vpop.f32.mrb[9].mxu0  ;;  %v3390_v34 = vpop.f32.mrb[9].mxu1 }
 0x285   :  { %v616_v35 = vpop.f32.mrb[10].mxu0  ;;  %v681_v36 = vpop.f32.mrb[10].mxu1  ;;  %v697_v37 = vld [vmem:[#allocation4] sm:$0xff]  ;;  %v698_v38 = vld [vmem:[#allocation4 + $0x8] sm:$0xff]  ;;  %288 = vst.msk [vmem:[#allocation6 + $0x18] sm:$0xff] %vm274_vm5, %v284_v15  ;;  %286 = vst.msk [vmem:[#allocation6 + $0x10] sm:$0xff] %vm274_vm5, %v284_v15 }
 0x286   :  { %620 = vst.msk [vmem:[#allocation5] sm:$0xff] %vm357_vm3, %v614_v30  ;;  %686 = vst.msk [vmem:[#allocation5 + $0x8] sm:$0xff] %vm357_vm3, %v679_v31  ;;  %v617_v39 = vadd.f32 %v3141_v26, %v616_v35  ;;  %v682_v40 = vadd.f32 %v3145_v27, %v681_v36  ;;  %v3383_v41 = vpop.f32.mrb[11].mxu0  ;;  %v3391_v42 = vpop.f32.mrb[11].mxu1  ;;  %v701_v43 = vpack.c.bf16 %v697_v37, %v697_v37  ;;  %v4207_v18 = vld [vmem:[#allocation6 + $0x8] sm:$0xff]  ;;  %v4209_v25 = vld [vmem:[#allocation6] sm:$0xff] }
 0x287   :  { %v702_v44 = vpack.c.bf16 %v698_v38, %v698_v38  ;;  %v699_v47 = vld [vmem:[#allocation4 + $0x10] sm:$0xff]  ;;  %v700_v48 = vld [vmem:[#allocation4 + $0x18] sm:$0xff] }
 0x288   :  { %622 = vst.msk [vmem:[#allocation5 + $0x10] sm:$0xff] %vm357_vm3, %v617_v39  ;;  %688 = vst.msk [vmem:[#allocation5 + $0x18] sm:$0xff] %vm357_vm3, %v682_v40  ;;  %v709_v45 = vsel %vm357_vm3, %v701_v43, 0  ;;  %v703_v51 = vpack.c.bf16 %v699_v47, %v699_v47  ;;  %v704_v54 = vpack.c.bf16 %v700_v48, %v700_v48 }
 0x289   :  { %v755_v46 = vsel %vm357_vm3, %v702_v44, 0  ;;  %3393 = vmatpush3.bf16.xpose.msra.mxu0 %v709_v45 }
 0x28a   :  { %3399 = vmatpush3.bf16.xpose.msra.mxu1 %v755_v46  ;;  %3404 = vmatprep.subr.bf16.mxu0 %v3825_v32  ;;  %v801_v57 = vsel %vm357_vm3, %v703_v51, 0  ;;  %v847_v58 = vsel %vm357_vm3, %v704_v54, 0 }
 0x28b   :  { %3410 = vmatprep.subr.bf16.mxu1 %v3825_v32 }
 0x28c   :  { %v4214_v34 = vld [vmem:[#allocation6 + $0x18] sm:$0xff]  ;;  %v4217_v42 = vld [vmem:[#allocation6 + $0x10] sm:$0xff] }
 0x28d   :  { %v949_v59 = vld [vmem:[#allocation5] sm:$0xff]  ;;  %v950_v60 = vld [vmem:[#allocation5 + $0x8] sm:$0xff] }
 0x28e   :  { %v953_v63 = vpack.c.bf16 %v949_v59, %v949_v59  ;;  %v954_v0 = vpack.c.bf16 %v950_v60, %v950_v60 }
 0x28f   :  { %v952_v10 = vld [vmem:[#allocation5 + $0x18] sm:$0xff]  ;;  %v951_v15 = vld [vmem:[#allocation5 + $0x10] sm:$0xff] }
 0x290   :  { %3395 = vmatmul.mubr.msk.bf16.vlgmr.msra.gmra.mrb[12].mxu0 %vm357_vm3, %v693_v55  ;;  %v962_v3 = vsel %vm960_vm4, %v953_v63, 0  ;;  %v1008_v4 = vsel %vm960_vm4, %v954_v0, 0  ;;  %v956_v14 = vpack.c.bf16 %v952_v10, %v952_v10 }
 0x291   :  { %3401 = vmatmul.mubr.msk.bf16.vlgmr.msra.gmra.mrb[12].mxu1 %vm357_vm3, %v694_v56  ;;  %3405 = vmatpush3.bf16.xpose.msra.mxu0 %v801_v57 }
 0x292   :  { %3411 = vmatpush3.bf16.xpose.msra.mxu1 %v847_v58  ;;  %3406 = vmatprep.mubr.msk.bf16.mxu0 %vm3826_vm2, %v3825_v32 }
 0x293   :  { %3412 = vmatprep.mubr.msk.bf16.mxu1 %vm3826_vm2, %v3825_v32  ;;  %3416 = vmatprep.subr.bf16.mxu0 %v3825_v32 }
 0x294   :  { %3422 = vmatprep.subr.bf16.mxu1 %v3825_v32 }
 0x298   :  { %3407 = vmatmul.mubr.msk.bf16.vlgmr.msra.gmra.mrb[16].mxu0 %vm357_vm3, %v695_v1 }
 0x299   :  { %3413 = vmatmul.mubr.msk.bf16.vlgmr.msra.gmra.mrb[16].mxu1 %vm357_vm3, %v696_v2  ;;  %3417 = vmatpush3.bf16.msra.mxu0 %v962_v3 }
 0x29a   :  { %3423 = vmatpush3.bf16.msra.mxu1 %v1008_v4  ;;  %3424 = vmatprep.mubr.msk.bf16.mxu1 %vm3826_vm2, %v3825_v32 }
 0x29b   :  { %3434 = vmatprep.subr.bf16.mxu1 %v3825_v32  ;;  %3418 = vmatprep.mubr.msk.bf16.mxu0 %vm3826_vm2, %v3825_v32 }
 0x29c   :  { %3428 = vmatprep.subr.bf16.mxu0 %v3825_v32 }
 0x363   :  { %v745_v16 = vpop.f32.mrb[12].mxu0 }
 0x364   :  { %v791_v17 = vpop.f32.mrb[12].mxu1  ;;  %v889_v19 = vmul.f32 0.25, %v745_v16  ;;  %v3396_v21 = vpop.f32.mrb[13].mxu0 }
 0x365   :  { %v890_v20 = vmul.f32 0.25, %v791_v17  ;;  %v3402_v22 = vpop.f32.mrb[13].mxu1  ;;  %v748_v23 = vpop.f32.mrb[14].mxu0  ;;  %v955_v21 = vpack.c.bf16 %v951_v15, %v951_v15 }
 0x366   :  { %v794_v24 = vpop.f32.mrb[14].mxu1  ;;  %v3397_v26 = vpop.f32.mrb[15].mxu0  ;;  %v897_v30 = vadd.f32 %v4209_v25, %v889_v19 }
 0x367   :  { %v3403_v27 = vpop.f32.mrb[15].mxu1  ;;  %v898_v28 = vadd.f32 %v4207_v18, %v890_v20  ;;  %v1100_v20 = vsel %vm960_vm4, %v956_v14, 0  ;;  %v1054_v26 = vsel %vm960_vm4, %v955_v21, 0 }
 0x368   :  { %v901_v39 = vsel %vm274_vm5, %v897_v30, -inf }
 0x369   :  { %v904_v29 = vsel %vm274_vm5, %v898_v28, -inf }
 0x36a   :  { %905 = vmax.xlane.f32.xlu0 %v904_v29 }
 0x36b   :  { %v837_v31 = vpop.f32.mrb[16].mxu0 }
 0x36c   :  { %v883_v33 = vpop.f32.mrb[16].mxu1  ;;  %v891_v35 = vmul.f32 0.25, %v837_v31  ;;  %v3408_v37 = vpop.f32.mrb[17].mxu0  ;;  %v3669_v31 = vld [vmem:[#allocation11 + $0x68] sm:$0xff]  }
 0x36d   :  { %v892_v36 = vmul.f32 0.25, %v883_v33  ;;  %v3414_v38 = vpop.f32.mrb[17].mxu1  ;;  %v840_v41 = vpop.f32.mrb[18].mxu0  ;;  %v3670_v33 = vld [vmem:[#allocation11 + $0x68] sm:$0xff]  }
 0x36e   :  { %v886_v40 = vpop.f32.mrb[18].mxu1  ;;  %902 = vmax.xlane.f32.xlu0 %v901_v39  ;;  %v3409_v43 = vpop.f32.mrb[19].mxu0  ;;  %v899_v47 = vadd.f32 %v4217_v42, %v891_v35 }
 0x36f   :  { %v3415_v44 = vpop.f32.mrb[19].mxu1  ;;  %v900_v45 = vadd.f32 %v4214_v34, %v892_v36  ;;  %v3671_v36 = vld [vmem:[#allocation11 + $0x60] sm:$0xff]  }
 0x370   :  { %v907_v48 = vsel %vm274_vm5, %v899_v47, -inf }
 0x371   :  { %v910_v46 = vsel %vm274_vm5, %v900_v45, -inf }
 0x372   :  { %911 = vmax.xlane.f32.xlu1 %v910_v46 }
 0x376   :  { %908 = vmax.xlane.f32.xlu1 %v907_v48 }
 0x3f7   :  { %v906_v49 = vpop.xlane.xlu0 %905 }
 0x3f8   :  { %v914_v50 = vsub.f32 %v898_v28, %v906_v49 }
 0x3fa   :  { %v919_v51 = vmul.f32 1.442695, %v914_v50 }
 0x3fb   :  { %v903_v54 = vpop.xlane.xlu0 %902 }
 0x3fc   :  { %3707 = vpow2.f32 %v919_v51  ;;  %v913_v55 = vsub.f32 %v897_v30, %v903_v54 }
 0x3fe   :  { %v917_v56 = vmul.f32 1.442695, %v913_v55 }
 0x3ff   :  { %v912_v57 = vpop.xlane.xlu1 %911 }
 0x400   :  { %3709 = vpow2.f32 %v917_v56  ;;  %v916_v58 = vsub.f32 %v900_v45, %v912_v57 }
 0x402   :  { %v923_v59 = vmul.f32 1.442695, %v916_v58 }
 0x403   :  { %v909_v60 = vpop.xlane.xlu1 %908 }
 0x404   :  { %3711 = vpow2.f32 %v923_v59  ;;  %v915_v61 = vsub.f32 %v899_v47, %v909_v60  ;;  %v3672_v47 = vld [vmem:[#allocation11 + $0x60] sm:$0xff]  }
 0x406   :  { %v3708_v62 = vpop.eup %3707  ;;  %v921_v63 = vmul.f32 1.442695, %v915_v61 }
 0x407   :  { %v928_v0 = vsel %vm274_vm5, %v3708_v62, 0.0 }
 0x408   :  { %3713 = vpow2.f32 %v921_v63  ;;  %929 = vadd.xlane.f32.xlu0 %v928_v0  ;;  %v3165_v0 = vld [vmem:[%s4514_s4 + $0x8] ss:$0 sm:$0xff] }
 0x40a   :  { %v3710_v1 = vpop.eup %3709 }
 0x40b   :  { %v925_v2 = vsel %vm274_vm5, %v3710_v1, 0.0 }
 0x40c   :  { %926 = vadd.xlane.f32.xlu0 %v925_v2 }
 0x40e   :  { %v3712_v3 = vpop.eup %3711 }
 0x40f   :  { %v934_v4 = vsel %vm274_vm5, %v3712_v3, 0.0 }
 0x410   :  { %935 = vadd.xlane.f32.xlu1 %v934_v4 }
 0x412   :  { %v3714_v5 = vpop.eup %3713 }
 0x413   :  { %v931_v6 = vsel %vm274_vm5, %v3714_v5, 0.0 }
 0x414   :  { %932 = vadd.xlane.f32.xlu1 %v931_v6 }
 0x495   :  { %v930_v7 = vpop.xlane.xlu0 %929 }
 0x496   :  { %3715 = vrcp.f32 %v930_v7 }
 0x499   :  { %v927_v8 = vpop.xlane.xlu0 %926 }
 0x49a   :  { %3717 = vrcp.f32 %v927_v8 }
 0x49d   :  { %v936_v9 = vpop.xlane.xlu1 %935 }
 0x49e   :  { %3719 = vrcp.f32 %v936_v9 }
 0x4a0   :  { %v3716_v11 = vpop.eup %3715 }
 0x4a1   :  { %v942_v12 = vmul.f32 %v3716_v11, %v3708_v62  ;;  %v933_v13 = vpop.xlane.xlu1 %932 }
 0x4a2   :  { %3721 = vrcp.f32 %v933_v13 }
 0x4a3   :  { %v946_v16 = vpack.c.bf16 %v942_v12, %v942_v12 }
 0x4a4   :  { %v3718_v17 = vpop.eup %3717 }
 0x4a5   :  { %v941_v19 = vmul.f32 %v3718_v17, %v3710_v1  ;;  %3425 = vmatmul.mubr.msk.bf16.vlgmr.msra.gmra.mrb[20].mxu1 %vm274_vm5, %v946_v16 }
 0x4a6   :  { %3435 = vmatpush3.bf16.msra.mxu1 %v1100_v20  ;;  %3436 = vmatprep.mubr.msk.bf16.mxu1 %vm3826_vm2, %v3825_v32 }
 0x4a7   :  { %v945_v22 = vpack.c.bf16 %v941_v19, %v941_v19  ;;  %3452 = vmatprep.subr.bf16.mxu1 %v3825_v32 }
 0x4a8   :  { %v3720_v23 = vpop.eup %3719 }
 0x4a9   :  { %v944_v24 = vmul.f32 %v3720_v23, %v3712_v3  ;;  %3419 = vmatmul.mubr.msk.bf16.vlgmr.msra.gmra.mrb[20].mxu0 %vm274_vm5, %v945_v22  ;;  %v3673_v23 = vld [vmem:[#allocation11 + $0x70] sm:$0xff]  }
 0x4aa   :  { %3429 = vmatpush3.bf16.msra.mxu0 %v1054_v26  ;;  %3430 = vmatprep.mubr.msk.bf16.mxu0 %vm3826_vm2, %v3825_v32 }
 0x4ab   :  { %v948_v27 = vpack.c.bf16 %v944_v24, %v944_v24  ;;  %3440 = vmatprep.subr.bf16.mxu0 %v3825_v32 }
 0x4ac   :  { %v3722_v28 = vpop.eup %3721 }
 0x4ad   :  { %v943_v29 = vmul.f32 %v3722_v28, %v3714_v5  ;;  %3437 = vmatmul.mubr.msk.bf16.vlgmr.msra.gmra.mrb[24].mxu1 %vm274_vm5, %v948_v27 }
 0x4ae   :  { %3454 = vmatprep.mubr.msk.bf16.mxu1 %vm3826_vm2, %v3825_v32  ;;  %3453 = vmatpush3.bf16.msra.mxu1 %v3670_v33 }
 0x4af   :  { %v947_v30 = vpack.c.bf16 %v943_v29, %v943_v29  ;;  %3458 = vmatprep.subr.bf16.mxu1 %v3825_v32 }
 0x4b1   :  { %3431 = vmatmul.mubr.msk.bf16.vlgmr.msra.gmra.mrb[24].mxu0 %vm274_vm5, %v947_v30 }
 0x4b2   :  { %3442 = vmatprep.mubr.msk.bf16.mxu0 %vm3826_vm2, %v3825_v32  ;;  %3441 = vmatpush3.bf16.msra.mxu0 %v3669_v31 }
 0x4b3   :  { %3446 = vmatprep.subr.bf16.mxu0 %v3825_v32 }
 0x578   :  { %v1044_v35 = vpop.f32.mrb[20].mxu1 }
 0x579   :  { %v1145_v37 = vpack.c.bf16 %v1044_v35, %v1044_v35  ;;  %v3426_v38 = vpop.f32.mrb[21].mxu1  ;;  %v3166_v35 = vld [vmem:[%s4514_s4 + $0x9] ss:$0 sm:$0xff] }
 0x57a   :  { %v1047_v39 = vpop.f32.mrb[22].mxu1 }
 0x57b   :  { %v3427_v40 = vpop.f32.mrb[23].mxu1  ;;  %3443 = vmatmul.mubr.msk.bf16.vlgmr.msra.gmra.mrb[28].mxu0 %vm357_vm3, %v1145_v37  ;;  %v3167_v39 = vld [vmem:[%s4514_s4 + $0xa] ss:$0 sm:$0xff] }
 0x57c   :  { %v998_v41 = vpop.f32.mrb[20].mxu0  ;;  %3447 = vmatpush3.bf16.msra.mxu0 %v3671_v36  ;;  %3448 = vmatprep.mubr.msk.bf16.mxu0 %vm3826_vm2, %v3825_v32 }
 0x57d   :  { %v3420_v43 = vpop.f32.mrb[21].mxu0  ;;  %3464 = vmatprep.subr.bf16.mxu0 %v3825_v32  ;;  %v1142_v55 = vpack.c.bf16 %v998_v41, %v998_v41 }
 0x57e   :  { %v1001_v44 = vpop.f32.mrb[22].mxu0 }
 0x57f   :  { %v3421_v45 = vpop.f32.mrb[23].mxu0 }
 0x580   :  { %v1136_v46 = vpop.f32.mrb[24].mxu1  ;;  %v3675_v45 = vld [vmem:[#allocation11 + $0x80] sm:$0xff]  }
 0x581   :  { %v1250_v48 = vpack.c.bf16 %v1136_v46, %v1136_v46  ;;  %v3438_v49 = vpop.f32.mrb[25].mxu1  ;;  %v3676_v46 = vld [vmem:[#allocation11 + $0x88] sm:$0xff]  }
 0x582   :  { %v1139_v50 = vpop.f32.mrb[26].mxu1  ;;  %v3168_v49 = vld [vmem:[%s4514_s4 + $0xb] ss:$0 sm:$0xff] }
 0x583   :  { %v3439_v51 = vpop.f32.mrb[27].mxu1  ;;  %3455 = vmatmul.mubr.msk.bf16.vlgmr.msra.gmra.mrb[28].mxu1 %vm357_vm3, %v1250_v48  ;;  %v3678_v48 = vld [vmem:[#allocation11 + $0x98] sm:$0xff]  }
 0x584   :  { %v1090_v54 = vpop.f32.mrb[24].mxu0  ;;  %3459 = vmatpush3.bf16.msra.mxu1 %v3672_v47  ;;  %3460 = vmatprep.mubr.msk.bf16.mxu1 %vm3826_vm2, %v3825_v32  ;;  %v3677_v47 = vld [vmem:[#allocation11 + $0x90] sm:$0xff]  }
 0x585   :  { %v3432_v56 = vpop.f32.mrb[25].mxu0  ;;  %3472 = vmatprep.subr.bf16.mxu1 %v3825_v32  ;;  %v1247_v59 = vpack.c.bf16 %v1090_v54, %v1090_v54 }
 0x586   :  { %v1093_v57 = vpop.f32.mrb[26].mxu0 }
 0x587   :  { %v3433_v58 = vpop.f32.mrb[27].mxu0  ;;  %3449 = vmatmul.mubr.msk.bf16.vlgmr.msra.gmra.mrb[28].mxu0 %vm357_vm3, %v1142_v55 }
 0x588   :  { %3468 = vmatprep.mubr.msk.bf16.mxu0 %vm3826_vm2, %v3825_v32  ;;  %3465 = vmatpush3.bf16.msra.mxu0 %v3673_v23 }
 0x589   :  { %3466 = vmatprep.subr.bf16.mxu0 %v3825_v32 }
 0x58f   :  { %3461 = vmatmul.mubr.msk.bf16.vlgmr.msra.gmra.mrb[28].mxu1 %vm357_vm3, %v1247_v59 }
 0x590   :  { %3480 = vmatprep.mubr.msk.bf16.mxu1 %vm3826_vm2, %v3825_v32  ;;  %3473 = vmatpush3.bf16.msra.mxu1 %v3675_v45 }
 0x591   :  { %3474 = vmatprep.subr.bf16.mxu1 %v3825_v32 }
 0x594   :  { %3475 = vmatpush3.bf16.msra.mxu1 %v3676_v46 }
 0x595   :  { %3476 = vmatprep.subr.bf16.mxu1 %v3825_v32 }
 0x598   :  { %3477 = vmatpush3.bf16.msra.mxu1 %v3677_v47 }
 0x599   :  { %3478 = vmatprep.subr.bf16.mxu1 %v3825_v32 }
 0x59c   :  { %3479 = vmatpush3.bf16.msra.mxu1 %v3678_v48 }
 0x59d   :  { %3500 = vmatprep.subr.bf16.mxu1 %v3825_v32 }
 0x65a   :  { %v1240_v60 = vpop.f32.mrb[28].mxu0 }
 0x65b   :  { %1246 = vst.msk [vmem:[#allocation7] sm:$0xff] %vm225_vm1, %v1240_v60  ;;  %v3450_v61 = vpop.f32.mrb[29].mxu0 }
 0x65c   :  { %v1243_v62 = vpop.f32.mrb[30].mxu0 }
 0x65d   :  { %v3451_v63 = vpop.f32.mrb[31].mxu0 }
 0x662   :  { %v1345_v1 = vpop.f32.mrb[28].mxu1  ;;  %v1352_v2 = vld [vmem:[#allocation7] sm:$0xff] }
 0x663   :  { %1351 = vst.msk [vmem:[#allocation7 + $0x8] sm:$0xff] %vm225_vm1, %v1345_v1  ;;  %v3462_v3 = vpop.f32.mrb[29].mxu1  ;;  %v1359_v4 = vadd.f32 %v3165_v0, %v1352_v2 }
 0x664   :  { %v1348_v5 = vpop.f32.mrb[30].mxu1 }
 0x665   :  { %v3463_v6 = vpop.f32.mrb[31].mxu1  ;;  %v1361_v7 = vadd.f32 %v1359_v4, %v4111_v52  ;;  %v3172_v5 = vld [vmem:[%s4514_s4 + $0xc] ss:$0 sm:$0xff] }
 0x667   :  { %v1365_v8 = vsel %vm225_vm1, %v1361_v7, 0.0 }
 0x668   :  { %1366 = vadd.xlane.f32.xlu0 %v1365_v8 }
 0x66a   :  { %v1353_v9 = vld [vmem:[#allocation7 + $0x8] sm:$0xff] }
 0x66b   :  { %v1360_v10 = vadd.f32 %v3165_v0, %v1353_v9 }
 0x66d   :  { %v1362_v11 = vadd.f32 %v1360_v10, %v4113_v53  ;;  %v3674_v53 = vld [vmem:[#allocation11 + $0x78] sm:$0xff]  }
 0x66e   :  { %3467 = vmatpush3.bf16.msra.mxu0 %v3674_v53 }
 0x66f   :  { %v1368_v12 = vsel %vm225_vm1, %v1362_v11, 0.0  ;;  %3484 = vmatprep.subr.bf16.mxu0 %v3825_v32 }
 0x670   :  { %1369 = vadd.xlane.f32.xlu1 %v1368_v12 }
 0x6f5   :  { %v1367_v13 = vpop.xlane.xlu0 %1366 }
 0x6f6   :  { %v1371_v14 = vmul.f32 0.03125, %v1367_v13 }
 0x6f8   :  { %v1373_v15 = vsub.f32 %v1361_v7, %v1371_v14 }
 0x6fa   :  { %v1375_v16 = vmul.f32 %v1373_v15, %v1373_v15 }
 0x6fc   :  { %v1377_v17 = vsel %vm225_vm1, %v1375_v16, 0.0 }
 0x6fd   :  { %v1370_v19 = vpop.xlane.xlu1 %1369  ;;  %1378 = vadd.xlane.f32.xlu0 %v1377_v17 }
 0x6fe   :  { %v1372_v20 = vmul.f32 0.03125, %v1370_v19 }
 0x700   :  { %v1374_v52 = vsub.f32 %v1362_v11, %v1372_v20 }
 0x702   :  { %v1376_v21 = vmul.f32 %v1374_v52, %v1374_v52 }
 0x704   :  { %v1380_v22 = vsel %vm225_vm1, %v1376_v21, 0.0 }
 0x705   :  { %1381 = vadd.xlane.f32.xlu1 %v1380_v22 }
 0x78a   :  { %v1379_v24 = vpop.xlane.xlu0 %1378 }
 0x78b   :  { %v1383_v26 = vmul.f32 0.03125, %v1379_v24 }
 0x78d   :  { %v1385_v27 = vadd.f32 1e-12, %v1383_v26  ;;  %v3679_v26 = vld [vmem:[#allocation11 + $0xa0] sm:$0xff]  }
 0x78f   :  { %3723 = vrsqrt.f32 %v1385_v27  ;;  %v3680_v27 = vld [vmem:[#allocation11 + $0xc0] sm:$0xff]  }
 0x792   :  { %v1382_v28 = vpop.xlane.xlu1 %1381 }
 0x793   :  { %v1384_v29 = vmul.f32 0.03125, %v1382_v28  ;;  %v3681_v28 = vld [vmem:[#allocation11 + $0xa8] sm:$0xff]  }
 0x795   :  { %v1386_v30 = vadd.f32 1e-12, %v1384_v29  ;;  %v3682_v29 = vld [vmem:[#allocation11 + $0xc8] sm:$0xff]  }
 0x797   :  { %3725 = vrsqrt.f32 %v1386_v30 }
 0x799   :  { %v3724_v31 = vpop.eup %3723 }
 0x79a   :  { %v1389_v33 = vmul.f32 %v3724_v31, %v1373_v15 }
 0x79c   :  { %v1395_v37 = vmul.f32 %v3166_v35, %v1389_v33 }
 0x79e   :  { %v1401_v41 = vadd.f32 %v3167_v39, %v1395_v37 }
 0x7a1   :  { %v3726_v36 = vpop.eup %3725 }
 0x7a2   :  { %v1390_v38 = vmul.f32 %v3726_v36, %v1374_v52 }
 0x7a4   :  { %v1396_v40 = vmul.f32 %v3166_v35, %v1390_v38 }
 0x7a6   :  { %v1402_v43 = vadd.f32 %v3167_v39, %v1396_v40  ;;  %v3178_v39 = vld [vmem:[%s4514_s4 + $0xd] ss:$0 sm:$0xff] }
 0x7a8   :  { %v1403_v44 = vpack.c.bf16 %v1402_v43, %v1401_v41 }
 0x7aa   :  { %3469 = vmatmul.mubr.msk.bf16.vlgmr.msra.gmra.mrb[32].mxu0 %vm225_vm1, %v1403_v44 }
 0x7ab   :  { %3488 = vmatprep.mubr.msk.bf16.mxu0 %vm3826_vm2, %v3825_v32  ;;  %3485 = vmatpush3.bf16.msra.mxu0 %v3679_v26 }
 0x7ac   :  { %3486 = vmatprep.subr.bf16.mxu0 %v3825_v32 }
 0x7af   :  { %3487 = vmatpush3.bf16.msra.mxu0 %v3681_v28 }
 0x7b0   :  { %3492 = vmatprep.subr.bf16.mxu0 %v3825_v32 }
 0x87d   :  { %v1462_v50 = vpop.f32.mrb[32].mxu0 }
 0x87e   :  { %v1463_v51 = vadd.f32 %v3168_v49, %v1462_v50  ;;  %v3470_v54 = vpop.f32.mrb[33].mxu0 }
 0x87f   :  { %v1465_v55 = vpop.f32.mrb[34].mxu0  ;;  %v3684_v54 = vld [vmem:[#allocation11 + $0xe0] sm:$0xff]  }
 0x880   :  { %v1471_v56 = vmul.f32 0.70710677, %v1463_v51  ;;  %v1466_v57 = vadd.f32 %v3168_v49, %v1465_v55  ;;  %v3471_v58 = vpop.f32.mrb[35].mxu0  ;;  %v1469_v63 = vmul.f32 0.5, %v1463_v51  ;;  %v3683_v49 = vld [vmem:[#allocation11 + $0xb0] sm:$0xff]  }
 0x881   :  { %v3687_v58 = vld [vmem:[#allocation11 + $0xd0] sm:$0xff]  }
 0x882   :  { %3727 = verf.f32 %v1471_v56  ;;  %v1472_v59 = vmul.f32 0.70710677, %v1466_v57  ;;  %v1470_v0 = vmul.f32 0.5, %v1466_v57  ;;  %v3685_v56 = vld [vmem:[#allocation11 + $0xb8] sm:$0xff]   ;;  %v3686_v57 = vld [vmem:[#allocation11 + $0xe8] sm:$0xff]  }
 0x884   :  { %3729 = verf.f32 %v1472_v59  ;;  %v3688_v59 = vld [vmem:[#allocation11 + $0xd8] sm:$0xff]  }
 0x88c   :  { %v3728_v60 = vpop.eup %3727 }
 0x88d   :  { %v1475_v61 = vadd.f32 1.0, %v3728_v60  ;;  %v4334_v60 = vld [vmem:[%s4516_s6] sm:$0xff] }
 0x88e   :  { %v3730_v62 = vpop.eup %3729 }
 0x88f   :  { %v1476_v1 = vadd.f32 1.0, %v3730_v62  ;;  %v1477_v2 = vmul.f32 %v1475_v61, %v1469_v63  ;;  %v3689_v61 = vld [vmem:[#allocation11 + $0xf0] sm:$0xff]   ;;  %v3690_v62 = vld [vmem:[#allocation11 + $0xf8] sm:$0xff]  }
 0x890   :  { %v3188_v63 = vld [vmem:[%s4514_s4 + $0x11] ss:$0 sm:$0xff] }
 0x891   :  { %v1478_v3 = vmul.f32 %v1476_v1, %v1470_v0 }
 0x893   :  { %v1479_v4 = vpack.c.bf16 %v1478_v3, %v1477_v2 }
 0x895   :  { %3481 = vmatmul.mubr.msk.bf16.vlgmr.msra.gmra.mrb[32].mxu1 %vm1517_vm6, %v1479_v4 }
 0x896   :  { %3504 = vmatprep.mubr.msk.bf16.mxu1 %vm3826_vm2, %v3825_v32  ;;  %3501 = vmatpush3.bf16.msra.mxu1 %v3680_v27 }
 0x897   :  { %3502 = vmatprep.subr.bf16.mxu1 %v3825_v32 }
 0x89a   :  { %3503 = vmatpush3.bf16.msra.mxu1 %v3682_v29  ;;  %v3192_v29 = vld [vmem:[%s4514_s4 + $0x12] ss:$0 sm:$0xff] }
 0x89b   :  { %3516 = vmatprep.subr.bf16.mxu1 %v3825_v32 }
 0x968   :  { %v1555_v6 = vpop.f32.mrb[32].mxu1 }
 0x969   :  { %v1556_v7 = vadd.f32 %v3172_v5, %v1555_v6  ;;  %v3482_v8 = vpop.f32.mrb[33].mxu1 }
 0x96a   :  { %v1558_v9 = vpop.f32.mrb[34].mxu1 }
 0x96b   :  { %v1559_v10 = vadd.f32 %v3172_v5, %v1558_v9  ;;  %v3483_v11 = vpop.f32.mrb[35].mxu1  ;;  %v1562_v12 = vadd.f32 %v1556_v7, %v1401_v41 }
 0x96d   :  { %v1566_v13 = vsel %vm225_vm1, %v1562_v12, 0.0  ;;  %v1563_v14 = vadd.f32 %v1559_v10, %v1402_v43  ;;  %v3179_v43 = vld [vmem:[%s4514_s4 + $0xe] ss:$0 sm:$0xff] }
 0x96e   :  { %1567 = vadd.xlane.f32.xlu0 %v1566_v13  ;;  %v3196_v13 = vld [vmem:[%s4514_s4 + $0x13] ss:$0 sm:$0xff] }
 0x96f   :  { %v1569_v15 = vsel %vm225_vm1, %v1563_v14, 0.0 }
 0x970   :  { %1570 = vadd.xlane.f32.xlu1 %v1569_v15 }
 0x9fb   :  { %v1568_v16 = vpop.xlane.xlu0 %1567 }
 0x9fc   :  { %v1572_v17 = vmul.f32 0.03125, %v1568_v16 }
 0x9fd   :  { %v1571_v19 = vpop.xlane.xlu1 %1570 }
 0x9fe   :  { %v1574_v20 = vsub.f32 %v1562_v12, %v1572_v17  ;;  %v1573_v52 = vmul.f32 0.03125, %v1571_v19  ;;  %v3184_v12 = vld [vmem:[%s4514_s4 + $0x10] ss:$0 sm:$0xff] }
 0xa00   :  { %v1575_v21 = vsub.f32 %v1563_v14, %v1573_v52  ;;  %v1576_v22 = vmul.f32 %v1574_v20, %v1574_v20 }
 0xa02   :  { %v1578_v23 = vsel %vm225_vm1, %v1576_v22, 0.0  ;;  %v1577_v53 = vmul.f32 %v1575_v21, %v1575_v21 }
 0xa03   :  { %1579 = vadd.xlane.f32.xlu0 %v1578_v23 }
 0xa04   :  { %v1581_v24 = vsel %vm225_vm1, %v1577_v53, 0.0 }
 0xa05   :  { %1582 = vadd.xlane.f32.xlu1 %v1581_v24 }
 0xa90   :  { %v1580_v30 = vpop.xlane.xlu0 %1579 }
 0xa91   :  { %v1584_v31 = vmul.f32 0.03125, %v1580_v30 }
 0xa92   :  { %v1583_v33 = vpop.xlane.xlu1 %1582 }
 0xa93   :  { %v1586_v35 = vadd.f32 1e-12, %v1584_v31  ;;  %v1585_v36 = vmul.f32 0.03125, %v1583_v33 }
 0xa95   :  { %3731 = vrsqrt.f32 %v1586_v35  ;;  %v1587_v37 = vadd.f32 1e-12, %v1585_v36 }
 0xa97   :  { %3733 = vrsqrt.f32 %v1587_v37 }
 0xa9f   :  { %v3732_v38 = vpop.eup %3731 }
 0xaa0   :  { %v1590_v40 = vmul.f32 %v3732_v38, %v1574_v20 }
 0xaa1   :  { %v3734_v41 = vpop.eup %3733 }
 0xaa2   :  { %v1596_v44 = vmul.f32 %v3178_v39, %v1590_v40  ;;  %v1591_v45 = vmul.f32 %v3734_v41, %v1575_v21 }
 0xaa4   :  { %v1602_v46 = vadd.f32 %v3179_v43, %v1596_v44  ;;  %v1597_v47 = vmul.f32 %v3178_v39, %v1591_v45  ;;  %v3200_v44 = vld [vmem:[%s4514_s4 + $0x14] ss:$0 sm:$0xff] }
 0xaa6   :  { %1604 = vst.msk [vmem:[#allocation2] sm:$0xff] %vm225_vm1, %v1602_v46  ;;  %v1603_v48 = vadd.f32 %v3179_v43, %v1597_v47 }
 0xaa8   :  { %1605 = vst.msk [vmem:[#allocation2 + $0x8] sm:$0xff] %vm225_vm1, %v1603_v48 }
 0xaad   :  { %v4310_v50 = vld [vmem:[#allocation2] sm:$0xff] }
 0xaaf   :  { %v4312_v51 = vld [vmem:[#allocation2 + $0x8] sm:$0xff] }
 0xab0   :  { %v1608_v55 = vpack.c.bf16 %v4312_v51, %v4310_v50 }
 0xab2   :  { %3489 = vmatmul.mubr.msk.bf16.vlgmr.msra.gmra.mrb[36].mxu0 %vm225_vm1, %v1608_v55  ;;  %3505 = vmatmul.mubr.msk.bf16.vlgmr.msra.gmra.mrb[36].mxu1 %vm225_vm1, %v1608_v55 }
 0xab3   :  { %3493 = vmatpush3.bf16.msra.mxu0 %v3683_v49  ;;  %3517 = vmatpush3.bf16.msra.mxu1 %v3684_v54 }
 0xab4   :  { %3494 = vmatprep.subr.bf16.mxu0 %v3825_v32  ;;  %3518 = vmatprep.subr.bf16.mxu1 %v3825_v32 }
 0xab5   :  { %3496 = vmatprep.mubr.msk.bf16.mxu0 %vm3826_vm2, %v3825_v32  ;;  %3520 = vmatprep.mubr.msk.bf16.mxu1 %vm3826_vm2, %v3825_v32 }
 0xab7   :  { %3495 = vmatpush3.bf16.msra.mxu0 %v3685_v56  ;;  %3519 = vmatpush3.bf16.msra.mxu1 %v3686_v57 }
 0xab8   :  { %3508 = vmatprep.subr.bf16.mxu0 %v3825_v32  ;;  %3532 = vmatprep.subr.bf16.mxu1 %v3825_v32 }
 0xaba   :  { %3497 = vmatmul.mubr.msk.bf16.vlgmr.msra.gmra.mrb[40].mxu0 %vm225_vm1, %v1608_v55  ;;  %3521 = vmatmul.mubr.msk.bf16.vlgmr.msra.gmra.mrb[40].mxu1 %vm225_vm1, %v1608_v55 }
 0xabb   :  { %3509 = vmatpush3.bf16.msra.mxu0 %v3687_v58  ;;  %3512 = vmatprep.mubr.msk.bf16.mxu0 %vm3826_vm2, %v3825_v32 }
 0xabc   :  { %3510 = vmatprep.subr.bf16.mxu0 %v3825_v32  ;;  %3534 = vmatprep.mubr.msk.bf16.mxu1 %vm3826_vm2, %v4334_v60  ;;  %v3180_v32 = vld [vmem:[%s4514_s4 + $0xf] ss:$0 sm:$0xff] }
 0xabf   :  { %3511 = vmatpush3.bf16.msra.mxu0 %v3688_v59 }
 0xac0   :  { %3524 = vmatprep.subr.bf16.mxu0 %v4334_v60 }
 0xac2   :  { %3513 = vmatmul.mubr.msk.bf16.vlgmr.msra.gmra.mrb[44].mxu0 %vm225_vm1, %v1608_v55 }
 0xac3   :  { %3525 = vmatpush3.bf16.msra.mxu0 %v3689_v61  ;;  %3528 = vmatprep.mubr.msk.bf16.mxu0 %vm3826_vm2, %v4334_v60 }
 0xac4   :  { %3526 = vmatprep.subr.bf16.mxu0 %v4334_v60 }
 0xac7   :  { %3527 = vmatpush3.bf16.msra.mxu0 %v3690_v62 }
 0xac8   :  { %3538 = vmatprep.subr.bf16.mxu0 %v4334_v60 }
 0xaca   :  { %3529 = vmatmul.mubr.msk.bf16.vlgmr.msra.gmra.mrb[48].mxu0 %vm225_vm1, %v1608_v55 }
 0xacb   :  { %3540 = vmatprep.mubr.msk.bf16.mxu0 %vm3826_vm2, %v4334_v60 }
 0xb85   :  { %v1667_v0 = vpop.f32.mrb[36].mxu0  ;;  %v1795_v1 = vpop.f32.mrb[36].mxu1 }
 0xb86   :  { %v1668_v2 = vadd.f32 %v3180_v32, %v1667_v0  ;;  %v1796_v3 = vadd.f32 %v3188_v63, %v1795_v1  ;;  %v3490_v4 = vpop.f32.mrb[37].mxu0  ;;  %v3506_v5 = vpop.f32.mrb[37].mxu1 }
 0xb87   :  { %v1670_v6 = vpop.f32.mrb[38].mxu0  ;;  %v1798_v7 = vpop.f32.mrb[38].mxu1 }
 0xb88   :  { %1674 = vst.msk [vmem:[#allocation3] sm:$0xff] %vm357_vm3, %v1668_v2  ;;  %1802 = vst.msk [vmem:[#allocation4] sm:$0xff] %vm357_vm3, %v1796_v3  ;;  %v1671_v8 = vadd.f32 %v3180_v32, %v1670_v6  ;;  %v1799_v9 = vadd.f32 %v3188_v63, %v1798_v7  ;;  %v3491_v10 = vpop.f32.mrb[39].mxu0  ;;  %v3507_v11 = vpop.f32.mrb[39].mxu1 }
 0xb8a   :  { %1675 = vst.msk [vmem:[#allocation3 + $0x10] sm:$0xff] %vm357_vm3, %v1671_v8  ;;  %1803 = vst.msk [vmem:[#allocation4 + $0x10] sm:$0xff] %vm357_vm3, %v1799_v9 }
 0xb8d   :  { %v1731_v14 = vpop.f32.mrb[40].mxu0  ;;  %v1923_v15 = vpop.f32.mrb[40].mxu1 }
 0xb8e   :  { %v1732_v16 = vadd.f32 %v3184_v12, %v1731_v14  ;;  %v1924_v17 = vadd.f32 %v3196_v13, %v1923_v15  ;;  %v3498_v19 = vpop.f32.mrb[41].mxu0  ;;  %v3522_v20 = vpop.f32.mrb[41].mxu1 }
 0xb8f   :  { %v1734_v52 = vpop.f32.mrb[42].mxu0  ;;  %v1926_v21 = vpop.f32.mrb[42].mxu1  ;;  %v2004_v22 = vld [vmem:[#allocation4] sm:$0xff] }
 0xb90   :  { %1738 = vst.msk [vmem:[#allocation3 + $0x8] sm:$0xff] %vm357_vm3, %v1732_v16  ;;  %1930 = vst.msk [vmem:[#allocation5] sm:$0xff] %vm357_vm3, %v1924_v17  ;;  %v1735_v23 = vadd.f32 %v3184_v12, %v1734_v52  ;;  %v1927_v53 = vadd.f32 %v3196_v13, %v1926_v21  ;;  %v3499_v24 = vpop.f32.mrb[43].mxu0  ;;  %v3523_v26 = vpop.f32.mrb[43].mxu1  ;;  %v2008_v27 = vpack.c.bf16 %v2004_v22, %v2004_v22  ;;  %v1996_v33 = vld [vmem:[#allocation3] sm:$0xff] }
 0xb91   :  { %v2006_v30 = vld [vmem:[#allocation4 + $0x10] sm:$0xff]  ;;  %v2000_v41 = vpack.c.bf16 %v1996_v33, %v1996_v33 }
 0xb92   :  { %1739 = vst.msk [vmem:[#allocation3 + $0x18] sm:$0xff] %vm357_vm3, %v1735_v23  ;;  %1931 = vst.msk [vmem:[#allocation5 + $0x10] sm:$0xff] %vm357_vm3, %v1927_v53  ;;  %v2016_v28 = vsel %vm357_vm3, %v2008_v27, 0  ;;  %v2010_v37 = vpack.c.bf16 %v2006_v30, %v2006_v30  ;;  %v1998_v47 = vld [vmem:[#allocation3 + $0x10] sm:$0xff] }
 0xb93   :  { %3533 = vmatpush3.bf16.xpose.msra.mxu1 %v2016_v28  ;;  %v2002_v59 = vpack.c.bf16 %v1998_v47, %v1998_v47 }
 0xb94   :  { %3544 = vmatprep.subr.bf16.mxu1 %v4334_v60  ;;  %v2108_v43 = vsel %vm357_vm3, %v2010_v37, 0 }
 0xb95   :  { %v1859_v31 = vpop.f32.mrb[44].mxu0 }
 0xb96   :  { %v1860_v35 = vadd.f32 %v3192_v29, %v1859_v31  ;;  %v3514_v36 = vpop.f32.mrb[45].mxu0 }
 0xb97   :  { %v1862_v38 = vpop.f32.mrb[46].mxu0  ;;  %v2256_v45 = vld [vmem:[#allocation5] sm:$0xff]  ;;  %v1997_v0 = vld [vmem:[#allocation3 + $0x8] sm:$0xff] }
 0xb98   :  { %1866 = vst.msk [vmem:[#allocation4 + $0x8] sm:$0xff] %vm357_vm3, %v1860_v35  ;;  %v1863_v39 = vadd.f32 %v3192_v29, %v1862_v38  ;;  %v3515_v40 = vpop.f32.mrb[47].mxu0  ;;  %v2260_v54 = vpack.c.bf16 %v2256_v45, %v2256_v45  ;;  %v2001_v2 = vpack.c.bf16 %v1997_v0, %v1997_v0 }
 0xb99   :  { %v1999_v5 = vld [vmem:[#allocation3 + $0x18] sm:$0xff] }
 0xb9a   :  { %1867 = vst.msk [vmem:[#allocation4 + $0x18] sm:$0xff] %vm357_vm3, %v1863_v39  ;;  %3535 = vmatmul.mubr.msk.bf16.vlgmr.msra.gmra.mrb[44].mxu1 %vm357_vm3, %v2000_v41  ;;  %v2268_v32 = vsel %vm960_vm4, %v2260_v54, 0  ;;  %v2003_v7 = vpack.c.bf16 %v1999_v5, %v1999_v5 }
 0xb9b   :  { %3545 = vmatpush3.bf16.xpose.msra.mxu1 %v2108_v43  ;;  %3546 = vmatprep.mubr.msk.bf16.mxu1 %vm3826_vm2, %v4334_v60 }
 0xb9c   :  { %3556 = vmatprep.subr.bf16.mxu1 %v4334_v60 }
 0xb9d   :  { %v1987_v46 = vpop.f32.mrb[48].mxu0 }
 0xb9e   :  { %v1988_v48 = vadd.f32 %v3200_v44, %v1987_v46  ;;  %v3530_v49 = vpop.f32.mrb[49].mxu0 }
 0xb9f   :  { %v1990_v55 = vpop.f32.mrb[50].mxu0  ;;  %v2005_v56 = vld [vmem:[#allocation4 + $0x8] sm:$0xff] }
 0xba0   :  { %1994 = vst.msk [vmem:[#allocation5 + $0x8] sm:$0xff] %vm357_vm3, %v1988_v48  ;;  %v1991_v57 = vadd.f32 %v3200_v44, %v1990_v55  ;;  %v3531_v58 = vpop.f32.mrb[51].mxu0  ;;  %v2009_v61 = vpack.c.bf16 %v2005_v56, %v2005_v56 }
 0xba1   :  { %v2007_v63 = vld [vmem:[#allocation4 + $0x18] sm:$0xff] }
 0xba2   :  { %1995 = vst.msk [vmem:[#allocation5 + $0x18] sm:$0xff] %vm357_vm3, %v1991_v57  ;;  %3547 = vmatmul.mubr.msk.bf16.vlgmr.msra.gmra.mrb[48].mxu1 %vm357_vm3, %v2002_v59  ;;  %v2062_v62 = vsel %vm357_vm3, %v2009_v61, 0  ;;  %v2011_v1 = vpack.c.bf16 %v2007_v63, %v2007_v63 }
 0xba3   :  { %3539 = vmatpush3.bf16.xpose.msra.mxu0 %v2062_v62  ;;  %3557 = vmatpush3.bf16.msra.mxu1 %v2268_v32 }
 0xba4   :  { %3550 = vmatprep.subr.bf16.mxu0 %v4334_v60  ;;  %3558 = vmatprep.mubr.msk.bf16.mxu1 %vm3826_vm2, %v4334_v60  ;;  %v2154_v3 = vsel %vm357_vm3, %v2011_v1, 0 }
 0xba5   :  { %3568 = vmatprep.subr.bf16.mxu1 %v4334_v60 }
 0xba7   :  { %v2257_v4 = vld [vmem:[#allocation5 + $0x8] sm:$0xff] }
 0xba8   :  { %v2261_v6 = vpack.c.bf16 %v2257_v4, %v2257_v4  ;;  %v2258_v4 = vld [vmem:[#allocation5 + $0x10] sm:$0xff] }
 0xba9   :  { %v2259_v63 = vld [vmem:[#allocation5 + $0x18] sm:$0xff] }
 0xbaa   :  { %3541 = vmatmul.mubr.msk.bf16.vlgmr.msra.gmra.mrb[52].mxu0 %vm357_vm3, %v2001_v2  ;;  %v2314_v8 = vsel %vm960_vm4, %v2261_v6, 0 }
 0xbab   :  { %3551 = vmatpush3.bf16.xpose.msra.mxu0 %v2154_v3  ;;  %3552 = vmatprep.mubr.msk.bf16.mxu0 %vm3826_vm2, %v4334_v60  ;;  %v2263_v3 = vpack.c.bf16 %v2259_v63, %v2259_v63 }
 0xbac   :  { %3562 = vmatprep.subr.bf16.mxu0 %v4334_v60 }
 0xbb2   :  { %3553 = vmatmul.mubr.msk.bf16.vlgmr.msra.gmra.mrb[56].mxu0 %vm357_vm3, %v2003_v7 }
 0xbb3   :  { %3563 = vmatpush3.bf16.msra.mxu0 %v2314_v8  ;;  %3564 = vmatprep.mubr.msk.bf16.mxu0 %vm3826_vm2, %v4334_v60  ;;  %v2406_v8 = vsel %vm960_vm4, %v2263_v3, 0 }
 0xbb4   :  { %3574 = vmatprep.subr.bf16.mxu0 %v4334_v60 }
 0xc6d   :  { %v2052_v9 = vpop.f32.mrb[44].mxu1 }
 0xc6e   :  { %v3536_v10 = vpop.f32.mrb[45].mxu1  ;;  %v2196_v19 = vmul.f32 0.25, %v2052_v9  ;;  %v2262_v9 = vpack.c.bf16 %v2258_v4, %v2258_v4 }
 0xc6f   :  { %v2055_v11 = vpop.f32.mrb[46].mxu1 }
 0xc70   :  { %v3537_v12 = vpop.f32.mrb[47].mxu1  ;;  %v2204_v24 = vadd.f32 %v2196_v19, %v4209_v25  ;;  %v3691_v19 = vld [vmem:[#allocation11 + $0x108] sm:$0xff]  }
 0xc72   :  { %v2208_v30 = vsel %vm274_vm5, %v2204_v24, -inf }
 0xc75   :  { %v2144_v13 = vpop.f32.mrb[48].mxu1 }
 0xc76   :  { %v3548_v14 = vpop.f32.mrb[49].mxu1  ;;  %v2198_v27 = vmul.f32 0.25, %v2144_v13  ;;  %v2360_v13 = vsel %vm960_vm4, %v2262_v9, 0 }
 0xc77   :  { %v2147_v15 = vpop.f32.mrb[50].mxu1 }
 0xc78   :  { %v3549_v16 = vpop.f32.mrb[51].mxu1 }
 0xc7d   :  { %v2098_v17 = vpop.f32.mrb[52].mxu0 }
 0xc7e   :  { %v2197_v20 = vmul.f32 0.25, %v2098_v17  ;;  %v3542_v52 = vpop.f32.mrb[53].mxu0 }
 0xc7f   :  { %v2101_v21 = vpop.f32.mrb[54].mxu0 }
 0xc80   :  { %v3543_v22 = vpop.f32.mrb[55].mxu0  ;;  %v2205_v23 = vadd.f32 %v2197_v20, %v4207_v18  ;;  %v2206_v18 = vadd.f32 %v2198_v27, %v4217_v42  ;;  %v3692_v20 = vld [vmem:[#allocation11 + $0x108] sm:$0xff]   ;;  %v3693_v21 = vld [vmem:[#allocation11 + $0x100] sm:$0xff]  }
 0xc82   :  { %v2211_v53 = vsel %vm274_vm5, %v2205_v23, -inf  ;;  %v2214_v37 = vsel %vm274_vm5, %v2206_v18, -inf }
 0xc83   :  { %2212 = vmax.xlane.f32.xlu0 %v2211_v53 }
 0xc85   :  { %v2190_v26 = vpop.f32.mrb[56].mxu0 }
 0xc86   :  { %v2199_v28 = vmul.f32 0.25, %v2190_v26  ;;  %v3554_v29 = vpop.f32.mrb[57].mxu0 }
 0xc87   :  { %2209 = vmax.xlane.f32.xlu0 %v2208_v30  ;;  %v2193_v31 = vpop.f32.mrb[58].mxu0 }
 0xc88   :  { %v3555_v33 = vpop.f32.mrb[59].mxu0  ;;  %v2207_v35 = vadd.f32 %v2199_v28, %v4214_v34  ;;  %v3694_v31 = vld [vmem:[#allocation11 + $0x100] sm:$0xff]  }
 0xc8a   :  { %v2217_v36 = vsel %vm274_vm5, %v2207_v35, -inf }
 0xc8b   :  { %2218 = vmax.xlane.f32.xlu1 %v2217_v36 }
 0xc8f   :  { %2215 = vmax.xlane.f32.xlu1 %v2214_v37 }
 0xd10   :  { %v2213_v25 = vpop.xlane.xlu0 %2212 }
 0xd11   :  { %v2221_v38 = vsub.f32 %v2205_v23, %v2213_v25 }
 0xd13   :  { %v2226_v39 = vmul.f32 1.442695, %v2221_v38 }
 0xd14   :  { %v2210_v40 = vpop.xlane.xlu0 %2209 }
 0xd15   :  { %3735 = vpow2.f32 %v2226_v39  ;;  %v2220_v41 = vsub.f32 %v2204_v24, %v2210_v40 }
 0xd17   :  { %v2224_v43 = vmul.f32 1.442695, %v2220_v41 }
 0xd18   :  { %v2219_v44 = vpop.xlane.xlu1 %2218 }
 0xd19   :  { %3737 = vpow2.f32 %v2224_v43  ;;  %v2223_v45 = vsub.f32 %v2207_v35, %v2219_v44 }
 0xd1b   :  { %v2230_v46 = vmul.f32 1.442695, %v2223_v45 }
 0xd1c   :  { %v2216_v34 = vpop.xlane.xlu1 %2215 }
 0xd1d   :  { %3739 = vpow2.f32 %v2230_v46  ;;  %v2222_v47 = vsub.f32 %v2206_v18, %v2216_v34  ;;  %v3220_v34 = vld [vmem:[%s4514_s4 + $0x15] ss:$0 sm:$0xff] }
 0xd1f   :  { %v3736_v48 = vpop.eup %3735  ;;  %v2228_v42 = vmul.f32 1.442695, %v2222_v47 }
 0xd20   :  { %v2235_v49 = vsel %vm274_vm5, %v3736_v48, 0.0 }
 0xd21   :  { %3741 = vpow2.f32 %v2228_v42  ;;  %2236 = vadd.xlane.f32.xlu0 %v2235_v49 }
 0xd23   :  { %v3738_v54 = vpop.eup %3737 }
 0xd24   :  { %v2232_v55 = vsel %vm274_vm5, %v3738_v54, 0.0 }
 0xd25   :  { %2233 = vadd.xlane.f32.xlu0 %v2232_v55 }
 0xd27   :  { %v3740_v56 = vpop.eup %3739 }
 0xd28   :  { %v2241_v57 = vsel %vm274_vm5, %v3740_v56, 0.0 }
 0xd29   :  { %2242 = vadd.xlane.f32.xlu1 %v2241_v57 }
 0xd2b   :  { %v3742_v58 = vpop.eup %3741 }
 0xd2c   :  { %v2238_v59 = vsel %vm274_vm5, %v3742_v58, 0.0 }
 0xd2d   :  { %2239 = vadd.xlane.f32.xlu1 %v2238_v59 }
 0xdae   :  { %v2237_v61 = vpop.xlane.xlu0 %2236 }
 0xdaf   :  { %3743 = vrcp.f32 %v2237_v61 }
 0xdb2   :  { %v2234_v62 = vpop.xlane.xlu0 %2233 }
 0xdb3   :  { %3745 = vrcp.f32 %v2234_v62 }
 0xdb6   :  { %v2243_v32 = vpop.xlane.xlu1 %2242 }
 0xdb7   :  { %3747 = vrcp.f32 %v2243_v32 }
 0xdb9   :  { %v3744_v0 = vpop.eup %3743 }
 0xdba   :  { %v2249_v1 = vmul.f32 %v3744_v0, %v3736_v48  ;;  %v2240_v2 = vpop.xlane.xlu1 %2239 }
 0xdbb   :  { %3749 = vrcp.f32 %v2240_v2 }
 0xdbc   :  { %v2253_v5 = vpack.c.bf16 %v2249_v1, %v2249_v1 }
 0xdbd   :  { %v3746_v6 = vpop.eup %3745 }
 0xdbe   :  { %v2248_v7 = vmul.f32 %v3746_v6, %v3738_v54  ;;  %3565 = vmatmul.mubr.msk.bf16.vlgmr.msra.gmra.mrb[60].mxu0 %vm274_vm5, %v2253_v5 }
 0xdbf   :  { %3575 = vmatpush3.bf16.msra.mxu0 %v2406_v8  ;;  %3576 = vmatprep.mubr.msk.bf16.mxu0 %vm3826_vm2, %v4334_v60 }
 0xdc0   :  { %v2252_v10 = vpack.c.bf16 %v2248_v7, %v2248_v7  ;;  %3592 = vmatprep.subr.bf16.mxu0 %v4334_v60  ;;  %v3695_v7 = vld [vmem:[#allocation11 + $0x110] sm:$0xff]  }
 0xdc1   :  { %v3748_v11 = vpop.eup %3747 }
 0xdc2   :  { %v2251_v12 = vmul.f32 %v3748_v11, %v3740_v56  ;;  %3559 = vmatmul.mubr.msk.bf16.vlgmr.msra.gmra.mrb[52].mxu1 %vm274_vm5, %v2252_v10 }
 0xdc3   :  { %3569 = vmatpush3.bf16.msra.mxu1 %v2360_v13  ;;  %3570 = vmatprep.mubr.msk.bf16.mxu1 %vm3826_vm2, %v4334_v60 }
 0xdc4   :  { %v2255_v14 = vpack.c.bf16 %v2251_v12, %v2251_v12  ;;  %3580 = vmatprep.subr.bf16.mxu1 %v4334_v60 }
 0xdc5   :  { %v3750_v15 = vpop.eup %3749 }
 0xdc6   :  { %v2250_v16 = vmul.f32 %v3750_v15, %v3742_v58  ;;  %3577 = vmatmul.mubr.msk.bf16.vlgmr.msra.gmra.mrb[64].mxu0 %vm274_vm5, %v2255_v14 }
 0xdc7   :  { %3594 = vmatprep.mubr.msk.bf16.mxu0 %vm3826_vm2, %v4334_v60  ;;  %3593 = vmatpush3.bf16.msra.mxu0 %v3692_v20 }
 0xdc8   :  { %v2254_v17 = vpack.c.bf16 %v2250_v16, %v2250_v16  ;;  %3598 = vmatprep.subr.bf16.mxu0 %v4334_v60  ;;  %v3221_v16 = vld [vmem:[%s4514_s4 + $0x16] ss:$0 sm:$0xff] }
 0xdca   :  { %3571 = vmatmul.mubr.msk.bf16.vlgmr.msra.gmra.mrb[56].mxu1 %vm274_vm5, %v2254_v17 }
 0xdcb   :  { %3582 = vmatprep.mubr.msk.bf16.mxu1 %vm3826_vm2, %v4334_v60  ;;  %3581 = vmatpush3.bf16.msra.mxu1 %v3691_v19 }
 0xdcc   :  { %3586 = vmatprep.subr.bf16.mxu1 %v4334_v60 }
 0xe91   :  { %v2350_v52 = vpop.f32.mrb[60].mxu0 }
 0xe92   :  { %v2451_v22 = vpack.c.bf16 %v2350_v52, %v2350_v52  ;;  %v3566_v23 = vpop.f32.mrb[61].mxu0  ;;  %v3222_v52 = vld [vmem:[%s4514_s4 + $0x17] ss:$0 sm:$0xff] }
 0xe93   :  { %v2353_v53 = vpop.f32.mrb[62].mxu0 }
 0xe94   :  { %v3567_v24 = vpop.f32.mrb[63].mxu0  ;;  %3583 = vmatmul.mubr.msk.bf16.vlgmr.msra.gmra.mrb[60].mxu1 %vm357_vm3, %v2451_v22 }
 0xe95   :  { %v2304_v26 = vpop.f32.mrb[52].mxu1  ;;  %3587 = vmatpush3.bf16.msra.mxu1 %v3693_v21  ;;  %3588 = vmatprep.mubr.msk.bf16.mxu1 %vm3826_vm2, %v4334_v60  ;;  %v3697_v24 = vld [vmem:[#allocation11 + $0x120] sm:$0xff]  }
 0xe96   :  { %v3560_v27 = vpop.f32.mrb[53].mxu1  ;;  %3604 = vmatprep.subr.bf16.mxu1 %v4334_v60  ;;  %v2448_v25 = vpack.c.bf16 %v2304_v26, %v2304_v26  ;;  %v3698_v26 = vld [vmem:[#allocation11 + $0x128] sm:$0xff]  }
 0xe97   :  { %v2307_v28 = vpop.f32.mrb[54].mxu1  ;;  %v3699_v27 = vld [vmem:[#allocation11 + $0x130] sm:$0xff]  }
 0xe98   :  { %v3561_v29 = vpop.f32.mrb[55].mxu1  ;;  %v3700_v28 = vld [vmem:[#allocation11 + $0x138] sm:$0xff]  }
 0xe99   :  { %v2442_v30 = vpop.f32.mrb[64].mxu0  ;;  %v3223_v29 = vld [vmem:[%s4514_s4 + $0x18] ss:$0 sm:$0xff] }
 0xe9a   :  { %v2556_v33 = vpack.c.bf16 %v2442_v30, %v2442_v30  ;;  %v3578_v35 = vpop.f32.mrb[65].mxu0 }
 0xe9b   :  { %v2445_v36 = vpop.f32.mrb[66].mxu0 }
 0xe9c   :  { %v3579_v18 = vpop.f32.mrb[67].mxu0  ;;  %3595 = vmatmul.mubr.msk.bf16.vlgmr.msra.gmra.mrb[68].mxu0 %vm357_vm3, %v2556_v33 }
 0xe9d   :  { %v2396_v37 = vpop.f32.mrb[56].mxu1  ;;  %3599 = vmatpush3.bf16.msra.mxu0 %v3694_v31  ;;  %3600 = vmatprep.mubr.msk.bf16.mxu0 %vm3826_vm2, %v4334_v60 }
 0xe9e   :  { %v3572_v38 = vpop.f32.mrb[57].mxu1  ;;  %3612 = vmatprep.subr.bf16.mxu0 %v4334_v60  ;;  %v2553_v41 = vpack.c.bf16 %v2396_v37, %v2396_v37 }
 0xe9f   :  { %v2399_v39 = vpop.f32.mrb[58].mxu1 }
 0xea0   :  { %v3573_v40 = vpop.f32.mrb[59].mxu1  ;;  %3589 = vmatmul.mubr.msk.bf16.vlgmr.msra.gmra.mrb[60].mxu1 %vm357_vm3, %v2448_v25 }
 0xea1   :  { %3608 = vmatprep.mubr.msk.bf16.mxu1 %vm3826_vm2, %v4334_v60  ;;  %3605 = vmatpush3.bf16.msra.mxu1 %v3695_v7  ;;  %v3702_v7 = vld [vmem:[#allocation11 + $0x148] sm:$0xff]  }
 0xea2   :  { %3606 = vmatprep.subr.bf16.mxu1 %v4334_v60 }
 0xea8   :  { %3601 = vmatmul.mubr.msk.bf16.vlgmr.msra.gmra.mrb[68].mxu0 %vm357_vm3, %v2553_v41 }
 0xea9   :  { %3620 = vmatprep.mubr.msk.bf16.mxu0 %vm3826_vm2, %v4334_v60  ;;  %3613 = vmatpush3.bf16.msra.mxu0 %v3697_v24 }
 0xeaa   :  { %3614 = vmatprep.subr.bf16.mxu0 %v4334_v60 }
 0xead   :  { %3615 = vmatpush3.bf16.msra.mxu0 %v3698_v26 }
 0xeae   :  { %3616 = vmatprep.subr.bf16.mxu0 %v4334_v60 }
 0xeb1   :  { %3617 = vmatpush3.bf16.msra.mxu0 %v3699_v27 }
 0xeb2   :  { %3618 = vmatprep.subr.bf16.mxu0 %v4334_v60 }
 0xeb5   :  { %3619 = vmatpush3.bf16.msra.mxu0 %v3700_v28 }
 0xf73   :  { %v2546_v43 = vpop.f32.mrb[60].mxu1 }
 0xf74   :  { %2552 = vst.msk [vmem:[#allocation7] sm:$0xff] %vm225_vm1, %v2546_v43  ;;  %v3590_v44 = vpop.f32.mrb[61].mxu1 }
 0xf75   :  { %v2549_v45 = vpop.f32.mrb[62].mxu1 }
 0xf76   :  { %v3591_v46 = vpop.f32.mrb[63].mxu1 }
 0xf7b   :  { %v2651_v47 = vpop.f32.mrb[68].mxu0  ;;  %v2658_v48 = vld [vmem:[#allocation7] sm:$0xff] }
 0xf7c   :  { %2657 = vst.msk [vmem:[#allocation7 + $0x8] sm:$0xff] %vm225_vm1, %v2651_v47  ;;  %v3602_v42 = vpop.f32.mrb[69].mxu0  ;;  %v2665_v49 = vadd.f32 %v3220_v34, %v2658_v48  ;;  %v3227_v47 = vld [vmem:[%s4514_s4 + $0x19] ss:$0 sm:$0xff] }
 0xf7d   :  { %v2654_v54 = vpop.f32.mrb[70].mxu0 }
 0xf7e   :  { %v3603_v55 = vpop.f32.mrb[71].mxu0  ;;  %v2667_v56 = vadd.f32 %v2665_v49, %v4310_v50 }
 0xf80   :  { %v2671_v57 = vsel %vm225_vm1, %v2667_v56, 0.0 }
 0xf81   :  { %2672 = vadd.xlane.f32.xlu0 %v2671_v57 }
 0xf83   :  { %v2659_v58 = vld [vmem:[#allocation7 + $0x8] sm:$0xff] }
 0xf84   :  { %v2666_v59 = vadd.f32 %v3220_v34, %v2659_v58 }
 0xf86   :  { %v2668_v61 = vadd.f32 %v2666_v59, %v4312_v51  ;;  %v3696_v51 = vld [vmem:[#allocation11 + $0x118] sm:$0xff]  }
 0xf87   :  { %3607 = vmatpush3.bf16.msra.mxu1 %v3696_v51 }
 0xf88   :  { %v2674_v62 = vsel %vm225_vm1, %v2668_v61, 0.0  ;;  %3624 = vmatprep.subr.bf16.mxu1 %v4334_v60 }
 0xf89   :  { %2675 = vadd.xlane.f32.xlu1 %v2674_v62 }
0x100e   :  { %v2673_v32 = vpop.xlane.xlu0 %2672 }
0x100f   :  { %v2677_v63 = vmul.f32 0.03125, %v2673_v32 }
0x1011   :  { %v2679_v0 = vsub.f32 %v2667_v56, %v2677_v63 }
0x1013   :  { %v2681_v1 = vmul.f32 %v2679_v0, %v2679_v0 }
0x1015   :  { %v2683_v2 = vsel %vm225_vm1, %v2681_v1, 0.0 }
0x1016   :  { %2684 = vadd.xlane.f32.xlu0 %v2683_v2  ;;  %v2676_v3 = vpop.xlane.xlu1 %2675 }
0x1017   :  { %v2678_v4 = vmul.f32 0.03125, %v2676_v3 }
0x1019   :  { %v2680_v50 = vsub.f32 %v2668_v61, %v2678_v4 }
0x101b   :  { %v2682_v5 = vmul.f32 %v2680_v50, %v2680_v50 }
0x101d   :  { %v2686_v6 = vsel %vm225_vm1, %v2682_v5, 0.0 }
0x101e   :  { %2687 = vadd.xlane.f32.xlu1 %v2686_v6  ;;  %v3701_v6 = vld [vmem:[#allocation11 + $0x140] sm:$0xff]  }
0x10a3   :  { %v2685_v8 = vpop.xlane.xlu0 %2684 }
0x10a4   :  { %v2689_v9 = vmul.f32 0.03125, %v2685_v8 }
0x10a6   :  { %v2691_v10 = vadd.f32 1e-12, %v2689_v9 }
0x10a8   :  { %3751 = vrsqrt.f32 %v2691_v10 }
0x10ab   :  { %v2688_v11 = vpop.xlane.xlu1 %2687 }
0x10ac   :  { %v2690_v12 = vmul.f32 0.03125, %v2688_v11 }
0x10ae   :  { %v2692_v13 = vadd.f32 1e-12, %v2690_v12 }
0x10b0   :  { %3753 = vrsqrt.f32 %v2692_v13 }
0x10b2   :  { %v3752_v14 = vpop.eup %3751 }
0x10b3   :  { %v2695_v15 = vmul.f32 %v3752_v14, %v2679_v0  ;;  %v3233_v14 = vld [vmem:[%s4514_s4 + $0x1a] ss:$0 sm:$0xff] }
0x10b5   :  { %v2701_v19 = vmul.f32 %v3221_v16, %v2695_v15 }
0x10b7   :  { %v2707_v22 = vadd.f32 %v3222_v52, %v2701_v19 }
0x10ba   :  { %v3754_v17 = vpop.eup %3753 }
0x10bb   :  { %v2696_v20 = vmul.f32 %v3754_v17, %v2680_v50 }
0x10bd   :  { %v2702_v21 = vmul.f32 %v3221_v16, %v2696_v20 }
0x10bf   :  { %v2708_v23 = vadd.f32 %v3222_v52, %v2702_v21 }
0x10c1   :  { %v2709_v53 = vpack.c.bf16 %v2708_v23, %v2707_v22 }
0x10c3   :  { %3609 = vmatmul.mubr.msk.bf16.vlgmr.msra.gmra.mrb[64].mxu1 %vm225_vm1, %v2709_v53  ;;  %v3235_v53 = vld [vmem:[%s4514_s4 + $0x1c] ss:$0 sm:$0xff] }
0x10c4   :  { %3628 = vmatprep.mubr.msk.bf16.mxu1 %vm3826_vm2, %v4334_v60  ;;  %3625 = vmatpush3.bf16.msra.mxu1 %v3701_v6 }
0x10c5   :  { %3626 = vmatprep.subr.bf16.mxu1 %v4334_v60  ;;  %v3234_v60 = vld [vmem:[%s4514_s4 + $0x1b] ss:$0 sm:$0xff] }
0x10c8   :  { %3627 = vmatpush3.bf16.msra.mxu1 %v3702_v7 }
0x1196   :  { %v2768_v30 = vpop.f32.mrb[64].mxu1 }
0x1197   :  { %v2769_v31 = vadd.f32 %v3223_v29, %v2768_v30  ;;  %v3610_v33 = vpop.f32.mrb[65].mxu1  ;;  %v3239_v30 = vld [vmem:[%s4514_s4 + $0x1d] ss:$0 sm:$0xff] }
0x1198   :  { %v2771_v35 = vpop.f32.mrb[66].mxu1 }
0x1199   :  { %v2777_v36 = vmul.f32 0.70710677, %v2769_v31  ;;  %v2772_v18 = vadd.f32 %v3223_v29, %v2771_v35  ;;  %v3611_v37 = vpop.f32.mrb[67].mxu1  ;;  %v2775_v41 = vmul.f32 0.5, %v2769_v31 }
0x119b   :  { %3755 = verf.f32 %v2777_v36  ;;  %v2778_v25 = vmul.f32 0.70710677, %v2772_v18  ;;  %v2776_v43 = vmul.f32 0.5, %v2772_v18  ;;  %v3240_v36 = vld [vmem:[%s4514_s4 + $0x1e] ss:$0 sm:$0xff] }
0x119d   :  { %3757 = verf.f32 %v2778_v25 }
0x11a5   :  { %v3756_v38 = vpop.eup %3755 }
0x11a6   :  { %v2781_v39 = vadd.f32 1.0, %v3756_v38 }
0x11a7   :  { %v3758_v40 = vpop.eup %3757 }
0x11a8   :  { %v2782_v44 = vadd.f32 1.0, %v3758_v40  ;;  %v2783_v45 = vmul.f32 %v2781_v39, %v2775_v41 }
0x11aa   :  { %v2784_v46 = vmul.f32 %v2782_v44, %v2776_v43  ;;  %v2994_v43 = vld [vmem:[%s4515_s5] sm:$0x3] }
0x11ac   :  { %v2785_v34 = vpack.c.bf16 %v2784_v46, %v2783_v45 }
0x11ae   :  { %3621 = vmatmul.mubr.msk.bf16.vlgmr.msra.gmra.mrb[72].mxu0 %vm1517_vm6, %v2785_v34 }
0x1281   :  { %v2860_v48 = vpop.f32.mrb[72].mxu0 }
0x1282   :  { %v2861_v42 = vadd.f32 %v3227_v47, %v2860_v48  ;;  %v3622_v49 = vpop.f32.mrb[73].mxu0 }
0x1283   :  { %v2863_v54 = vpop.f32.mrb[74].mxu0 }
0x1284   :  { %v2864_v55 = vadd.f32 %v3227_v47, %v2863_v54  ;;  %v3623_v56 = vpop.f32.mrb[75].mxu0  ;;  %v2867_v57 = vadd.f32 %v2861_v42, %v2707_v22 }
0x1286   :  { %v2871_v58 = vsel %vm225_vm1, %v2867_v57, 0.0  ;;  %v2868_v59 = vadd.f32 %v2864_v55, %v2708_v23 }
0x1287   :  { %2872 = vadd.xlane.f32.xlu0 %v2871_v58 }
0x1288   :  { %v2874_v61 = vsel %vm225_vm1, %v2868_v59, 0.0 }
0x1289   :  { %2875 = vadd.xlane.f32.xlu1 %v2874_v61 }
0x1314   :  { %v2873_v62 = vpop.xlane.xlu0 %2872 }
0x1315   :  { %v2877_v32 = vmul.f32 0.03125, %v2873_v62 }
0x1316   :  { %v2876_v63 = vpop.xlane.xlu1 %2875 }
0x1317   :  { %v2879_v0 = vsub.f32 %v2867_v57, %v2877_v32  ;;  %v2878_v1 = vmul.f32 0.03125, %v2876_v63 }
0x1319   :  { %v2880_v2 = vsub.f32 %v2868_v59, %v2878_v1  ;;  %v2881_v3 = vmul.f32 %v2879_v0, %v2879_v0 }
0x131b   :  { %v2883_v4 = vsel %vm225_vm1, %v2881_v3, 0.0  ;;  %v2882_v50 = vmul.f32 %v2880_v2, %v2880_v2 }
0x131c   :  { %2884 = vadd.xlane.f32.xlu0 %v2883_v4 }
0x131d   :  { %v2886_v5 = vsel %vm225_vm1, %v2882_v50, 0.0 }
0x131e   :  { %2887 = vadd.xlane.f32.xlu1 %v2886_v5 }
0x13a9   :  { %v2885_v51 = vpop.xlane.xlu0 %2884 }
0x13aa   :  { %v2889_v8 = vmul.f32 0.03125, %v2885_v51 }
0x13ab   :  { %v2888_v9 = vpop.xlane.xlu1 %2887 }
0x13ac   :  { %v2891_v10 = vadd.f32 1e-12, %v2889_v8  ;;  %v2890_v11 = vmul.f32 0.03125, %v2888_v9 }
0x13ae   :  { %3759 = vrsqrt.f32 %v2891_v10  ;;  %v2892_v12 = vadd.f32 1e-12, %v2890_v11 }
0x13b0   :  { %3761 = vrsqrt.f32 %v2892_v12 }
0x13b8   :  { %v3760_v13 = vpop.eup %3759 }
0x13b9   :  { %v2895_v15 = vmul.f32 %v3760_v13, %v2879_v0 }
0x13ba   :  { %v3762_v16 = vpop.eup %3761 }
0x13bb   :  { %v2901_v17 = vmul.f32 %v3233_v14, %v2895_v15  ;;  %v2896_v19 = vmul.f32 %v3762_v16, %v2880_v2 }
0x13bd   :  { %v2907_v20 = vadd.f32 %v3234_v60, %v2901_v17  ;;  %v2902_v52 = vmul.f32 %v3233_v14, %v2896_v19 }
0x13bf   :  { %2909 = vst.msk [vmem:[#allocation2] sm:$0xff] %vm225_vm1, %v2907_v20  ;;  %v2908_v21 = vadd.f32 %v3234_v60, %v2902_v52 }
0x13c1   :  { %2910 = vst.msk [vmem:[#allocation2 + $0x8] sm:$0xff] %vm225_vm1, %v2908_v21 }
0x13c8   :  { %v2911_v22 = vld [vmem:[#allocation2] ss:$8 sm:$0x3] }
0x13c9   :  { %v2912_v23 = vpack.c.bf16 %v2911_v22, %v2911_v22 }
0x13cb   :  { %3629 = vmatmul.mubr.msk.bf16.vlgmr.msra.gmra.mrb[68].mxu1 %vm225_vm1, %v2912_v23 }
0x149e   :  { %v2971_v24 = vpop.f32.mrb[68].mxu1 }
0x149f   :  { %v2972_v26 = vadd.f32 %v3235_v53, %v2971_v24  ;;  %v3630_v27 = vpop.f32.mrb[69].mxu1 }
0x14a0   :  { %v2974_v28 = vpop.f32.mrb[70].mxu1 }
0x14a1   :  { %3763 = vtanh.f32 %v2972_v26  ;;  %v3631_v29 = vpop.f32.mrb[71].mxu1 }
0x14ab   :  { %v3764_v31 = vpop.eup %3763 }
0x14ac   :  { %v2983_v33 = vmul.f32 %v3764_v31, %v3239_v30 }
0x14ae   :  { %v2985_v35 = vsel %vm2984_vm7, %v2983_v33, 0.0 }
0x14af   :  { %2986 = vadd.xlane.f32.xlu0 %v2985_v35 }
0x153c   :  { %v2987_v18 = vpop.xlane.xlu0 %2986 }
0x153d   :  { %v2993_v37 = vadd.f32 %v3240_v36, %v2987_v18 }
0x153f   :  { %v2998_v25 = vand.u32 2147483647, %v2993_v37  ;;  %3008 = vst.msk [vmem:[%s4516_s6] sm:$0x3] %vm3007_vm8, %v2993_v37  ;;  %v2995_v44 = vmax.f32 %v2993_v37, 0.0  ;;  %v2996_v45 = vmul.f32 %v2994_v43, %v2993_v37 }
0x1541   :  { %v2999_v38 = vsub.f32 0.0, %v2998_v25  ;;  %v2997_v34 = vsub.f32 %v2995_v44, %v2996_v45 }
0x1543   :  { %v3000_v39 = vmul.f32 1.442695, %v2999_v38 }
0x1545   :  { %3765 = vpow2.f32 %v3000_v39 }
0x154f   :  { %v3766_v40 = vpop.eup %3765 }
0x1550   :  { %v3002_v41 = vadd.f32 1.0, %v3766_v40 }
0x1552   :  { %3767 = vlog2.f32 %v3002_v41 }
0x155c   :  { %v3768_v46 = vpop.eup %3767 }
0x155d   :  { %v3004_v47 = vmul.f32 0.6931472, %v3768_v46 }
0x155f   :  { %v3005_v48 = vadd.f32 %v3004_v47, %v2997_v34 }
0x1561   :  { %v3009_v42 = vsel %vm3007_vm8, %v3005_v48, 0.0 }
0x1562   :  { %3010 = vadd.xlane.f32.xlu1 %v3009_v42 }
0x15ef   :  { %v3011_v49 = vpop.xlane.xlu1 %3010 }
0x15f0   :  { %v3012_v54 = vrot.slane %v3011_v49, 4 }
0x15f2   :  { %v3013_v55 = vadd.f32 %v3012_v54, %v3011_v49 }
0x15f4   :  { %v3014_v56 = vrot.slane %v3013_v55, 2 }
0x15f6   :  { %v3015_v57 = vadd.f32 %v3014_v56, %v3013_v55 }
0x15f8   :  { %v3016_v58 = vrot.slane %v3015_v57, 1 }
0x15fa   :  { %v3017_v59 = vadd.f32 %v3016_v58, %v3015_v57 }
0x15fc   :  { %3648 = vpush %v3017_v59 }
0x162d   :  { %s3649_s4 = spop %3648 }
0x162e   :  { %v3019_v61 = vstv %s3649_s4 }
0x162f   :  { %v3021_v62 = vmul.f32 0.5, %v3019_v61 }
0x1631   :  { %3023 = vst.msk [vmem:[%s4516_s6 + $0x2] sm:$0x1] %vm3022_vm9, %v3021_v62 }
0x1632   :  { %3028 = vsyncpa [#allocation12], 1 }

</bundles_post_ra>
